<compile_context>
chip_gen: v6e
topology: v6e:2x2x1
jax: 0.10.0
libtpu: 0.0.40
codegen_flags: <defaults>
</compile_context>

<pallas_src>
import functools

import jax
import jax.numpy as jnp
from jax.experimental import pallas as pl
from jax.experimental.pallas import tpu as pltpu


LATENT_DIM = 256
ACTION_DIM = 8
HIDDEN_DIM = 200
MLP_DIM = 200            # hidden width of the prior / posterior heads
HP = 256                 # hidden_dim / mlp_dim padded to a 128-lane multiple
GP = 3 * HP              # padded GRU gate width: [r | z | n], 256-wide chunks


def _round_up(x, m):
    return ((x + m - 1) // m) * m


# --------------------------------------------------------------------------
# Kernel 1: serial GRU recurrence (only gh = h @ W_hh on the critical path)
# --------------------------------------------------------------------------
def _make_recurrence_kernel(ts):
    def kernel(h0_ref, gi_ref, whh_ref, bhh_ref, hid_ref, h_scr):
        # New batch tile starts its recurrence from the provided initial state.
        @pl.when(pl.program_id(1) == 0)
        def _():
            h_scr[...] = h0_ref[...]

        h = h_scr[...]                                     # (bt, HP) f32
        # Full unroll over the TS-step time block (== fori_loop(unroll=True));
        # static indices keep every gi load / hid store a static aligned access.
        for s in range(ts):
            h_b = h.astype(jnp.bfloat16)
            # Per-gate matmuls keep live intermediates to (bt, HP) chunks.
            gh_r = jnp.dot(h_b, whh_ref[:, 0:HP],
                           preferred_element_type=jnp.float32) + bhh_ref[:, 0:HP]
            gh_z = jnp.dot(h_b, whh_ref[:, HP:2 * HP],
                           preferred_element_type=jnp.float32) + bhh_ref[:, HP:2 * HP]
            gh_n = jnp.dot(h_b, whh_ref[:, 2 * HP:3 * HP],
                           preferred_element_type=jnp.float32) + bhh_ref[:, 2 * HP:3 * HP]
            r = jax.nn.sigmoid(gi_ref[s, :, 0:HP] + gh_r)
            z = jax.nn.sigmoid(gi_ref[s, :, HP:2 * HP] + gh_z)
            n = jnp.tanh(gi_ref[s, :, 2 * HP:3 * HP] + r * gh_n)
            h = (1.0 - z) * n + z * h
            hid_ref[s] = h.astype(hid_ref.dtype)
        h_scr[...] = h

    return kernel


# --------------------------------------------------------------------------
# Kernel 2: time-parallel prior / posterior heads over flattened (T*B, HP)
# --------------------------------------------------------------------------
def _make_heads_kernel(have_post):
    def kernel(*refs):
        if have_post:
            (h_ref, nxt_ref, wp1, bp1, wp2, bp2,
             wq1h, wq1l, bq1, wq2, bq2, prior_ref, post_ref) = refs
        else:
            (h_ref, wp1, bp1, wp2, bp2, prior_ref) = refs

        h = h_ref[...]                                      # (rt, HP) bf16
        p1 = jnp.maximum(
            jnp.dot(h, wp1[...], preferred_element_type=jnp.float32) + bp1[...],
            0.0)
        prior = (jnp.dot(p1.astype(jnp.bfloat16), wp2[...],
                         preferred_element_type=jnp.float32) + bp2[...])
        prior_ref[...] = prior.astype(prior_ref.dtype)

        if have_post:
            xn = nxt_ref[...]                               # (rt, L) bf16
            q1 = jnp.maximum(
                jnp.dot(h, wq1h[...], preferred_element_type=jnp.float32)
                + jnp.dot(xn, wq1l[...], preferred_element_type=jnp.float32)
                + bq1[...],
                0.0)
            post = (jnp.dot(q1.astype(jnp.bfloat16), wq2[...],
                            preferred_element_type=jnp.float32) + bq2[...])
            post_ref[...] = post.astype(post_ref.dtype)

    return kernel


# --------------------------------------------------------------------------
# Parameter repacking (PyTorch layout -> padded (in, out)-layout operands)
# --------------------------------------------------------------------------
def _pack_params(params):
    f32, bf16 = jnp.float32, jnp.bfloat16
    H, L, A, M = HIDDEN_DIM, LATENT_DIM, ACTION_DIM, MLP_DIM

    w_ih, w_hh = params["gru_w_ih"], params["gru_w_hh"]      # (3H, L+A), (3H, H)
    b_ih, b_hh = params["gru_b_ih"], params["gru_b_hh"]      # (3H,), (3H,)

    wih = jnp.zeros((L + A, GP), f32)
    whh = jnp.zeros((HP, GP), f32)
    bih = jnp.zeros((1, GP), f32)
    bhh = jnp.zeros((1, GP), f32)
    for g in range(3):                                        # gate order: r, z, n
        src = slice(g * H, (g + 1) * H)
        dst = slice(g * HP, g * HP + H)
        wih = wih.at[:, dst].set(w_ih[src, :].T)
        whh = whh.at[:H, dst].set(w_hh[src, :].T)
        bih = bih.at[0, dst].set(b_ih[src])
        bhh = bhh.at[0, dst].set(b_hh[src])

    w_p1, b_p1 = params["prior_w1"], params["prior_b1"]       # (200,200), (200,)
    w_p2, b_p2 = params["prior_w2"], params["prior_b2"]       # (512,200), (512,)
    wp1 = jnp.zeros((HP, HP), f32).at[:H, :M].set(w_p1.T)
    bp1 = jnp.zeros((1, HP), f32).at[0, :M].set(b_p1)
    wp2 = jnp.zeros((HP, L), f32).at[:M, :].set(w_p2[:L, :].T)   # mean columns only
    bp2 = b_p2[:L].astype(f32).reshape(1, L)

    w_q1, b_q1 = params["post_w1"], params["post_b1"]         # (200,456), (200,)
    w_q2, b_q2 = params["post_w2"], params["post_b2"]         # (512,200), (512,)
    wq1h = jnp.zeros((HP, HP), f32).at[:H, :M].set(w_q1[:, :H].T)
    wq1l = jnp.zeros((L, HP), f32).at[:, :M].set(w_q1[:, H:H + L].T)
    bq1 = jnp.zeros((1, HP), f32).at[0, :M].set(b_q1)
    wq2 = jnp.zeros((HP, L), f32).at[:M, :].set(w_q2[:L, :].T)   # mean columns only
    bq2 = b_q2[:L].astype(f32).reshape(1, L)

    gru = dict(wih=wih, bih=bih, whh=whh.astype(bf16), bhh=bhh)
    heads = (wp1.astype(bf16), bp1, wp2.astype(bf16), bp2,
             wq1h.astype(bf16), wq1l.astype(bf16), bq1, wq2.astype(bf16), bq2)
    return gru, heads


# --------------------------------------------------------------------------
# Forward wrapper
# --------------------------------------------------------------------------
@functools.partial(jax.jit, static_argnames=("ts",))
def rssm_forward(params, prev_latent, action, hidden_state, next_latent=None, *,
                 ts=4):
    """Pallas forward of RecurrentStateSpaceModel.

    prev_latent: (B, T, latent), action: (B, T, action), hidden_state: (B, hidden),
    next_latent: (B, T, latent) or None.
    Returns (prior_means, posterior_means_or_None, hidden_states), matching the
    PyTorch module (Normal(mean, std).mean == mean).
    """
    B, T, L = prev_latent.shape
    A = action.shape[-1]
    H = hidden_state.shape[-1]
    assert (L, A, H) == (LATENT_DIM, ACTION_DIM, HIDDEN_DIM)
    have_post = next_latent is not None

    f32, bf16 = jnp.float32, jnp.bfloat16
    gru, heads = _pack_params(params)

    # --- batch tiling (>= 2 blocks for moderate/large B -> v7x megacore) ---
    if B <= 128:
        bt, nb = _round_up(B, 8), 1
    elif B <= 512:
        bt, nb = max(64, _round_up(pl.cdiv(B, 2), 8)), 2
    else:
        bt, nb = 256, pl.cdiv(B, 256)
    b_pad = nb * bt

    # --- time blocking ---
    ts = max(1, min(ts, T))
    t_pad = _round_up(T, ts)
    nt = t_pad // ts

    # --- 1) input projection for all timesteps, outside the recurrence ---
    x = jnp.concatenate([prev_latent.astype(f32), action.astype(f32)], axis=-1)
    x_tm = jnp.transpose(x, (1, 0, 2))                              # (T, B, L+A)
    x_tm = jnp.pad(x_tm, ((0, t_pad - T), (0, b_pad - B), (0, 0)))
    gi_tm = (jnp.einsum("tbk,kg->tbg", x_tm, gru["wih"],
                        precision=jax.lax.Precision.HIGHEST) + gru["bih"])
    gi_tm = gi_tm.astype(bf16)                                      # streamed in bf16

    h0 = jnp.zeros((b_pad, HP), f32).at[:B, :H].set(hidden_state.astype(f32))

    # --- 2) serial recurrence kernel ---
    hid_tm = pl.pallas_call(
        _make_recurrence_kernel(ts),
        out_shape=jax.ShapeDtypeStruct((t_pad, b_pad, HP), bf16),
        grid_spec=pltpu.PrefetchScalarGridSpec(
            num_scalar_prefetch=0,
            grid=(nb, nt),
            in_specs=[
                pl.BlockSpec((bt, HP), lambda b, t: (b, 0)),        # h0 (per batch tile)
                pl.BlockSpec((ts, bt, GP), lambda b, t: (t, b, 0)),  # streamed gi (bf16)
                pl.BlockSpec((HP, GP), lambda b, t: (0, 0)),        # W_hh (resident, bf16)
                pl.BlockSpec((1, GP), lambda b, t: (0, 0)),         # b_hh (resident, f32)
            ],
            out_specs=pl.BlockSpec((ts, bt, HP), lambda b, t: (t, b, 0)),
            scratch_shapes=[pltpu.VMEM((bt, HP), jnp.float32)],
        ),
        compiler_params=pltpu.CompilerParams(
            dimension_semantics=("parallel", "arbitrary"),
            vmem_limit_bytes=32 * 1024 * 1024,
        ),
    )(h0, gi_tm, gru["whh"], gru["bhh"])

    # --- 3) prior / posterior heads as a parallel row-tiled kernel ---
    n_rows = t_pad * b_pad
    h_flat = hid_tm.reshape(n_rows, HP)                             # bf16
    rt = next(r for r in (1024, 512, 256, 128, 64, 32, 16, 8) if n_rows % r == 0)
    n_tiles = n_rows // rt

    (wp1, bp1, wp2, bp2, wq1h, wq1l, bq1, wq2, bq2) = heads

    def row_spec(feat):
        return pl.BlockSpec((rt, feat), lambda i: (i, 0))

    def const_spec(shape):
        return pl.BlockSpec(shape, lambda i: (0, 0))

    if have_post:
        nxt_tm = jnp.transpose(next_latent.astype(bf16), (1, 0, 2))
        nxt_tm = jnp.pad(nxt_tm, ((0, t_pad - T), (0, b_pad - B), (0, 0)))
        nxt_flat = nxt_tm.reshape(n_rows, L)
        head_in = (h_flat, nxt_flat, wp1, bp1, wp2, bp2, wq1h, wq1l, bq1, wq2, bq2)
        in_specs = [row_spec(HP), row_spec(L)] + [const_spec(a.shape) for a in head_in[2:]]
        out_shape = (jax.ShapeDtypeStruct((n_rows, L), f32),
                     jax.ShapeDtypeStruct((n_rows, L), f32))
        out_specs = [row_spec(L), row_spec(L)]
    else:
        head_in = (h_flat, wp1, bp1, wp2, bp2)
        in_specs = [row_spec(HP)] + [const_spec(a.shape) for a in head_in[1:]]
        out_shape = jax.ShapeDtypeStruct((n_rows, L), f32)
        out_specs = row_spec(L)

    head_out = pl.pallas_call(
        _make_heads_kernel(have_post),
        out_shape=out_shape,
        grid_spec=pltpu.PrefetchScalarGridSpec(
            num_scalar_prefetch=0,
            grid=(n_tiles,),
            in_specs=in_specs,
            out_specs=out_specs,
        ),
        compiler_params=pltpu.CompilerParams(
            dimension_semantics=("parallel",),
            vmem_limit_bytes=32 * 1024 * 1024,
        ),
    )(*head_in)

    def unflatten(y):
        return jnp.transpose(y.reshape(t_pad, b_pad, L)[:T, :B], (1, 0, 2))

    if have_post:
        prior_means = unflatten(head_out[0])
        post_means = unflatten(head_out[1])
    else:
        prior_means = unflatten(head_out)
        post_means = None

    hidden_states = jnp.transpose(hid_tm[:T, :B, :H].astype(f32), (1, 0, 2))
    return prior_means, post_means, hidden_states


# --------------------------------------------------------------------------
# Deterministic PyTorch-layout parameter init + pure-JAX reference
# --------------------------------------------------------------------------
def init_params(key, latent_dim=LATENT_DIM, action_dim=ACTION_DIM,
                hidden_dim=HIDDEN_DIM, mlp_dim=MLP_DIM):
    ks = jax.random.split(key, 12)

    def lin(kw, kb, out_d, in_d):
        lim = 1.0 / float(in_d) ** 0.5
        w = jax.random.uniform(kw, (out_d, in_d), jnp.float32, -lim, lim)
        b = jax.random.uniform(kb, (out_d,), jnp.float32, -lim, lim)
        return w, b

    gw_ih, gb_ih = lin(ks[0], ks[1], 3 * hidden_dim, latent_dim + action_dim)
    gw_hh, gb_hh = lin(ks[2], ks[3], 3 * hidden_dim, hidden_dim)
    pw1, pb1 = lin(ks[4], ks[5], mlp_dim, hidden_dim)
    pw2, pb2 = lin(ks[6], ks[7], 2 * latent_dim, mlp_dim)
    qw1, qb1 = lin(ks[8], ks[9], mlp_dim, hidden_dim + latent_dim)
    qw2, qb2 = lin(ks[10], ks[11], 2 * latent_dim, mlp_dim)
    return dict(gru_w_ih=gw_ih, gru_b_ih=gb_ih, gru_w_hh=gw_hh, gru_b_hh=gb_hh,
                prior_w1=pw1, prior_b1=pb1, prior_w2=pw2, prior_b2=pb2,
                post_w1=qw1, post_b1=qb1, post_w2=qw2, post_b2=qb2)


def rssm_reference(params, prev_latent, action, hidden_state, next_latent):
    """Pure-JAX reference with PyTorch GRUCell / Linear semantics."""
    H, L = HIDDEN_DIM, LATENT_DIM
    hi = jax.lax.Precision.HIGHEST

    def dot(a, b):
        return jnp.dot(a, b, precision=hi)

    w_ih, w_hh = params["gru_w_ih"], params["gru_w_hh"]
    b_ih, b_hh = params["gru_b_ih"], params["gru_b_hh"]
    h = hidden_state
    priors, posts, hiddens = [], [], []
    T = prev_latent.shape[1]
    for t in range(T):
        x = jnp.concatenate([prev_latent[:, t], action[:, t]], axis=1)
        gi = dot(x, w_ih.T) + b_ih
        gh = dot(h, w_hh.T) + b_hh
        r = jax.nn.sigmoid(gi[:, :H] + gh[:, :H])
        z = jax.nn.sigmoid(gi[:, H:2 * H] + gh[:, H:2 * H])
        n = jnp.tanh(gi[:, 2 * H:] + r * gh[:, 2 * H:])
        h = (1.0 - z) * n + z * h
        hiddens.append(h)
        pp = dot(jnp.maximum(dot(h, params["prior_w1"].T) + params["prior_b1"], 0.0),
                 params["prior_w2"].T) + params["prior_b2"]
        priors.append(pp[:, :L])
        qi = jnp.concatenate([h, next_latent[:, t]], axis=1)
        qq = dot(jnp.maximum(dot(qi, params["post_w1"].T) + params["post_b1"], 0.0),
                 params["post_w2"].T) + params["post_b2"]
        posts.append(qq[:, :L])
    return jnp.stack(priors, 1), jnp.stack(posts, 1), jnp.stack(hiddens, 1)


if __name__ == "__main__":
    batch, seq = 2, 8

    key = jax.random.PRNGKey(0)
    k_p, k_l, k_a, k_h, k_n = jax.random.split(key, 5)
    params = init_params(k_p)
    prev_latent = jax.random.normal(k_l, (batch, seq, LATENT_DIM), jnp.float32)
    action = jax.random.normal(k_a, (batch, seq, ACTION_DIM), jnp.float32)
    hidden_state = jax.random.normal(k_h, (batch, HIDDEN_DIM), jnp.float32)
    next_latent = jax.random.normal(k_n, (batch, seq, LATENT_DIM), jnp.float32)

    prior, post, hid = rssm_forward(params, prev_latent, action, hidden_state,
                                    next_latent)
    prior = jax.block_until_ready(prior)
    post = jax.block_until_ready(post)
    hid = jax.block_until_ready(hid)

    ref_prior, ref_post, ref_hid = rssm_reference(params, prev_latent, action,
                                                  hidden_state, next_latent)

    assert prior.shape == (batch, seq, LATENT_DIM)
    assert post.shape == (batch, seq, LATENT_DIM)
    assert hid.shape == (batch, seq, HIDDEN_DIM)
    # bf16 matmul operands (per perf review) vs Precision.HIGHEST f32 reference:
    # tolerance loosened accordingly.
    tol = dict(atol=2e-2, rtol=2e-2)
    assert jnp.allclose(hid, ref_hid, **tol)
    assert jnp.allclose(prior, ref_prior, **tol)
    assert jnp.allclose(post, ref_post, **tol)

    # prior-only path (next_latent=None): posterior work statically skipped.
    prior2, post2, hid2 = rssm_forward(params, prev_latent, action, hidden_state,
                                       None)
    prior2 = jax.block_until_ready(prior2)
    assert post2 is None
    assert prior2.shape == (batch, seq, LATENT_DIM)
    assert jnp.allclose(prior2, prior, atol=1e-5, rtol=1e-5)

    print("KERNEL_OK")
</pallas_src>

<mosaic_0001>
module attributes {stable_mosaic.version = 11 : i64} {
  func.func @kernel(%arg0: i32, %arg1: i32, %arg2: memref<8x256xf32, #tpu.memory_space<vmem>>, %arg3: memref<4x8x768xbf16, #tpu.memory_space<vmem>>, %arg4: memref<256x768xbf16, #tpu.memory_space<vmem>>, %arg5: memref<1x768xf32, #tpu.memory_space<vmem>>, %arg6: memref<4x8x256xbf16, #tpu.memory_space<vmem>>, %arg7: memref<8x256xf32, #tpu.memory_space<vmem>>) attributes {dimension_semantics = [#tpu.dimension_semantics<parallel>, #tpu.dimension_semantics<arbitrary>], iteration_bounds = array<i64: 1, 2>, scalar_prefetch = 0 : i64, scratch_operands = 1 : i64, tpu.core_type = #tpu.core_type<tc>, window_params = [{transform_indices = @transform_0, window_bounds = array<i64: 8, 256>}, {transform_indices = @transform_1, window_bounds = array<i64: 4, 8, 768>}, {pipeline_mode = #tpu.pipeline_mode<synchronous>, transform_indices = @transform_2, window_bounds = array<i64: 256, 768>}, {pipeline_mode = #tpu.pipeline_mode<synchronous>, transform_indices = @transform_3, window_bounds = array<i64: 1, 768>}, {transform_indices = @transform_4, window_bounds = array<i64: 4, 8, 256>}]} {
    %c0_i32 = arith.constant 0 : i32
    %0 = arith.cmpi eq, %arg1, %c0_i32 : i32
    %1 = arith.extui %0 : i1 to i32
    %c0_i32_0 = arith.constant 0 : i32
    %2 = arith.cmpi ne, %1, %c0_i32_0 : i32
    scf.if %2 {
      %c0_118 = arith.constant 0 : index
      %c0_119 = arith.constant 0 : index
      %201 = vector.load %arg2[%c0_118, %c0_119] : memref<8x256xf32, #tpu.memory_space<vmem>>, vector<8x256xf32>
      %c0_120 = arith.constant 0 : index
      %c0_121 = arith.constant 0 : index
      %202 = vector.load %arg7[%c0_120, %c0_121] : memref<8x256xf32, #tpu.memory_space<vmem>>, vector<8x256xf32>
      tpu.vector_store %arg7[%c0_120, %c0_121], %201 {strides = array<i32>} : memref<8x256xf32, #tpu.memory_space<vmem>>, vector<8x256xf32>,
    } else {
    }
    %c0 = arith.constant 0 : index
    %c0_1 = arith.constant 0 : index
    %3 = vector.load %arg7[%c0, %c0_1] : memref<8x256xf32, #tpu.memory_space<vmem>>, vector<8x256xf32>
    %4 = arith.truncf %3 : vector<8x256xf32> to vector<8x256xbf16>
    %c0_2 = arith.constant 0 : index
    %c0_3 = arith.constant 0 : index
    %5 = vector.load %arg4[%c0_2, %c0_3] : memref<256x768xbf16, #tpu.memory_space<vmem>>, vector<256x256xbf16>
    %cst = arith.constant dense<0.000000e+00> : vector<8x256xf32>
    %6 = tpu.matmul %4, %5, %cst {dimension_numbers = #tpu.dot_dimension_numbers<[1], [0], [0], [1], [0, 0, 1, 1], [], []>} : vector<8x256xbf16>, vector<256x256xbf16>, vector<8x256xf32> -> vector<8x256xf32>
    %c0_4 = arith.constant 0 : index
    %c0_5 = arith.constant 0 : index
    %7 = vector.load %arg5[%c0_4, %c0_5] : memref<1x768xf32, #tpu.memory_space<vmem>>, vector<1x256xf32>
    %8 = vector.broadcast %7 : vector<1x256xf32> to vector<8x256xf32>
    %9 = arith.addf %6, %8 : vector<8x256xf32>
    %c0_6 = arith.constant 0 : index
    %c256 = arith.constant 256 : index
    %10 = vector.load %arg4[%c0_6, %c256] : memref<256x768xbf16, #tpu.memory_space<vmem>>, vector<256x256xbf16>
    %cst_7 = arith.constant dense<0.000000e+00> : vector<8x256xf32>
    %11 = tpu.matmul %4, %10, %cst_7 {dimension_numbers = #tpu.dot_dimension_numbers<[1], [0], [0], [1], [0, 0, 1, 1], [], []>} : vector<8x256xbf16>, vector<256x256xbf16>, vector<8x256xf32> -> vector<8x256xf32>
    %c0_8 = arith.constant 0 : index
    %c256_9 = arith.constant 256 : index
    %12 = vector.load %arg5[%c0_8, %c256_9] : memref<1x768xf32, #tpu.memory_space<vmem>>, vector<1x256xf32>
    %13 = vector.broadcast %12 : vector<1x256xf32> to vector<8x256xf32>
    %14 = arith.addf %11, %13 : vector<8x256xf32>
    %c0_10 = arith.constant 0 : index
    %c512 = arith.constant 512 : index
    %15 = vector.load %arg4[%c0_10, %c512] : memref<256x768xbf16, #tpu.memory_space<vmem>>, vector<256x256xbf16>
    %cst_11 = arith.constant dense<0.000000e+00> : vector<8x256xf32>
    %16 = tpu.matmul %4, %15, %cst_11 {dimension_numbers = #tpu.dot_dimension_numbers<[1], [0], [0], [1], [0, 0, 1, 1], [], []>} : vector<8x256xbf16>, vector<256x256xbf16>, vector<8x256xf32> -> vector<8x256xf32>
    %c0_12 = arith.constant 0 : index
    %c512_13 = arith.constant 512 : index
    %17 = vector.load %arg5[%c0_12, %c512_13] : memref<1x768xf32, #tpu.memory_space<vmem>>, vector<1x256xf32>
    %18 = vector.broadcast %17 : vector<1x256xf32> to vector<8x256xf32>
    %19 = arith.addf %16, %18 : vector<8x256xf32>
    %c0_14 = arith.constant 0 : index
    %c0_15 = arith.constant 0 : index
    %c0_16 = arith.constant 0 : index
    %20 = vector.load %arg3[%c0_14, %c0_15, %c0_16] : memref<4x8x768xbf16, #tpu.memory_space<vmem>>, vector<1x8x256xbf16>
    %21 = vector.shape_cast %20 : vector<1x8x256xbf16> to vector<8x256xbf16>
    %22 = arith.extf %21 : vector<8x256xbf16> to vector<8x256xf32>
    %23 = arith.addf %22, %9 : vector<8x256xf32>
    %24 = arith.negf %23 : vector<8x256xf32>
    %25 = math.exp %24 : vector<8x256xf32>
    %cst_17 = arith.constant 1.000000e+00 : f32
    %26 = vector.broadcast %cst_17 : f32 to vector<8x256xf32>
    %27 = arith.addf %26, %25 : vector<8x256xf32>
    %28 = arith.divf %26, %27 : vector<8x256xf32>
    %c0_18 = arith.constant 0 : index
    %c0_19 = arith.constant 0 : index
    %c256_20 = arith.constant 256 : index
    %29 = vector.load %arg3[%c0_18, %c0_19, %c256_20] : memref<4x8x768xbf16, #tpu.memory_space<vmem>>, vector<1x8x256xbf16>
    %30 = vector.shape_cast %29 : vector<1x8x256xbf16> to vector<8x256xbf16>
    %31 = arith.extf %30 : vector<8x256xbf16> to vector<8x256xf32>
    %32 = arith.addf %31, %14 : vector<8x256xf32>
    %33 = arith.negf %32 : vector<8x256xf32>
    %34 = math.exp %33 : vector<8x256xf32>
    %cst_21 = arith.constant 1.000000e+00 : f32
    %35 = vector.broadcast %cst_21 : f32 to vector<8x256xf32>
    %36 = arith.addf %35, %34 : vector<8x256xf32>
    %37 = arith.divf %35, %36 : vector<8x256xf32>
    %c0_22 = arith.constant 0 : index
    %c0_23 = arith.constant 0 : index
    %c512_24 = arith.constant 512 : index
    %38 = vector.load %arg3[%c0_22, %c0_23, %c512_24] : memref<4x8x768xbf16, #tpu.memory_space<vmem>>, vector<1x8x256xbf16>
    %39 = vector.shape_cast %38 : vector<1x8x256xbf16> to vector<8x256xbf16>
    %40 = arith.mulf %28, %19 : vector<8x256xf32>
    %41 = arith.extf %39 : vector<8x256xbf16> to vector<8x256xf32>
    %42 = arith.addf %41, %40 : vector<8x256xf32>
    %43 = math.tanh %42 : vector<8x256xf32>
    %cst_25 = arith.constant 1.000000e+00 : f32
    %44 = vector.broadcast %cst_25 : f32 to vector<8x256xf32>
    %45 = arith.subf %44, %37 : vector<8x256xf32>
    %46 = arith.mulf %45, %43 : vector<8x256xf32>
    %47 = arith.mulf %37, %3 : vector<8x256xf32>
    %48 = arith.addf %46, %47 : vector<8x256xf32>
    %49 = arith.truncf %48 : vector<8x256xf32> to vector<8x256xbf16>
    %c0_26 = arith.constant 0 : index
    %c0_27 = arith.constant 0 : index
    %c0_28 = arith.constant 0 : index
    %50 = vector.load %arg6[%c0_26, %c0_27, %c0_28] : memref<4x8x256xbf16, #tpu.memory_space<vmem>>, vector<1x8x256xbf16>
    %51 = vector.shape_cast %50 : vector<1x8x256xbf16> to vector<8x256xbf16>
    %52 = vector.shape_cast %49 : vector<8x256xbf16> to vector<1x8x256xbf16>
    tpu.vector_store %arg6[%c0_26, %c0_27, %c0_28], %52 {strides = array<i32>} : memref<4x8x256xbf16, #tpu.memory_space<vmem>>, vector<1x8x256xbf16>,
    %53 = arith.truncf %48 : vector<8x256xf32> to vector<8x256xbf16>
    %c0_29 = arith.constant 0 : index
    %c0_30 = arith.constant 0 : index
    %54 = vector.load %arg4[%c0_29, %c0_30] : memref<256x768xbf16, #tpu.memory_space<vmem>>, vector<256x256xbf16>
    %cst_31 = arith.constant dense<0.000000e+00> : vector<8x256xf32>
    %55 = tpu.matmul %53, %54, %cst_31 {dimension_numbers = #tpu.dot_dimension_numbers<[1], [0], [0], [1], [0, 0, 1, 1], [], []>} : vector<8x256xbf16>, vector<256x256xbf16>, vector<8x256xf32> -> vector<8x256xf32>
    %c0_32 = arith.constant 0 : index
    %c0_33 = arith.constant 0 : index
    %56 = vector.load %arg5[%c0_32, %c0_33] : memref<1x768xf32, #tpu.memory_space<vmem>>, vector<1x256xf32>
    %57 = vector.broadcast %56 : vector<1x256xf32> to vector<8x256xf32>
    %58 = arith.addf %55, %57 : vector<8x256xf32>
    %c0_34 = arith.constant 0 : index
    %c256_35 = arith.constant 256 : index
    %59 = vector.load %arg4[%c0_34, %c256_35] : memref<256x768xbf16, #tpu.memory_space<vmem>>, vector<256x256xbf16>
    %cst_36 = arith.constant dense<0.000000e+00> : vector<8x256xf32>
    %60 = tpu.matmul %53, %59, %cst_36 {dimension_numbers = #tpu.dot_dimension_numbers<[1], [0], [0], [1], [0, 0, 1, 1], [], []>} : vector<8x256xbf16>, vector<256x256xbf16>, vector<8x256xf32> -> vector<8x256xf32>
    %c0_37 = arith.constant 0 : index
    %c256_38 = arith.constant 256 : index
    %61 = vector.load %arg5[%c0_37, %c256_38] : memref<1x768xf32, #tpu.memory_space<vmem>>, vector<1x256xf32>
    %62 = vector.broadcast %61 : vector<1x256xf32> to vector<8x256xf32>
    %63 = arith.addf %60, %62 : vector<8x256xf32>
    %c0_39 = arith.constant 0 : index
    %c512_40 = arith.constant 512 : index
    %64 = vector.load %arg4[%c0_39, %c512_40] : memref<256x768xbf16, #tpu.memory_space<vmem>>, vector<256x256xbf16>
    %cst_41 = arith.constant dense<0.000000e+00> : vector<8x256xf32>
    %65 = tpu.matmul %53, %64, %cst_41 {dimension_numbers = #tpu.dot_dimension_numbers<[1], [0], [0], [1], [0, 0, 1, 1], [], []>} : vector<8x256xbf16>, vector<256x256xbf16>, vector<8x256xf32> -> vector<8x256xf32>
    %c0_42 = arith.constant 0 : index
    %c512_43 = arith.constant 512 : index
    %66 = vector.load %arg5[%c0_42, %c512_43] : memref<1x768xf32, #tpu.memory_space<vmem>>, vector<1x256xf32>
    %67 = vector.broadcast %66 : vector<1x256xf32> to vector<8x256xf32>
    %68 = arith.addf %65, %67 : vector<8x256xf32>
    %c1 = arith.constant 1 : index
    %c0_44 = arith.constant 0 : index
    %c0_45 = arith.constant 0 : index
    %69 = vector.load %arg3[%c1, %c0_44, %c0_45] : memref<4x8x768xbf16, #tpu.memory_space<vmem>>, vector<1x8x256xbf16>
    %70 = vector.shape_cast %69 : vector<1x8x256xbf16> to vector<8x256xbf16>
    %71 = arith.extf %70 : vector<8x256xbf16> to vector<8x256xf32>
    %72 = arith.addf %71, %58 : vector<8x256xf32>
    %73 = arith.negf %72 : vector<8x256xf32>
    %74 = math.exp %73 : vector<8x256xf32>
    %cst_46 = arith.constant 1.000000e+00 : f32
    %75 = vector.broadcast %cst_46 : f32 to vector<8x256xf32>
    %76 = arith.addf %75, %74 : vector<8x256xf32>
    %77 = arith.divf %75, %76 : vector<8x256xf32>
    %c1_47 = arith.constant 1 : index
    %c0_48 = arith.constant 0 : index
    %c256_49 = arith.constant 256 : index
    %78 = vector.load %arg3[%c1_47, %c0_48, %c256_49] : memref<4x8x768xbf16, #tpu.memory_space<vmem>>, vector<1x8x256xbf16>
    %79 = vector.shape_cast %78 : vector<1x8x256xbf16> to vector<8x256xbf16>
    %80 = arith.extf %79 : vector<8x256xbf16> to vector<8x256xf32>
    %81 = arith.addf %80, %63 : vector<8x256xf32>
    %82 = arith.negf %81 : vector<8x256xf32>
    %83 = math.exp %82 : vector<8x256xf32>
    %cst_50 = arith.constant 1.000000e+00 : f32
    %84 = vector.broadcast %cst_50 : f32 to vector<8x256xf32>
    %85 = arith.addf %84, %83 : vector<8x256xf32>
    %86 = arith.divf %84, %85 : vector<8x256xf32>
    %c1_51 = arith.constant 1 : index
    %c0_52 = arith.constant 0 : index
    %c512_53 = arith.constant 512 : index
    %87 = vector.load %arg3[%c1_51, %c0_52, %c512_53] : memref<4x8x768xbf16, #tpu.memory_space<vmem>>, vector<1x8x256xbf16>
    %88 = vector.shape_cast %87 : vector<1x8x256xbf16> to vector<8x256xbf16>
    %89 = arith.mulf %77, %68 : vector<8x256xf32>
    %90 = arith.extf %88 : vector<8x256xbf16> to vector<8x256xf32>
    %91 = arith.addf %90, %89 : vector<8x256xf32>
    %92 = math.tanh %91 : vector<8x256xf32>
    %cst_54 = arith.constant 1.000000e+00 : f32
    %93 = vector.broadcast %cst_54 : f32 to vector<8x256xf32>
    %94 = arith.subf %93, %86 : vector<8x256xf32>
    %95 = arith.mulf %94, %92 : vector<8x256xf32>
    %96 = arith.mulf %86, %48 : vector<8x256xf32>
    %97 = arith.addf %95, %96 : vector<8x256xf32>
    %98 = arith.truncf %97 : vector<8x256xf32> to vector<8x256xbf16>
    %c1_55 = arith.constant 1 : index
    %c0_56 = arith.constant 0 : index
    %c0_57 = arith.constant 0 : index
    %99 = vector.load %arg6[%c1_55, %c0_56, %c0_57] : memref<4x8x256xbf16, #tpu.memory_space<vmem>>, vector<1x8x256xbf16>
    %100 = vector.shape_cast %99 : vector<1x8x256xbf16> to vector<8x256xbf16>
    %101 = vector.shape_cast %98 : vector<8x256xbf16> to vector<1x8x256xbf16>
    tpu.vector_store %arg6[%c1_55, %c0_56, %c0_57], %101 {strides = array<i32>} : memref<4x8x256xbf16, #tpu.memory_space<vmem>>, vector<1x8x256xbf16>,
    %102 = arith.truncf %97 : vector<8x256xf32> to vector<8x256xbf16>
    %c0_58 = arith.constant 0 : index
    %c0_59 = arith.constant 0 : index
    %103 = vector.load %arg4[%c0_58, %c0_59] : memref<256x768xbf16, #tpu.memory_space<vmem>>, vector<256x256xbf16>
    %cst_60 = arith.constant dense<0.000000e+00> : vector<8x256xf32>
    %104 = tpu.matmul %102, %103, %cst_60 {dimension_numbers = #tpu.dot_dimension_numbers<[1], [0], [0], [1], [0, 0, 1, 1], [], []>} : vector<8x256xbf16>, vector<256x256xbf16>, vector<8x256xf32> -> vector<8x256xf32>
    %c0_61 = arith.constant 0 : index
    %c0_62 = arith.constant 0 : index
    %105 = vector.load %arg5[%c0_61, %c0_62] : memref<1x768xf32, #tpu.memory_space<vmem>>, vector<1x256xf32>
    %106 = vector.broadcast %105 : vector<1x256xf32> to vector<8x256xf32>
    %107 = arith.addf %104, %106 : vector<8x256xf32>
    %c0_63 = arith.constant 0 : index
    %c256_64 = arith.constant 256 : index
    %108 = vector.load %arg4[%c0_63, %c256_64] : memref<256x768xbf16, #tpu.memory_space<vmem>>, vector<256x256xbf16>
    %cst_65 = arith.constant dense<0.000000e+00> : vector<8x256xf32>
    %109 = tpu.matmul %102, %108, %cst_65 {dimension_numbers = #tpu.dot_dimension_numbers<[1], [0], [0], [1], [0, 0, 1, 1], [], []>} : vector<8x256xbf16>, vector<256x256xbf16>, vector<8x256xf32> -> vector<8x256xf32>
    %c0_66 = arith.constant 0 : index
    %c256_67 = arith.constant 256 : index
    %110 = vector.load %arg5[%c0_66, %c256_67] : memref<1x768xf32, #tpu.memory_space<vmem>>, vector<1x256xf32>
    %111 = vector.broadcast %110 : vector<1x256xf32> to vector<8x256xf32>
    %112 = arith.addf %109, %111 : vector<8x256xf32>
    %c0_68 = arith.constant 0 : index
    %c512_69 = arith.constant 512 : index
    %113 = vector.load %arg4[%c0_68, %c512_69] : memref<256x768xbf16, #tpu.memory_space<vmem>>, vector<256x256xbf16>
    %cst_70 = arith.constant dense<0.000000e+00> : vector<8x256xf32>
    %114 = tpu.matmul %102, %113, %cst_70 {dimension_numbers = #tpu.dot_dimension_numbers<[1], [0], [0], [1], [0, 0, 1, 1], [], []>} : vector<8x256xbf16>, vector<256x256xbf16>, vector<8x256xf32> -> vector<8x256xf32>
    %c0_71 = arith.constant 0 : index
    %c512_72 = arith.constant 512 : index
    %115 = vector.load %arg5[%c0_71, %c512_72] : memref<1x768xf32, #tpu.memory_space<vmem>>, vector<1x256xf32>
    %116 = vector.broadcast %115 : vector<1x256xf32> to vector<8x256xf32>
    %117 = arith.addf %114, %116 : vector<8x256xf32>
    %c2 = arith.constant 2 : index
    %c0_73 = arith.constant 0 : index
    %c0_74 = arith.constant 0 : index
    %118 = vector.load %arg3[%c2, %c0_73, %c0_74] : memref<4x8x768xbf16, #tpu.memory_space<vmem>>, vector<1x8x256xbf16>
    %119 = vector.shape_cast %118 : vector<1x8x256xbf16> to vector<8x256xbf16>
    %120 = arith.extf %119 : vector<8x256xbf16> to vector<8x256xf32>
    %121 = arith.addf %120, %107 : vector<8x256xf32>
    %122 = arith.negf %121 : vector<8x256xf32>
    %123 = math.exp %122 : vector<8x256xf32>
    %cst_75 = arith.constant 1.000000e+00 : f32
    %124 = vector.broadcast %cst_75 : f32 to vector<8x256xf32>
    %125 = arith.addf %124, %123 : vector<8x256xf32>
    %126 = arith.divf %124, %125 : vector<8x256xf32>
    %c2_76 = arith.constant 2 : index
    %c0_77 = arith.constant 0 : index
    %c256_78 = arith.constant 256 : index
    %127 = vector.load %arg3[%c2_76, %c0_77, %c256_78] : memref<4x8x768xbf16, #tpu.memory_space<vmem>>, vector<1x8x256xbf16>
    %128 = vector.shape_cast %127 : vector<1x8x256xbf16> to vector<8x256xbf16>
    %129 = arith.extf %128 : vector<8x256xbf16> to vector<8x256xf32>
    %130 = arith.addf %129, %112 : vector<8x256xf32>
    %131 = arith.negf %130 : vector<8x256xf32>
    %132 = math.exp %131 : vector<8x256xf32>
    %cst_79 = arith.constant 1.000000e+00 : f32
    %133 = vector.broadcast %cst_79 : f32 to vector<8x256xf32>
    %134 = arith.addf %133, %132 : vector<8x256xf32>
    %135 = arith.divf %133, %134 : vector<8x256xf32>
    %c2_80 = arith.constant 2 : index
    %c0_81 = arith.constant 0 : index
    %c512_82 = arith.constant 512 : index
    %136 = vector.load %arg3[%c2_80, %c0_81, %c512_82] : memref<4x8x768xbf16, #tpu.memory_space<vmem>>, vector<1x8x256xbf16>
    %137 = vector.shape_cast %136 : vector<1x8x256xbf16> to vector<8x256xbf16>
    %138 = arith.mulf %126, %117 : vector<8x256xf32>
    %139 = arith.extf %137 : vector<8x256xbf16> to vector<8x256xf32>
    %140 = arith.addf %139, %138 : vector<8x256xf32>
    %141 = math.tanh %140 : vector<8x256xf32>
    %cst_83 = arith.constant 1.000000e+00 : f32
    %142 = vector.broadcast %cst_83 : f32 to vector<8x256xf32>
    %143 = arith.subf %142, %135 : vector<8x256xf32>
    %144 = arith.mulf %143, %141 : vector<8x256xf32>
    %145 = arith.mulf %135, %97 : vector<8x256xf32>
    %146 = arith.addf %144, %145 : vector<8x256xf32>
    %147 = arith.truncf %146 : vector<8x256xf32> to vector<8x256xbf16>
    %c2_84 = arith.constant 2 : index
    %c0_85 = arith.constant 0 : index
    %c0_86 = arith.constant 0 : index
    %148 = vector.load %arg6[%c2_84, %c0_85, %c0_86] : memref<4x8x256xbf16, #tpu.memory_space<vmem>>, vector<1x8x256xbf16>
    %149 = vector.shape_cast %148 : vector<1x8x256xbf16> to vector<8x256xbf16>
    %150 = vector.shape_cast %147 : vector<8x256xbf16> to vector<1x8x256xbf16>
    tpu.vector_store %arg6[%c2_84, %c0_85, %c0_86], %150 {strides = array<i32>} : memref<4x8x256xbf16, #tpu.memory_space<vmem>>, vector<1x8x256xbf16>,
    %151 = arith.truncf %146 : vector<8x256xf32> to vector<8x256xbf16>
    %c0_87 = arith.constant 0 : index
    %c0_88 = arith.constant 0 : index
    %152 = vector.load %arg4[%c0_87, %c0_88] : memref<256x768xbf16, #tpu.memory_space<vmem>>, vector<256x256xbf16>
    %cst_89 = arith.constant dense<0.000000e+00> : vector<8x256xf32>
    %153 = tpu.matmul %151, %152, %cst_89 {dimension_numbers = #tpu.dot_dimension_numbers<[1], [0], [0], [1], [0, 0, 1, 1], [], []>} : vector<8x256xbf16>, vector<256x256xbf16>, vector<8x256xf32> -> vector<8x256xf32>
    %c0_90 = arith.constant 0 : index
    %c0_91 = arith.constant 0 : index
    %154 = vector.load %arg5[%c0_90, %c0_91] : memref<1x768xf32, #tpu.memory_space<vmem>>, vector<1x256xf32>
    %155 = vector.broadcast %154 : vector<1x256xf32> to vector<8x256xf32>
    %156 = arith.addf %153, %155 : vector<8x256xf32>
    %c0_92 = arith.constant 0 : index
    %c256_93 = arith.constant 256 : index
    %157 = vector.load %arg4[%c0_92, %c256_93] : memref<256x768xbf16, #tpu.memory_space<vmem>>, vector<256x256xbf16>
    %cst_94 = arith.constant dense<0.000000e+00> : vector<8x256xf32>
    %158 = tpu.matmul %151, %157, %cst_94 {dimension_numbers = #tpu.dot_dimension_numbers<[1], [0], [0], [1], [0, 0, 1, 1], [], []>} : vector<8x256xbf16>, vector<256x256xbf16>, vector<8x256xf32> -> vector<8x256xf32>
    %c0_95 = arith.constant 0 : index
    %c256_96 = arith.constant 256 : index
    %159 = vector.load %arg5[%c0_95, %c256_96] : memref<1x768xf32, #tpu.memory_space<vmem>>, vector<1x256xf32>
    %160 = vector.broadcast %159 : vector<1x256xf32> to vector<8x256xf32>
    %161 = arith.addf %158, %160 : vector<8x256xf32>
    %c0_97 = arith.constant 0 : index
    %c512_98 = arith.constant 512 : index
    %162 = vector.load %arg4[%c0_97, %c512_98] : memref<256x768xbf16, #tpu.memory_space<vmem>>, vector<256x256xbf16>
    %cst_99 = arith.constant dense<0.000000e+00> : vector<8x256xf32>
    %163 = tpu.matmul %151, %162, %cst_99 {dimension_numbers = #tpu.dot_dimension_numbers<[1], [0], [0], [1], [0, 0, 1, 1], [], []>} : vector<8x256xbf16>, vector<256x256xbf16>, vector<8x256xf32> -> vector<8x256xf32>
    %c0_100 = arith.constant 0 : index
    %c512_101 = arith.constant 512 : index
    %164 = vector.load %arg5[%c0_100, %c512_101] : memref<1x768xf32, #tpu.memory_space<vmem>>, vector<1x256xf32>
    %165 = vector.broadcast %164 : vector<1x256xf32> to vector<8x256xf32>
    %166 = arith.addf %163, %165 : vector<8x256xf32>
    %c3 = arith.constant 3 : index
    %c0_102 = arith.constant 0 : index
    %c0_103 = arith.constant 0 : index
    %167 = vector.load %arg3[%c3, %c0_102, %c0_103] : memref<4x8x768xbf16, #tpu.memory_space<vmem>>, vector<1x8x256xbf16>
    %168 = vector.shape_cast %167 : vector<1x8x256xbf16> to vector<8x256xbf16>
    %169 = arith.extf %168 : vector<8x256xbf16> to vector<8x256xf32>
    %170 = arith.addf %169, %156 : vector<8x256xf32>
    %171 = arith.negf %170 : vector<8x256xf32>
    %172 = math.exp %171 : vector<8x256xf32>
    %cst_104 = arith.constant 1.000000e+00 : f32
    %173 = vector.broadcast %cst_104 : f32 to vector<8x256xf32>
    %174 = arith.addf %173, %172 : vector<8x256xf32>
    %175 = arith.divf %173, %174 : vector<8x256xf32>
    %c3_105 = arith.constant 3 : index
    %c0_106 = arith.constant 0 : index
    %c256_107 = arith.constant 256 : index
    %176 = vector.load %arg3[%c3_105, %c0_106, %c256_107] : memref<4x8x768xbf16, #tpu.memory_space<vmem>>, vector<1x8x256xbf16>
    %177 = vector.shape_cast %176 : vector<1x8x256xbf16> to vector<8x256xbf16>
    %178 = arith.extf %177 : vector<8x256xbf16> to vector<8x256xf32>
    %179 = arith.addf %178, %161 : vector<8x256xf32>
    %180 = arith.negf %179 : vector<8x256xf32>
    %181 = math.exp %180 : vector<8x256xf32>
    %cst_108 = arith.constant 1.000000e+00 : f32
    %182 = vector.broadcast %cst_108 : f32 to vector<8x256xf32>
    %183 = arith.addf %182, %181 : vector<8x256xf32>
    %184 = arith.divf %182, %183 : vector<8x256xf32>
    %c3_109 = arith.constant 3 : index
    %c0_110 = arith.constant 0 : index
    %c512_111 = arith.constant 512 : index
    %185 = vector.load %arg3[%c3_109, %c0_110, %c512_111] : memref<4x8x768xbf16, #tpu.memory_space<vmem>>, vector<1x8x256xbf16>
    %186 = vector.shape_cast %185 : vector<1x8x256xbf16> to vector<8x256xbf16>
    %187 = arith.mulf %175, %166 : vector<8x256xf32>
    %188 = arith.extf %186 : vector<8x256xbf16> to vector<8x256xf32>
    %189 = arith.addf %188, %187 : vector<8x256xf32>
    %190 = math.tanh %189 : vector<8x256xf32>
    %cst_112 = arith.constant 1.000000e+00 : f32
    %191 = vector.broadcast %cst_112 : f32 to vector<8x256xf32>
    %192 = arith.subf %191, %184 : vector<8x256xf32>
    %193 = arith.mulf %192, %190 : vector<8x256xf32>
    %194 = arith.mulf %184, %146 : vector<8x256xf32>
    %195 = arith.addf %193, %194 : vector<8x256xf32>
    %196 = arith.truncf %195 : vector<8x256xf32> to vector<8x256xbf16>
    %c3_113 = arith.constant 3 : index
    %c0_114 = arith.constant 0 : index
    %c0_115 = arith.constant 0 : index
    %197 = vector.load %arg6[%c3_113, %c0_114, %c0_115] : memref<4x8x256xbf16, #tpu.memory_space<vmem>>, vector<1x8x256xbf16>
    %198 = vector.shape_cast %197 : vector<1x8x256xbf16> to vector<8x256xbf16>
    %199 = vector.shape_cast %196 : vector<8x256xbf16> to vector<1x8x256xbf16>
    tpu.vector_store %arg6[%c3_113, %c0_114, %c0_115], %199 {strides = array<i32>} : memref<4x8x256xbf16, #tpu.memory_space<vmem>>, vector<1x8x256xbf16>,
    %c0_116 = arith.constant 0 : index
    %c0_117 = arith.constant 0 : index
    %200 = vector.load %arg7[%c0_116, %c0_117] : memref<8x256xf32, #tpu.memory_space<vmem>>, vector<8x256xf32>
    tpu.vector_store %arg7[%c0_116, %c0_117], %195 {strides = array<i32>} : memref<8x256xf32, #tpu.memory_space<vmem>>, vector<8x256xf32>,
    return
  }
  func.func @transform_0(%arg0: i32, %arg1: i32) -> (i32, i32) {
    %c0_i32 = arith.constant 0 : i32
    %c0_i32_0 = arith.constant 0 : i32
    return %arg0, %c0_i32 : i32, i32
  }
  func.func @transform_1(%arg0: i32, %arg1: i32) -> (i32, i32, i32) {
    %c0_i32 = arith.constant 0 : i32
    %c0_i32_0 = arith.constant 0 : i32
    return %arg1, %arg0, %c0_i32 : i32, i32, i32
  }
  func.func @transform_2(%arg0: i32, %arg1: i32) -> (i32, i32) {
    %c0_i32 = arith.constant 0 : i32
    %c0_i32_0 = arith.constant 0 : i32
    %c0_i32_1 = arith.constant 0 : i32
    return %c0_i32, %c0_i32_0 : i32, i32
  }
  func.func @transform_3(%arg0: i32, %arg1: i32) -> (i32, i32) {
    %c0_i32 = arith.constant 0 : i32
    %c0_i32_0 = arith.constant 0 : i32
    %c0_i32_1 = arith.constant 0 : i32
    return %c0_i32, %c0_i32_0 : i32, i32
  }
  func.func @transform_4(%arg0: i32, %arg1: i32) -> (i32, i32, i32) {
    %c0_i32 = arith.constant 0 : i32
    %c0_i32_0 = arith.constant 0 : i32
    return %arg1, %arg0, %c0_i32 : i32, i32, i32
  }
}

module attributes {stable_mosaic.version = 11 : i64} {
  func.func @kernel(%arg0: i32, %arg1: memref<64x256xbf16, #tpu.memory_space<vmem>>, %arg2: memref<64x256xbf16, #tpu.memory_space<vmem>>, %arg3: memref<256x256xbf16, #tpu.memory_space<vmem>>, %arg4: memref<1x256xf32, #tpu.memory_space<vmem>>, %arg5: memref<256x256xbf16, #tpu.memory_space<vmem>>, %arg6: memref<1x256xf32, #tpu.memory_space<vmem>>, %arg7: memref<256x256xbf16, #tpu.memory_space<vmem>>, %arg8: memref<256x256xbf16, #tpu.memory_space<vmem>>, %arg9: memref<1x256xf32, #tpu.memory_space<vmem>>, %arg10: memref<256x256xbf16, #tpu.memory_space<vmem>>, %arg11: memref<1x256xf32, #tpu.memory_space<vmem>>, %arg12: memref<64x256xf32, #tpu.memory_space<vmem>>, %arg13: memref<64x256xf32, #tpu.memory_space<vmem>>) attributes {dimension_semantics = [#tpu.dimension_semantics<parallel>], iteration_bounds = array<i64: 1>, scalar_prefetch = 0 : i64, scratch_operands = 0 : i64, tpu.core_type = #tpu.core_type<tc>, window_params = [{transform_indices = @transform_0, window_bounds = array<i64: 64, 256>}, {transform_indices = @transform_1, window_bounds = array<i64: 64, 256>}, {pipeline_mode = #tpu.pipeline_mode<synchronous>, transform_indices = @transform_2, window_bounds = array<i64: 256, 256>}, {pipeline_mode = #tpu.pipeline_mode<synchronous>, transform_indices = @transform_3, window_bounds = array<i64: 1, 256>}, {pipeline_mode = #tpu.pipeline_mode<synchronous>, transform_indices = @transform_4, window_bounds = array<i64: 256, 256>}, {pipeline_mode = #tpu.pipeline_mode<synchronous>, transform_indices = @transform_5, window_bounds = array<i64: 1, 256>}, {pipeline_mode = #tpu.pipeline_mode<synchronous>, transform_indices = @transform_6, window_bounds = array<i64: 256, 256>}, {pipeline_mode = #tpu.pipeline_mode<synchronous>, transform_indices = @transform_7, window_bounds = array<i64: 256, 256>}, {pipeline_mode = #tpu.pipeline_mode<synchronous>, transform_indices = @transform_8, window_bounds = array<i64: 1, 256>}, {pipeline_mode = #tpu.pipeline_mode<synchronous>, transform_indices = @transform_9, window_bounds = array<i64: 256, 256>}, {pipeline_mode = #tpu.pipeline_mode<synchronous>, transform_indices = @transform_10, window_bounds = array<i64: 1, 256>}, {transform_indices = @transform_11, window_bounds = array<i64: 64, 256>}, {transform_indices = @transform_12, window_bounds = array<i64: 64, 256>}]} {
    %c0 = arith.constant 0 : index
    %c0_0 = arith.constant 0 : index
    %0 = vector.load %arg1[%c0, %c0_0] : memref<64x256xbf16, #tpu.memory_space<vmem>>, vector<64x256xbf16>
    %c0_1 = arith.constant 0 : index
    %c0_2 = arith.constant 0 : index
    %1 = vector.load %arg3[%c0_1, %c0_2] : memref<256x256xbf16, #tpu.memory_space<vmem>>, vector<256x256xbf16>
    %cst = arith.constant dense<0.000000e+00> : vector<64x256xf32>
    %2 = tpu.matmul %0, %1, %cst {dimension_numbers = #tpu.dot_dimension_numbers<[1], [0], [0], [1], [0, 0, 1, 1], [], []>} : vector<64x256xbf16>, vector<256x256xbf16>, vector<64x256xf32> -> vector<64x256xf32>
    %c0_3 = arith.constant 0 : index
    %c0_4 = arith.constant 0 : index
    %3 = vector.load %arg4[%c0_3, %c0_4] : memref<1x256xf32, #tpu.memory_space<vmem>>, vector<1x256xf32>
    %4 = vector.broadcast %3 : vector<1x256xf32> to vector<64x256xf32>
    %5 = arith.addf %2, %4 : vector<64x256xf32>
    %cst_5 = arith.constant 0.000000e+00 : f32
    %6 = vector.broadcast %cst_5 : f32 to vector<64x256xf32>
    %7 = arith.maximumf %5, %6 : vector<64x256xf32>
    %8 = arith.truncf %7 : vector<64x256xf32> to vector<64x256xbf16>
    %c0_6 = arith.constant 0 : index
    %c0_7 = arith.constant 0 : index
    %9 = vector.load %arg5[%c0_6, %c0_7] : memref<256x256xbf16, #tpu.memory_space<vmem>>, vector<256x256xbf16>
    %cst_8 = arith.constant dense<0.000000e+00> : vector<64x256xf32>
    %10 = tpu.matmul %8, %9, %cst_8 {dimension_numbers = #tpu.dot_dimension_numbers<[1], [0], [0], [1], [0, 0, 1, 1], [], []>} : vector<64x256xbf16>, vector<256x256xbf16>, vector<64x256xf32> -> vector<64x256xf32>
    %c0_9 = arith.constant 0 : index
    %c0_10 = arith.constant 0 : index
    %11 = vector.load %arg6[%c0_9, %c0_10] : memref<1x256xf32, #tpu.memory_space<vmem>>, vector<1x256xf32>
    %12 = vector.broadcast %11 : vector<1x256xf32> to vector<64x256xf32>
    %13 = arith.addf %10, %12 : vector<64x256xf32>
    %c0_11 = arith.constant 0 : index
    %c0_12 = arith.constant 0 : index
    %14 = vector.load %arg12[%c0_11, %c0_12] : memref<64x256xf32, #tpu.memory_space<vmem>>, vector<64x256xf32>
    tpu.vector_store %arg12[%c0_11, %c0_12], %13 {strides = array<i32>} : memref<64x256xf32, #tpu.memory_space<vmem>>, vector<64x256xf32>,
    %c0_13 = arith.constant 0 : index
    %c0_14 = arith.constant 0 : index
    %15 = vector.load %arg2[%c0_13, %c0_14] : memref<64x256xbf16, #tpu.memory_space<vmem>>, vector<64x256xbf16>
    %c0_15 = arith.constant 0 : index
    %c0_16 = arith.constant 0 : index
    %16 = vector.load %arg7[%c0_15, %c0_16] : memref<256x256xbf16, #tpu.memory_space<vmem>>, vector<256x256xbf16>
    %cst_17 = arith.constant dense<0.000000e+00> : vector<64x256xf32>
    %17 = tpu.matmul %0, %16, %cst_17 {dimension_numbers = #tpu.dot_dimension_numbers<[1], [0], [0], [1], [0, 0, 1, 1], [], []>} : vector<64x256xbf16>, vector<256x256xbf16>, vector<64x256xf32> -> vector<64x256xf32>
    %c0_18 = arith.constant 0 : index
    %c0_19 = arith.constant 0 : index
    %18 = vector.load %arg8[%c0_18, %c0_19] : memref<256x256xbf16, #tpu.memory_space<vmem>>, vector<256x256xbf16>
    %cst_20 = arith.constant dense<0.000000e+00> : vector<64x256xf32>
    %19 = tpu.matmul %15, %18, %cst_20 {dimension_numbers = #tpu.dot_dimension_numbers<[1], [0], [0], [1], [0, 0, 1, 1], [], []>} : vector<64x256xbf16>, vector<256x256xbf16>, vector<64x256xf32> -> vector<64x256xf32>
    %20 = arith.addf %17, %19 : vector<64x256xf32>
    %c0_21 = arith.constant 0 : index
    %c0_22 = arith.constant 0 : index
    %21 = vector.load %arg9[%c0_21, %c0_22] : memref<1x256xf32, #tpu.memory_space<vmem>>, vector<1x256xf32>
    %22 = vector.broadcast %21 : vector<1x256xf32> to vector<64x256xf32>
    %23 = arith.addf %20, %22 : vector<64x256xf32>
    %cst_23 = arith.constant 0.000000e+00 : f32
    %24 = vector.broadcast %cst_23 : f32 to vector<64x256xf32>
    %25 = arith.maximumf %23, %24 : vector<64x256xf32>
    %26 = arith.truncf %25 : vector<64x256xf32> to vector<64x256xbf16>
    %c0_24 = arith.constant 0 : index
    %c0_25 = arith.constant 0 : index
    %27 = vector.load %arg10[%c0_24, %c0_25] : memref<256x256xbf16, #tpu.memory_space<vmem>>, vector<256x256xbf16>
    %cst_26 = arith.constant dense<0.000000e+00> : vector<64x256xf32>
    %28 = tpu.matmul %26, %27, %cst_26 {dimension_numbers = #tpu.dot_dimension_numbers<[1], [0], [0], [1], [0, 0, 1, 1], [], []>} : vector<64x256xbf16>, vector<256x256xbf16>, vector<64x256xf32> -> vector<64x256xf32>
    %c0_27 = arith.constant 0 : index
    %c0_28 = arith.constant 0 : index
    %29 = vector.load %arg11[%c0_27, %c0_28] : memref<1x256xf32, #tpu.memory_space<vmem>>, vector<1x256xf32>
    %30 = vector.broadcast %29 : vector<1x256xf32> to vector<64x256xf32>
    %31 = arith.addf %28, %30 : vector<64x256xf32>
    %c0_29 = arith.constant 0 : index
    %c0_30 = arith.constant 0 : index
    %32 = vector.load %arg13[%c0_29, %c0_30] : memref<64x256xf32, #tpu.memory_space<vmem>>, vector<64x256xf32>
    tpu.vector_store %arg13[%c0_29, %c0_30], %31 {strides = array<i32>} : memref<64x256xf32, #tpu.memory_space<vmem>>, vector<64x256xf32>,
    return
  }
  func.func @transform_0(%arg0: i32) -> (i32, i32) {
    %c0_i32 = arith.constant 0 : i32
    %c0_i32_0 = arith.constant 0 : i32
    return %arg0, %c0_i32 : i32, i32
  }
  func.func @transform_1(%arg0: i32) -> (i32, i32) {
    %c0_i32 = arith.constant 0 : i32
    %c0_i32_0 = arith.constant 0 : i32
    return %arg0, %c0_i32 : i32, i32
  }
  func.func @transform_2(%arg0: i32) -> (i32, i32) {
    %c0_i32 = arith.constant 0 : i32
    %c0_i32_0 = arith.constant 0 : i32
    %c0_i32_1 = arith.constant 0 : i32
    return %c0_i32, %c0_i32_0 : i32, i32
  }
  func.func @transform_3(%arg0: i32) -> (i32, i32) {
    %c0_i32 = arith.constant 0 : i32
    %c0_i32_0 = arith.constant 0 : i32
    %c0_i32_1 = arith.constant 0 : i32
    return %c0_i32, %c0_i32_0 : i32, i32
  }
  func.func @transform_4(%arg0: i32) -> (i32, i32) {
    %c0_i32 = arith.constant 0 : i32
    %c0_i32_0 = arith.constant 0 : i32
    %c0_i32_1 = arith.constant 0 : i32
    return %c0_i32, %c0_i32_0 : i32, i32
  }
  func.func @transform_5(%arg0: i32) -> (i32, i32) {
    %c0_i32 = arith.constant 0 : i32
    %c0_i32_0 = arith.constant 0 : i32
    %c0_i32_1 = arith.constant 0 : i32
    return %c0_i32, %c0_i32_0 : i32, i32
  }
  func.func @transform_6(%arg0: i32) -> (i32, i32) {
    %c0_i32 = arith.constant 0 : i32
    %c0_i32_0 = arith.constant 0 : i32
    %c0_i32_1 = arith.constant 0 : i32
    return %c0_i32, %c0_i32_0 : i32, i32
  }
  func.func @transform_7(%arg0: i32) -> (i32, i32) {
    %c0_i32 = arith.constant 0 : i32
    %c0_i32_0 = arith.constant 0 : i32
    %c0_i32_1 = arith.constant 0 : i32
    return %c0_i32, %c0_i32_0 : i32, i32
  }
  func.func @transform_8(%arg0: i32) -> (i32, i32) {
    %c0_i32 = arith.constant 0 : i32
    %c0_i32_0 = arith.constant 0 : i32
    %c0_i32_1 = arith.constant 0 : i32
    return %c0_i32, %c0_i32_0 : i32, i32
  }
  func.func @transform_9(%arg0: i32) -> (i32, i32) {
    %c0_i32 = arith.constant 0 : i32
    %c0_i32_0 = arith.constant 0 : i32
    %c0_i32_1 = arith.constant 0 : i32
    return %c0_i32, %c0_i32_0 : i32, i32
  }
  func.func @transform_10(%arg0: i32) -> (i32, i32) {
    %c0_i32 = arith.constant 0 : i32
    %c0_i32_0 = arith.constant 0 : i32
    %c0_i32_1 = arith.constant 0 : i32
    return %c0_i32, %c0_i32_0 : i32, i32
  }
  func.func @transform_11(%arg0: i32) -> (i32, i32) {
    %c0_i32 = arith.constant 0 : i32
    %c0_i32_0 = arith.constant 0 : i32
    return %arg0, %c0_i32 : i32, i32
  }
  func.func @transform_12(%arg0: i32) -> (i32, i32) {
    %c0_i32 = arith.constant 0 : i32
    %c0_i32_0 = arith.constant 0 : i32
    return %arg0, %c0_i32 : i32, i32
  }
}

</mosaic_0001>

<bundles_post_ra>
// kernel: rssm_forward.2
= control target key start
LH: loop header
LB: loop body
LE: loop exit
PB: predicated region body
PF: predicated region fallthrough
CT: control target
= control target key end

     0   :  { %s4450_s15 = smov 0   ;;  %s4452_s16 = smov 0   ;;  %s5978_s0 = inlined_call_operand.vmem [shape: f32[8,256], index: 0, kind: input, shape index: {}]   ;;  %s5979_s1 = inlined_call_operand.vmem [shape: bf16[8,8,768], index: 1, kind: input, shape index: {}]   ;;  %s5980_s2 = inlined_call_operand.vmem [shape: bf16[256,768], index: 2, kind: input, shape index: {}]   ;;  %s5981_s3 = inlined_call_operand.vmem [shape: f32[1,768], index: 3, kind: input, shape index: {}]   ;;  %s5982_s4 = inlined_call_operand.vmem [shape: bf16[8,8,256], index: 4, kind: output, shape index: {}]  }
   0x1   :  { %s4454_s17 = smov 0  }
   0x2 LB: > { %s23_s18 = sadd.s32 1, %s4419_s16  ;;  %p3578_p0 = scmp.ge.s32.totalorder %s4423_s17, 1  ;;  %s4423_s17 = sphi %s4454_s17, %s14_s17   ;;  %s4419_s16 = sphi %s4452_s16, %s6118_s16   ;;  %s4415_s15 = sphi %s4450_s15, %s6117_s15  }
   0x3   : > { %p24_p1 = scmp.ge.s32.totalorder %s23_s18, 2  ;;  %p194_p2 = scmp.lt.s32.totalorder %s4423_s17, 3 }
   0x5   : > { %s6120_s18 = smov (%p24_p1, %s23_s18), 0  ;;  %p195_p3 = pnand %p3578_p0, %p194_p2 }
   0x7   : > { %198 = sbr.rel (%p195_p3) target bundleno = 1230 (0x4ce), region = 36 }
   0xc   : > { %s3579_s19 = sshll.u32 %s4415_s15, 2  ;;  %p3584_p5 = scmp.ne.s32.totalorder %s4415_s15, 0 }
   0xd   : > { %p241_p4 = scmp.lt.s32.totalorder %s3579_s19, 7 }
   0xe   : > { %265 = sbr.rel (%p3584_p5) target bundleno = 21 (0x15), region = 40 }
   0xf   : > { %s6122_s19 = smov (!%p241_p4, %s3579_s19), 7 }
  0x10   : > { %s4008_s20 = smul.u32 24, %s6122_s19  ;;  %s4003_s21 = sshll.u32 %s6122_s19, 3 }
  0x11   : > { %s4471_s24 = scalar_lea.vmem %s5982_s4, %s4003_s21 }
  0x12   : > { %s4476_s27 = scalar_lea.vmem %s5979_s1, %s4008_s20 }
  0x13   : > { %v266_v0 = vld [vmem:[%s5978_s0] sm:$0xff]  ;;  %v267_v1 = vld [vmem:[%s5978_s0 + $0x8] sm:$0xff] }
  0x14   : > { %268 = vst [vmem:[#allocation2] sm:$0xff] %v266_v0  ;;  %269 = vst [vmem:[#allocation2 + $0x8] sm:$0xff] %v267_v1 }
  0x15 PF: > { %v4487_v2 = vld [vmem:[%s5980_s2 + $0x154] ss:$24 sps:$4 sm:$0xff]   ;;  %v4492_v3 = vld [vmem:[%s5980_s2 + $0x150] ss:$24 sps:$4 sm:$0xff]   ;;  %v4498_v4 = vld [vmem:[%s5980_s2 + $0x124] ss:$24 sps:$4 sm:$0xff]  }
  0x16   : > { %478 = vmatprep.subr.bf16.mxu0 %v4487_v2  ;;  %v4504_v5 = vld [vmem:[%s5980_s2 + $0x120] ss:$24 sps:$4 sm:$0xff]   ;;  %v4510_v6 = vld [vmem:[%s5980_s2 + $0xf4] ss:$24 sps:$4 sm:$0xff]   ;;  %v4516_v7 = vld [vmem:[%s5980_s2 + $0xf0] ss:$24 sps:$4 sm:$0xff]  }
  0x17   : > { %479 = vmatpush1.bf16.msra.mxu0 %v4492_v3  ;;  %v4522_v8 = vld [vmem:[%s5980_s2 + $0xc4] ss:$24 sps:$4 sm:$0xff]   ;;  %v4528_v9 = vld [vmem:[%s5980_s2 + $0xc0] ss:$24 sps:$4 sm:$0xff]   ;;  %v4534_v10 = vld [vmem:[%s5980_s2 + $0x94] ss:$24 sps:$4 sm:$0xff]  }
  0x18   : > { %480 = vmatprep.subr.bf16.mxu0 %v4498_v4  ;;  %v4540_v11 = vld [vmem:[%s5980_s2 + $0x90] ss:$24 sps:$4 sm:$0xff]   ;;  %v4545_v12 = vld [vmem:[%s5980_s2 + $0x15c] ss:$24 sps:$4 sm:$0xff]   ;;  %v4562_v15 = vld [vmem:[%s5980_s2 + $0x12c] ss:$24 sps:$4 sm:$0xff]  }
  0x19   : > { %v4550_v13 = vld [vmem:[%s5980_s2 + $0x158] ss:$24 sps:$4 sm:$0xff]   ;;  %v4556_v14 = vld [vmem:[%s5980_s2 + $0x64] ss:$24 sps:$4 sm:$0xff]   ;;  %723 = vmatprep.subr.bf16.mxu1 %v4545_v12  ;;  %v4568_v16 = vld [vmem:[%s5980_s2 + $0x128] ss:$24 sps:$4 sm:$0xff]  }
  0x1a   : > { %724 = vmatpush1.bf16.msra.mxu1 %v4550_v13  ;;  %v4574_v17 = vld [vmem:[%s5980_s2 + $0x60] ss:$24 sps:$4 sm:$0xff]   ;;  %v4581_v18 = vld [vmem:[%s5980_s2 + $0x34] ss:$24 sps:$4 sm:$0xff]   ;;  %v4598_v21 = vld [vmem:[%s5980_s2 + $0x30] ss:$24 sps:$4 sm:$0xff]  }
  0x1b   : > { %481 = vmatpush1.bf16.msra.mxu0 %v4504_v5  ;;  %725 = vmatprep.subr.bf16.mxu1 %v4562_v15  ;;  %v4586_v19 = vld [vmem:[%s5980_s2 + $0xfc] ss:$24 sps:$4 sm:$0xff]   ;;  %v4592_v20 = vld [vmem:[%s5980_s2 + $0xf8] ss:$24 sps:$4 sm:$0xff]   ;;  %v4604_v22 = vld [vmem:[%s5980_s2 + $0xcc] ss:$24 sps:$4 sm:$0xff]  }
  0x1c   : > { %482 = vmatprep.subr.bf16.mxu0 %v4510_v6  ;;  %v4610_v23 = vld [vmem:[%s5980_s2 + $0x4] ss:$24 sps:$4 sm:$0xff]   ;;  %v4615_v24 = vld [vmem:[%s5980_s2] ss:$24 sps:$4 sm:$0xff]   ;;  %v4634_v27 = vld [vmem:[%s5980_s2 + $0x2d4] ss:$24 sps:$4 sm:$0xff]  }
  0x1d   : > { %v4621_v25 = vld [vmem:[%s5980_s2 + $0xc8] ss:$24 sps:$4 sm:$0xff]   ;;  %v4628_v26 = vld [vmem:[%s5980_s2 + $0x9c] ss:$24 sps:$4 sm:$0xff]   ;;  %v4647_v30 = vld [vmem:[%s5980_s2 + $0x98] ss:$24 sps:$4 sm:$0xff]  }
  0x1e   : > { %726 = vmatpush1.bf16.msra.mxu1 %v4568_v16  ;;  %v4639_v28 = vld [vmem:[%s5980_s2 + $0x2d0] ss:$24 sps:$4 sm:$0xff]   ;;  %v4658_v32 = vld [vmem:[%s5980_s2 + $0x6c] ss:$24 sps:$4 sm:$0xff]   ;;  %v4671_v34 = vld [vmem:[%s5980_s2 + $0x2a0] ss:$24 sps:$4 sm:$0xff]  }
  0x1f   : > { %483 = vmatpush1.bf16.msra.mxu0 %v4516_v7  ;;  %727 = vmatprep.subr.bf16.mxu1 %v4586_v19  ;;  %v4641_v29 = vld [vmem:[#allocation2 + $0x8] sm:$0xff]  ;;  %v4664_v33 = vld [vmem:[%s5980_s2 + $0x2a4] ss:$24 sps:$4 sm:$0xff]   ;;  %v4701_v39 = vld [vmem:[%s5980_s2 + $0x38] ss:$24 sps:$4 sm:$0xff]  }
  0x20   : > { %484 = vmatprep.subr.bf16.mxu0 %v4522_v8  ;;  %6029 = vst [vmem:[#allocation3_spill] sm:$0xff] %v4641_v29  ;;  %v4651_v31 = vpack.c.bf16 %v4641_v29, %v4641_v29  ;;  %v4677_v35 = vld [vmem:[%s5980_s2 + $0x68] ss:$24 sps:$4 sm:$0xff]   ;;  %v4684_v36 = vld [vmem:[%s5980_s2 + $0x3c] ss:$24 sps:$4 sm:$0xff]  }
  0x21   : > { %v4690_v37 = vld [vmem:[%s5980_s2 + $0x274] ss:$24 sps:$4 sm:$0xff]   ;;  %v4695_v38 = vld [vmem:[%s5980_s2 + $0x270] ss:$24 sps:$4 sm:$0xff]   ;;  %v4714_v41 = vld [vmem:[%s5980_s2 + $0x244] ss:$24 sps:$4 sm:$0xff]  }
  0x22   : > { %728 = vmatpush1.bf16.msra.mxu1 %v4592_v20  ;;  %510 = vmatprep.mubr.bf16.mxu0 %v4651_v31  ;;  %v4708_v40 = vld [vmem:[%s5980_s2 + $0xc] ss:$24 sps:$4 sm:$0xff]   ;;  %v4719_v42 = vld [vmem:[%s5980_s2 + $0x240] ss:$24 sps:$4 sm:$0xff]   ;;  %v4732_v44 = vld [vmem:[%s5980_s2 + $0x2dc] ss:$24 sps:$4 sm:$0xff]  }
  0x23   : > { %485 = vmatpush1.bf16.msra.mxu0 %v4528_v9  ;;  %729 = vmatprep.subr.bf16.mxu1 %v4604_v22  ;;  %v4725_v43 = vld [vmem:[%s5980_s2 + $0x8] ss:$24 sps:$4 sm:$0xff]   ;;  %v4738_v45 = vld [vmem:[%s5980_s2 + $0x214] ss:$24 sps:$4 sm:$0xff]   ;;  %v4749_v47 = vld [vmem:[%s5980_s2 + $0x2d8] ss:$24 sps:$4 sm:$0xff]  }
  0x24   : > { %486 = vmatprep.subr.bf16.mxu0 %v4534_v10  ;;  %755 = vmatprep.mubr.bf16.mxu1 %v4651_v31  ;;  %v4743_v46 = vld [vmem:[%s5980_s2 + $0x210] ss:$24 sps:$4 sm:$0xff]   ;;  %v4756_v48 = vld [vmem:[%s5980_s2 + $0x2ac] ss:$24 sps:$4 sm:$0xff]   ;;  %v4767_v50 = vld [vmem:[%s5980_s2 + $0x1e0] ss:$24 sps:$4 sm:$0xff]  }
  0x25   : > { %v4762_v49 = vld [vmem:[%s5980_s2 + $0x1e4] ss:$24 sps:$4 sm:$0xff]   ;;  %v4773_v51 = vld [vmem:[%s5980_s2 + $0x2a8] ss:$24 sps:$4 sm:$0xff]   ;;  %v4786_v53 = vld [vmem:[%s5980_s2 + $0x1b4] ss:$24 sps:$4 sm:$0xff]  }
  0x26   : > { %730 = vmatpush1.bf16.msra.mxu1 %v4621_v25  ;;  %6030 = vst [vmem:[#allocation4_spill] sm:$0xff] %v4773_v51  ;;  %v4780_v52 = vld [vmem:[%s5980_s2 + $0x27c] ss:$24 sps:$4 sm:$0xff]   ;;  %v4791_v54 = vld [vmem:[%s5980_s2 + $0x1b0] ss:$24 sps:$4 sm:$0xff]   ;;  %v4817_v59 = vld [vmem:[#allocation2] sm:$0xff] }
  0x27   : > { %487 = vmatpush1.bf16.msra.mxu0 %v4540_v11  ;;  %731 = vmatprep.subr.bf16.mxu1 %v4628_v26  ;;  %6031 = vst [vmem:[#allocation5_spill] sm:$0xff] %v4780_v52  ;;  %v4797_v55 = vld [vmem:[%s5980_s2 + $0x278] ss:$24 sps:$4 sm:$0xff]   ;;  %v4804_v56 = vld [vmem:[%s5980_s2 + $0x24c] ss:$24 sps:$4 sm:$0xff]   ;;  %6034 = vst [vmem:[#allocation8_spill] sm:$0xff] %v4817_v59  ;;  %v4845_v0 = vpack.c.bf16 %v4817_v59, %v4817_v59 }
  0x28   : > { %488 = vmatprep.subr.bf16.mxu0 %v4556_v14  ;;  %6032 = vst [vmem:[#allocation6_spill] sm:$0xff] %v4797_v55  ;;  %6033 = vst [vmem:[#allocation7_spill] sm:$0xff] %v4804_v56  ;;  %v4810_v57 = vld [vmem:[%s5980_s2 + $0x184] ss:$24 sps:$4 sm:$0xff]   ;;  %v4815_v58 = vld [vmem:[%s5980_s2 + $0x180] ss:$24 sps:$4 sm:$0xff]  }
  0x29   : > { %v4823_v60 = vld [vmem:[%s5980_s2 + $0x248] ss:$24 sps:$4 sm:$0xff]   ;;  %v4830_v61 = vld [vmem:[%s5980_s2 + $0x21c] ss:$24 sps:$4 sm:$0xff]   ;;  %v4851_v1 = vld [vmem:[%s5980_s2 + $0x218] ss:$24 sps:$4 sm:$0xff]  }
  0x2a   : > { %732 = vmatpush1.bf16.msra.mxu1 %v4647_v30  ;;  %6035 = vst [vmem:[#allocation9_spill] sm:$0xff] %v4823_v60  ;;  %6036 = vst [vmem:[#allocation10_spill] sm:$0xff] %v4830_v61  ;;  %v4836_v62 = vld [vmem:[%s5980_s2 + $0x164] ss:$24 sps:$4 sm:$0xff]   ;;  %v4841_v63 = vld [vmem:[%s5980_s2 + $0x160] ss:$24 sps:$4 sm:$0xff]  }
  0x2b   : > { %489 = vmatpush1.bf16.msra.mxu0 %v4574_v17  ;;  %733 = vmatprep.subr.bf16.mxu1 %v4658_v32  ;;  %6037 = vst [vmem:[#allocation11_spill] sm:$0xff] %v4841_v63  ;;  %v4858_v29 = vld [vmem:[%s5980_s2 + $0x1ec] ss:$24 sps:$4 sm:$0xff]  }
  0x2c   : > { %490 = vmatprep.subr.bf16.mxu0 %v4581_v18  ;;  %6038 = vst [vmem:[#allocation12_spill] sm:$0xff] %v4858_v29  ;;  %v4864_v59 = vld [vmem:[%s5980_s2 + $0x134] ss:$24 sps:$4 sm:$0xff]  }
  0x2d   : > { %6039 = vst [vmem:[#allocation13_spill] sm:$0xff] %v4864_v59 }
  0x2e   : > { %734 = vmatpush1.bf16.msra.mxu1 %v4677_v35 }
  0x2f   : > { %491 = vmatpush1.bf16.msra.mxu0 %v4598_v21  ;;  %735 = vmatprep.subr.bf16.mxu1 %v4684_v36 }
  0x30   : > { %492 = vmatprep.subr.bf16.mxu0 %v4610_v23 }
  0x32   : > { %736 = vmatpush1.bf16.msra.mxu1 %v4701_v39 }
  0x33   : > { %493 = vmatpush1.bf16.msra.mxu0 %v4615_v24  ;;  %737 = vmatprep.subr.bf16.mxu1 %v4708_v40 }
  0x34   : > { %494 = vmatprep.subr.bf16.mxu0 %v4634_v27 }
  0x36   : > { %738 = vmatpush1.bf16.msra.mxu1 %v4725_v43 }
  0x37   : > { %495 = vmatpush2.bf16.msra.mxu0 %v4639_v28  ;;  %739 = vmatprep.subr.bf16.mxu1 %v4732_v44 }
  0x38   : > { %496 = vmatprep.subr.bf16.mxu0 %v4664_v33 }
  0x3a   : > { %740 = vmatpush2.bf16.msra.mxu1 %v4749_v47 }
  0x3b   : > { %497 = vmatpush2.bf16.msra.mxu0 %v4671_v34  ;;  %741 = vmatprep.subr.bf16.mxu1 %v4756_v48 }
  0x3c   : > { %498 = vmatprep.subr.bf16.mxu0 %v4690_v37 }
  0x3e   : > { %742 = vmatpush2.bf16.msra.mxu1 %v4773_v51  ;;  %v4900_v51 = vld [vmem:[%s5980_s2 + $0x100] ss:$24 sps:$4 sm:$0xff]  }
  0x3f   : > { %499 = vmatpush2.bf16.msra.mxu0 %v4695_v38  ;;  %743 = vmatprep.subr.bf16.mxu1 %v4780_v52  ;;  %v4894_v52 = vld [vmem:[%s5980_s2 + $0x1b8] ss:$24 sps:$4 sm:$0xff]   ;;  %6043 = vst [vmem:[#allocation17_spill] sm:$0xff] %v4900_v51 }
  0x40   : > { %500 = vmatprep.subr.bf16.mxu0 %v4714_v41 }
  0x42   : > { %744 = vmatpush2.bf16.msra.mxu1 %v4797_v55  ;;  %v4885_v55 = vld [vmem:[%s5980_s2 + $0x104] ss:$24 sps:$4 sm:$0xff]  }
  0x43   : > { %501 = vmatpush2.bf16.msra.mxu0 %v4719_v42  ;;  %745 = vmatprep.subr.bf16.mxu1 %v4804_v56  ;;  %v4879_v56 = vld [vmem:[%s5980_s2 + $0x1bc] ss:$24 sps:$4 sm:$0xff]   ;;  %6042 = vst [vmem:[#allocation16_spill] sm:$0xff] %v4885_v55 }
  0x44   : > { %502 = vmatprep.subr.bf16.mxu0 %v4738_v45 }
  0x46   : > { %746 = vmatpush2.bf16.msra.mxu1 %v4823_v60  ;;  %v4869_v60 = vld [vmem:[%s5980_s2 + $0x1e8] ss:$24 sps:$4 sm:$0xff]  }
  0x47   : > { %503 = vmatpush2.bf16.msra.mxu0 %v4743_v46  ;;  %747 = vmatprep.subr.bf16.mxu1 %v4830_v61  ;;  %6040 = vst [vmem:[#allocation14_spill] sm:$0xff] %v4869_v60  ;;  %v4874_v61 = vld [vmem:[%s5980_s2 + $0x130] ss:$24 sps:$4 sm:$0xff]  }
  0x48   : > { %504 = vmatprep.subr.bf16.mxu0 %v4762_v49  ;;  %6041 = vst [vmem:[#allocation15_spill] sm:$0xff] %v4874_v61 }
  0x4a   : > { %748 = vmatpush2.bf16.msra.mxu1 %v4851_v1 }
  0x4b   : > { %505 = vmatpush2.bf16.msra.mxu0 %v4767_v50  ;;  %749 = vmatprep.subr.bf16.mxu1 %v4858_v29  ;;  %v4924_v29 = vld [vmem:[%s5980_s2 + $0xd0] ss:$24 sps:$4 sm:$0xff]  }
  0x4c   : > { %506 = vmatprep.subr.bf16.mxu0 %v4786_v53 }
  0x4e   : > { %750 = vmatpush2.bf16.msra.mxu1 %v4869_v60  ;;  %v4929_v60 = vld [vmem:[%s5980_s2 + $0xa4] ss:$24 sps:$4 sm:$0xff]  }
  0x4f   : > { %507 = vmatpush2.bf16.msra.mxu0 %v4791_v54  ;;  %751 = vmatprep.subr.bf16.mxu1 %v4879_v56  ;;  %6045 = vst [vmem:[#allocation19_spill] sm:$0xff] %v4929_v60 }
  0x50   : > { %508 = vmatprep.subr.bf16.mxu0 %v4810_v57 }
  0x52   : > { %752 = vmatpush2.bf16.msra.mxu1 %v4894_v52 }
  0x53   : > { %509 = vmatpush2.bf16.msra.mxu0 %v4815_v58 }
  0x54   : > { %968 = vmatprep.subr.bf16.mxu0 %v4836_v62 }
  0x56   : > { %511 = vmatmul.mubr.bf16.vlgmr.msra.gmra.mxu0 %v4845_v0 }
  0x57   : > { %969 = vmatpush1.bf16.msra.mxu0 %v4841_v63  ;;  %1000 = vmatprep.mubr.bf16.mxu0 %v4651_v31  ;;  %v4905_v63 = vld [vmem:[%s5980_s2 + $0x18c] ss:$24 sps:$4 sm:$0xff]   ;;  %v4919_v31 = vld [vmem:[%s5980_s2 + $0x188] ss:$24 sps:$4 sm:$0xff]  }
  0x58   : > { %970 = vmatprep.subr.bf16.mxu0 %v4864_v59  ;;  %v4910_v59 = vld [vmem:[%s5980_s2 + $0xd4] ss:$24 sps:$4 sm:$0xff]   ;;  %753 = vmatprep.subr.bf16.mxu1 %v4905_v63 }
  0x59   : > { %6044 = vst [vmem:[#allocation18_spill] sm:$0xff] %v4910_v59  ;;  %754 = vmatpush2.bf16.msra.mxu1 %v4919_v31 }
  0x5a   : > { %1273 = vmatprep.subr.bf16.mxu1 %v4487_v2  ;;  %v4967_v2 = vld [vmem:[%s5980_s2 + $0x40] ss:$24 sps:$4 sm:$0xff]  }
  0x5b   : > { %971 = vmatpush1.bf16.msra.mxu0 %v4874_v61  ;;  %v4943_v61 = vld [vmem:[%s5980_s2 + $0x74] ss:$24 sps:$4 sm:$0xff]  }
  0x5c   : > { %972 = vmatprep.subr.bf16.mxu0 %v4885_v55  ;;  %v4938_v55 = vld [vmem:[%s5980_s2 + $0xa0] ss:$24 sps:$4 sm:$0xff]   ;;  %756 = vmatmul.mubr.bf16.vlgmr.msra.gmra.mxu1 %v4845_v0 }
  0x5d   : > { %1274 = vmatpush1.bf16.msra.mxu1 %v4492_v3  ;;  %v4981_v3 = vld [vmem:[%s5980_s2 + $0x10] ss:$24 sps:$4 sm:$0xff]  }
  0x5e   : > { %1275 = vmatprep.subr.bf16.mxu1 %v4498_v4  ;;  %v4986_v4 = vld [vmem:[%s5980_s2 + $0x2e4] ss:$24 sps:$4 sm:$0xff]  }
  0x5f   : > { %973 = vmatpush1.bf16.msra.mxu0 %v4900_v51  ;;  %v4958_v51 = vld [vmem:[%s5980_s2 + $0x44] ss:$24 sps:$4 sm:$0xff]  }
  0x60   : > { %974 = vmatprep.subr.bf16.mxu0 %v4910_v59  ;;  %v4952_v59 = vld [vmem:[%s5980_s2 + $0x70] ss:$24 sps:$4 sm:$0xff]  }
  0x61   : > { %1276 = vmatpush1.bf16.msra.mxu1 %v4504_v5  ;;  %v4995_v5 = vld [vmem:[%s5980_s2 + $0x2e0] ss:$24 sps:$4 sm:$0xff]  }
  0x62   : > { %1277 = vmatprep.subr.bf16.mxu1 %v4510_v6  ;;  %v5000_v6 = vld [vmem:[%s5980_s2 + $0x2b4] ss:$24 sps:$4 sm:$0xff]  }
  0x63   : > { %975 = vmatpush1.bf16.msra.mxu0 %v4924_v29 }
  0x64   : > { %976 = vmatprep.subr.bf16.mxu0 %v4929_v60  ;;  %v4972_v60 = vld [vmem:[%s5980_s2 + $0x14] ss:$24 sps:$4 sm:$0xff]  }
  0x65   : > { %1278 = vmatpush1.bf16.msra.mxu1 %v4516_v7  ;;  %v5011_v7 = vld [vmem:[%s5980_s2 + $0x2b0] ss:$24 sps:$4 sm:$0xff]  }
  0x66   : > { %1279 = vmatprep.subr.bf16.mxu1 %v4522_v8  ;;  %v5018_v8 = vld [vmem:[%s5980_s2 + $0x284] ss:$24 sps:$4 sm:$0xff]  }
  0x67   : > { %977 = vmatpush1.bf16.msra.mxu0 %v4938_v55 }
  0x68   : > { %978 = vmatprep.subr.bf16.mxu0 %v4943_v61 }
  0x69   : > { %1280 = vmatpush1.bf16.msra.mxu1 %v4528_v9  ;;  %v5025_v9 = vld [vmem:[%s5980_s2 + $0x280] ss:$24 sps:$4 sm:$0xff]  }
  0x6a   : > { %1281 = vmatprep.subr.bf16.mxu1 %v4534_v10  ;;  %v5032_v10 = vld [vmem:[%s5980_s2 + $0x254] ss:$24 sps:$4 sm:$0xff]  }
  0x6b   : > { %979 = vmatpush1.bf16.msra.mxu0 %v4952_v59 }
  0x6c   : > { %980 = vmatprep.subr.bf16.mxu0 %v4958_v51 }
  0x6d   : > { %1282 = vmatpush1.bf16.msra.mxu1 %v4540_v11  ;;  %v5039_v11 = vld [vmem:[%s5980_s2 + $0x250] ss:$24 sps:$4 sm:$0xff]  }
  0x6e   : > { %1283 = vmatprep.subr.bf16.mxu1 %v4556_v14  ;;  %v5046_v14 = vld [vmem:[%s5980_s2 + $0x224] ss:$24 sps:$4 sm:$0xff]  }
  0x6f   : > { %981 = vmatpush1.bf16.msra.mxu0 %v4967_v2 }
  0x70   : > { %982 = vmatprep.subr.bf16.mxu0 %v4972_v60 }
  0x71   : > { %1284 = vmatpush1.bf16.msra.mxu1 %v4574_v17  ;;  %v5053_v17 = vld [vmem:[%s5980_s2 + $0x220] ss:$24 sps:$4 sm:$0xff]  }
  0x72   : > { %1285 = vmatprep.subr.bf16.mxu1 %v4581_v18  ;;  %v5060_v18 = vld [vmem:[%s5980_s2 + $0x1f4] ss:$24 sps:$4 sm:$0xff]  }
  0x73   : > { %983 = vmatpush1.bf16.msra.mxu0 %v4981_v3 }
  0x74   : > { %984 = vmatprep.subr.bf16.mxu0 %v4986_v4 }
  0x75   : > { %1286 = vmatpush1.bf16.msra.mxu1 %v4598_v21  ;;  %v5067_v21 = vld [vmem:[%s5980_s2 + $0x1f0] ss:$24 sps:$4 sm:$0xff]  }
  0x76   : > { %1287 = vmatprep.subr.bf16.mxu1 %v4610_v23  ;;  %v5074_v23 = vld [vmem:[%s5980_s2 + $0x1c4] ss:$24 sps:$4 sm:$0xff]  }
  0x77   : > { %985 = vmatpush2.bf16.msra.mxu0 %v4995_v5 }
  0x78   : > { %986 = vmatprep.subr.bf16.mxu0 %v5000_v6 }
  0x79   : > { %1288 = vmatpush1.bf16.msra.mxu1 %v4615_v24  ;;  %v5081_v24 = vld [vmem:[%s5980_s2 + $0x1c0] ss:$24 sps:$4 sm:$0xff]  }
  0x7a   : > { %1289 = vmatprep.subr.bf16.mxu1 %v4634_v27  ;;  %v5088_v27 = vld [vmem:[%s5980_s2 + $0x194] ss:$24 sps:$4 sm:$0xff]  }
  0x7b   : > { %987 = vmatpush2.bf16.msra.mxu0 %v5011_v7 }
  0x7c   : > { %988 = vmatprep.subr.bf16.mxu0 %v5018_v8 }
  0x7d   : > { %1290 = vmatpush2.bf16.msra.mxu1 %v4639_v28  ;;  %v5095_v28 = vld [vmem:[%s5980_s2 + $0x190] ss:$24 sps:$4 sm:$0xff]  }
  0x7e   : > { %1291 = vmatprep.subr.bf16.mxu1 %v4664_v33  ;;  %v308_v33 = vlaneseq }
  0x7f   : > { %989 = vmatpush2.bf16.msra.mxu0 %v5025_v9 }
  0x80   : > { %990 = vmatprep.subr.bf16.mxu0 %v5032_v10 }
  0x81   : > { %1292 = vmatpush2.bf16.msra.mxu1 %v4671_v34 }
  0x82   : > { %1293 = vmatprep.subr.bf16.mxu1 %v4690_v37  ;;  %v306_v37 = vld [vmem:[%s5981_s3] sm:$0x3] }
  0x83   : > { %991 = vmatpush2.bf16.msra.mxu0 %v5039_v11 }
  0x84   : > { %992 = vmatprep.subr.bf16.mxu0 %v5046_v14 }
  0x85   : > { %1294 = vmatpush2.bf16.msra.mxu1 %v4695_v38 }
  0x86   : > { %1295 = vmatprep.subr.bf16.mxu1 %v4714_v41 }
  0x87   : > { %993 = vmatpush2.bf16.msra.mxu0 %v5053_v17 }
  0x88   : > { %994 = vmatprep.subr.bf16.mxu0 %v5060_v18 }
  0x89   : > { %1296 = vmatpush2.bf16.msra.mxu1 %v4719_v42  ;;  %v1009_v42 = vld [vmem:[%s4476_s27] sm:$0xff] }
  0x8a   : > { %1297 = vmatprep.subr.bf16.mxu1 %v4738_v45 }
  0x8b   : > { %995 = vmatpush2.bf16.msra.mxu0 %v5067_v21 }
  0x8c   : > { %996 = vmatprep.subr.bf16.mxu0 %v5074_v23 }
  0x8d   : > { %1298 = vmatpush2.bf16.msra.mxu1 %v4743_v46  ;;  %v1010_v46 = vunpack.c.l.bf16 %v1009_v42 }
  0x8e   : > { %1299 = vmatprep.subr.bf16.mxu1 %v4762_v49  ;;  %v1011_v49 = vunpack.c.h.bf16 %v1009_v42 }
  0x8f   : > { %997 = vmatpush2.bf16.msra.mxu0 %v5081_v24 }
  0x90   : > { %998 = vmatprep.subr.bf16.mxu0 %v5088_v27 }
  0x91   : > { %1300 = vmatpush2.bf16.msra.mxu1 %v4767_v50 }
  0x92   : > { %1301 = vmatprep.subr.bf16.mxu1 %v4786_v53 }
  0x93   : > { %999 = vmatpush2.bf16.msra.mxu0 %v5095_v28 }
  0x94   : > { %1518 = vmatprep.subr.bf16.mxu0 %v4545_v12  ;;  %v6046_v12 = vld [vmem:[#allocation4_spill] sm:$0xff] }
  0x95   : > { %1302 = vmatpush2.bf16.msra.mxu1 %v4791_v54 }
  0x96   : > { %1001 = vmatmul.mubr.bf16.vlgmr.msra.gmra.mxu0 %v4845_v0  ;;  %1303 = vmatprep.subr.bf16.mxu1 %v4810_v57  ;;  %v1026_v57 = vld [vmem:[%s4476_s27 + $0x8] sm:$0xff] }
  0x97   : > { %1519 = vmatpush1.bf16.msra.mxu0 %v4550_v13  ;;  %v6047_v13 = vld [vmem:[#allocation5_spill] sm:$0xff] }
  0x98   : > { %1520 = vmatprep.subr.bf16.mxu0 %v4562_v15  ;;  %v6048_v15 = vld [vmem:[#allocation6_spill] sm:$0xff] }
  0x99   : > { %1304 = vmatpush2.bf16.msra.mxu1 %v4815_v58 }
  0x9a   : > { %1763 = vmatprep.subr.bf16.mxu1 %v4836_v62 }
  0x9b   : > { %1521 = vmatpush1.bf16.msra.mxu0 %v4568_v16  ;;  %v6049_v16 = vld [vmem:[#allocation7_spill] sm:$0xff] }
  0x9c   : > { %1522 = vmatprep.subr.bf16.mxu0 %v4586_v19  ;;  %v6050_v19 = vld [vmem:[#allocation9_spill] sm:$0xff] }
  0x9f   : > { %1523 = vmatpush1.bf16.msra.mxu0 %v4592_v20  ;;  %v6051_v20 = vld [vmem:[#allocation10_spill] sm:$0xff] }
  0xa0   : > { %1524 = vmatprep.subr.bf16.mxu0 %v4604_v22  ;;  %v6052_v22 = vld [vmem:[#allocation12_spill] sm:$0xff] }
  0xa3   : > { %1525 = vmatpush1.bf16.msra.mxu0 %v4621_v25  ;;  %v6053_v25 = vld [vmem:[#allocation14_spill] sm:$0xff] }
  0xa4   : > { %1526 = vmatprep.subr.bf16.mxu0 %v4628_v26 }
  0xa7   : > { %1527 = vmatpush1.bf16.msra.mxu0 %v4647_v30 }
  0xa8   : > { %1528 = vmatprep.subr.bf16.mxu0 %v4658_v32 }
  0xab   : > { %1529 = vmatpush1.bf16.msra.mxu0 %v4677_v35  ;;  %v309_v35 = vshrl.u32 %v308_v33, 7 }
  0xac   : > { %1530 = vmatprep.subr.bf16.mxu0 %v4684_v36 }
  0xad   : > { %v5143_v36 = vsub.s32 0, %v309_v35  ;;  %v5148_v38 = vsub.s32 1, %v309_v35  ;;  %v1043_v35 = vld [vmem:[%s4476_s27 + $0x10] sm:$0xff] }
  0xae   : > { %v1046_v42 = vunpack.c.l.bf16 %v1043_v35 }
  0xaf   : > { %1531 = vmatpush1.bf16.msra.mxu0 %v4701_v39  ;;  %6054 = vst [vmem:[#allocation4_spill] sm:$0xff] %v5143_v36  ;;  %6055 = vst [vmem:[#allocation5_spill] sm:$0xff] %v5148_v38 }
  0xb0   : > { %1532 = vmatprep.subr.bf16.mxu0 %v4708_v40  ;;  %v311_v40 = vrot.slane %v306_v37, %v5143_v36 }
  0xb3   : > { %1533 = vmatpush1.bf16.msra.mxu0 %v4725_v43  ;;  %v315_v43 = vrot.slane %v306_v37, %v5148_v38 }
  0xb4   : > { %1534 = vmatprep.subr.bf16.mxu0 %v4732_v44 }
  0xb7   : > { %1535 = vmatpush2.bf16.msra.mxu0 %v4749_v47 }
  0xb8   : > { %1536 = vmatprep.subr.bf16.mxu0 %v4756_v48 }
  0xbb   : > { %1537 = vmatpush2.bf16.msra.mxu0 %v6046_v12  ;;  %v1028_v12 = vunpack.c.h.bf16 %v1026_v57 }
  0xbc   : > { %1538 = vmatprep.subr.bf16.mxu0 %v6047_v13 }
  0xbf   : > { %1539 = vmatpush2.bf16.msra.mxu0 %v6048_v15 }
  0xc0   : > { %1540 = vmatprep.subr.bf16.mxu0 %v6049_v16 }
  0xc3   : > { %1541 = vmatpush2.bf16.msra.mxu0 %v6050_v19 }
  0xc4   : > { %1542 = vmatprep.subr.bf16.mxu0 %v6051_v20 }
  0xc7   : > { %1543 = vmatpush2.bf16.msra.mxu0 %v4851_v1 }
  0xc8   : > { %1544 = vmatprep.subr.bf16.mxu0 %v6052_v22 }
  0xcb   : > { %1545 = vmatpush2.bf16.msra.mxu0 %v6053_v25 }
  0xcc   : > { %1546 = vmatprep.subr.bf16.mxu0 %v4879_v56 }
  0xcf   : > { %1547 = vmatpush2.bf16.msra.mxu0 %v4894_v52  ;;  %v551_v52 = vld [vmem:[%s5981_s3 + $0x2] sm:$0x3] }
  0xd0   : > { %1548 = vmatprep.subr.bf16.mxu0 %v4905_v63  ;;  %v556_v56 = vrot.slane %v551_v52, %v5143_v36  ;;  %v1027_v63 = vunpack.c.l.bf16 %v1026_v57  ;;  %v560_v0 = vrot.slane %v551_v52, %v5148_v38 }
  0xd3   : > { %1549 = vmatpush2.bf16.msra.mxu0 %v4919_v31 }
 0x116   : > { %v512_v26 = vpop.f32.mrf.mxu0 }
 0x117   : > { %v513_v45 = vadd.f32 %v512_v26, %v311_v40 }
 0x118   : > { %v514_v30 = vpop.f32.mrf.mxu0 }
 0x119   : > { %v515_v48 = vadd.f32 %v514_v30, %v315_v43  ;;  %v1012_v50 = vadd.f32 %v1010_v46, %v513_v45  ;;  %v796_v30 = vld [vmem:[%s5981_s3 + $0x4] sm:$0x3] }
 0x11a   : > { %v516_v32 = vpop.f32.mrf.mxu0  ;;  %v801_v33 = vrot.slane %v796_v30, %v5143_v36  ;;  %v805_v37 = vrot.slane %v796_v30, %v5148_v38  ;;  %v6058_v30 = vld [vmem:[#allocation11_spill] sm:$0xff] }
 0x11b   : > { %v1013_v53 = vadd.f32 %v1011_v49, %v515_v48  ;;  %v3681_v54 = vmul.f32 -1.442695, %v1012_v50 }
 0x11c   : > { %v517_v34 = vpop.f32.mrf.mxu0  ;;  %v757_v39 = vpop.f32.mrf.mxu1 }
 0x11d   : > { %v3682_v58 = vmul.f32 -1.442695, %v1013_v53  ;;  %4321 = vpow2.f32 %v3681_v54  ;;  %v758_v62 = vadd.f32 %v757_v39, %v556_v56 }
 0x11e   : > { %v759_v41 = vpop.f32.mrf.mxu1 }
 0x11f   : > { %4323 = vpow2.f32 %v3682_v58  ;;  %v1029_v1 = vadd.f32 %v1027_v63, %v758_v62  ;;  %v760_v31 = vadd.f32 %v759_v41, %v560_v0 }
 0x120   : > { %v761_v44 = vpop.f32.mrf.mxu1 }
 0x121   : > { %v3683_v13 = vmul.f32 -1.442695, %v1029_v1  ;;  %v1030_v15 = vadd.f32 %v1028_v12, %v760_v31  ;;  %v6056_v31 = vld [vmem:[#allocation8_spill] sm:$0xff] }
 0x122   : > { %v762_v47 = vpop.f32.mrf.mxu1 }
 0x123   : > { %4325 = vpow2.f32 %v3683_v13  ;;  %v3684_v16 = vmul.f32 -1.442695, %v1030_v15  ;;  %v1047_v47 = vunpack.c.h.bf16 %v1043_v35  ;;  %v6057_v15 = vld [vmem:[#allocation3_spill] sm:$0xff]  ;;  %v6062_v35 = vld [vmem:[#allocation17_spill] sm:$0xff] }
 0x125   : > { %4327 = vpow2.f32 %v3684_v16 }
 0x12a   : > { %v4322_v19 = vpop.eup %4321 }
 0x12b   : > { %v1020_v22 = vadd.f32 1.0, %v4322_v19 }
 0x12c   : > { %v4324_v20 = vpop.eup %4323 }
 0x12d   : > { %v1021_v25 = vadd.f32 1.0, %v4324_v20  ;;  %4329 = vrcp.f32 %v1020_v22 }
 0x12f   : > { %4331 = vrcp.f32 %v1021_v25 }
 0x130   : > { %v4326_v26 = vpop.eup %4325 }
 0x131   : > { %v1037_v32 = vadd.f32 1.0, %v4326_v26 }
 0x132   : > { %v4328_v34 = vpop.eup %4327 }
 0x133   : > { %4333 = vrcp.f32 %v1037_v32  ;;  %v1038_v40 = vadd.f32 1.0, %v4328_v34  ;;  %v6059_v32 = vld [vmem:[#allocation13_spill] sm:$0xff]  ;;  %v6061_v34 = vld [vmem:[#allocation16_spill] sm:$0xff] }
 0x135   : > { %4335 = vrcp.f32 %v1038_v40  ;;  %v5353_v40 = vld [vmem:[%s5980_s2 + $0x34] ss:$24 sps:$4 sm:$0xff]  }
 0x13a   : > { %v4330_v43 = vpop.eup %4329 }
 0x13c   : > { %v4332_v48 = vpop.eup %4331 }
 0x140   : > { %v4334_v56 = vpop.eup %4333 }
 0x141   : > { %v1052_v57 = vsub.f32 1.0, %v4334_v56  ;;  %v1056_v12 = vmul.f32 %v4334_v56, %v6056_v31  ;;  %v5438_v56 = vld [vmem:[%s5980_s2 + $0x2ac] ss:$24 sps:$4 sm:$0xff]   ;;  %v5481_v31 = vld [vmem:[%s5980_s2 + $0x240] ss:$24 sps:$4 sm:$0xff]  }
 0x142   : > { %v4336_v58 = vpop.eup %4335  ;;  %6076 = vst [vmem:[#allocation16_spill] sm:$0xff] %v5438_v56 }
 0x143   : > { %v1053_v63 = vsub.f32 1.0, %v4336_v58  ;;  %v1057_v16 = vmul.f32 %v4336_v58, %v6057_v15  ;;  %v5452_v58 = vld [vmem:[%s5980_s2 + $0x274] ss:$24 sps:$4 sm:$0xff]  }
 0x144   : > { %v5497_v15 = vld [vmem:[%s5980_s2 + $0x214] ss:$24 sps:$4 sm:$0xff]  }
 0x156   : > { %v1002_v39 = vpop.f32.mrf.mxu0 }
 0x157   : > { %v1003_v41 = vadd.f32 %v1002_v39, %v801_v33  ;;  %v6060_v33 = vld [vmem:[#allocation15_spill] sm:$0xff] }
 0x158   : > { %v1004_v44 = vpop.f32.mrf.mxu0  ;;  %v6064_v39 = vld [vmem:[#allocation19_spill] sm:$0xff] }
 0x159   : > { %v1044_v45 = vmul.f32 %v4330_v43, %v1003_v41  ;;  %v1005_v46 = vadd.f32 %v1004_v44, %v805_v37  ;;  %v6063_v37 = vld [vmem:[#allocation18_spill] sm:$0xff]  ;;  %v5359_v41 = vld [vmem:[%s5980_s2 + $0x3c] ss:$24 sps:$4 sm:$0xff]   ;;  %v5372_v43 = vld [vmem:[%s5980_s2 + $0x38] ss:$24 sps:$4 sm:$0xff]  }
 0x15a   : > { %v1006_v49 = vpop.f32.mrf.mxu0  ;;  %6070 = vst [vmem:[#allocation14_spill] sm:$0xff] %v5359_v41  ;;  %6071 = vst [vmem:[#allocation8_spill] sm:$0xff] %v5372_v43  ;;  %v5377_v44 = vld [vmem:[%s5980_s2 + $0x4] ss:$24 sps:$4 sm:$0xff]  }
 0x15b   : > { %v1048_v50 = vadd.f32 %v1046_v42, %v1044_v45  ;;  %v1045_v52 = vmul.f32 %v4332_v48, %v1005_v46  ;;  %v5365_v42 = vld [vmem:[%s5980_s2 + $0x30] ss:$24 sps:$4 sm:$0xff]   ;;  %v5383_v45 = vld [vmem:[%s5980_s2 + $0xc] ss:$24 sps:$4 sm:$0xff]   ;;  %v5389_v46 = vld [vmem:[%s5980_s2] ss:$24 sps:$4 sm:$0xff]  }
 0x15c   : > { %v1007_v53 = vpop.f32.mrf.mxu0  ;;  %6072 = vst [vmem:[#allocation3_spill] sm:$0xff] %v5383_v45  ;;  %v5401_v48 = vld [vmem:[%s5980_s2 + $0x2d4] ss:$24 sps:$4 sm:$0xff]  }
 0x15d   : > { %4337 = vtanh.f32 %v1048_v50  ;;  %v1049_v54 = vadd.f32 %v1047_v47, %v1045_v52  ;;  %v5396_v47 = vld [vmem:[%s5980_s2 + $0x8] ss:$24 sps:$4 sm:$0xff]   ;;  %v5407_v49 = vld [vmem:[%s5980_s2 + $0x2dc] ss:$24 sps:$4 sm:$0xff]   ;;  %v5420_v52 = vld [vmem:[%s5980_s2 + $0x2d8] ss:$24 sps:$4 sm:$0xff]  }
 0x15e   : > { %6073 = vst [vmem:[#allocation11_spill] sm:$0xff] %v5396_v47  ;;  %6074 = vst [vmem:[#allocation13_spill] sm:$0xff] %v5407_v49  ;;  %v5413_v50 = vld [vmem:[%s5980_s2 + $0x2d0] ss:$24 sps:$4 sm:$0xff]   ;;  %v5428_v53 = vld [vmem:[%s5980_s2 + $0x2a4] ss:$24 sps:$4 sm:$0xff]  }
 0x15f   : > { %4339 = vtanh.f32 %v1049_v54  ;;  %6075 = vst [vmem:[#allocation15_spill] sm:$0xff] %v5420_v52  ;;  %v5433_v54 = vld [vmem:[%s5980_s2 + $0x2a0] ss:$24 sps:$4 sm:$0xff]  }
 0x16a   : > { %v4338_v62 = vpop.eup %4337 }
 0x16b   : > { %v1054_v0 = vmul.f32 %v4338_v62, %v1052_v57  ;;  %v5444_v57 = vld [vmem:[%s5980_s2 + $0x2a8] ss:$24 sps:$4 sm:$0xff]  }
 0x16c   : > { %v4340_v1 = vpop.eup %4339  ;;  %6077 = vst [vmem:[#allocation17_spill] sm:$0xff] %v5444_v57  ;;  %v5457_v62 = vld [vmem:[%s5980_s2 + $0x270] ss:$24 sps:$4 sm:$0xff]  }
 0x16d   : > { %v1055_v13 = vmul.f32 %v4340_v1, %v1053_v63  ;;  %v5167_v19 = vadd.f32 %v1056_v12, %v1054_v0  ;;  %v5462_v63 = vld [vmem:[%s5980_s2 + $0x27c] ss:$24 sps:$4 sm:$0xff]   ;;  %v5468_v0 = vld [vmem:[%s5980_s2 + $0x278] ss:$24 sps:$4 sm:$0xff]   ;;  %v5486_v12 = vld [vmem:[%s5980_s2 + $0x24c] ss:$24 sps:$4 sm:$0xff]  }
 0x16e   : > { %6078 = vst [vmem:[#allocation18_spill] sm:$0xff] %v5462_v63  ;;  %6079 = vst [vmem:[#allocation19_spill] sm:$0xff] %v5468_v0  ;;  %v5476_v1 = vld [vmem:[%s5980_s2 + $0x244] ss:$24 sps:$4 sm:$0xff]  }
 0x16f   : > { %v5169_v20 = vadd.f32 %v1057_v16, %v1055_v13  ;;  %v1060_v26 = vpack.c.bf16 %v5167_v19, %v5167_v19  ;;  %6080 = vst [vmem:[#allocation20_spill] sm:$0xff] %v5486_v12  ;;  %v5492_v13 = vld [vmem:[%s5980_s2 + $0x248] ss:$24 sps:$4 sm:$0xff]  }
 0x170   : > { %6081 = vst [vmem:[#allocation21_spill] sm:$0xff] %v5492_v13  ;;  %v5504_v16 = vld [vmem:[%s5980_s2 + $0x210] ss:$24 sps:$4 sm:$0xff]  }
 0x171   : > { %v1061_v22 = vpack.c.bf16 %v5169_v20, %v5169_v20  ;;  %v4004_v25 = vpack.c.bf16 %v5169_v20, %v5167_v19 }
 0x173   : > { %1305 = vmatprep.mubr.bf16.mxu1 %v1061_v22  ;;  %1550 = vmatprep.mubr.bf16.mxu0 %v1061_v22  ;;  %1068 = vst [vmem:[%s4471_s24] sm:$0xff] %v4004_v25  ;;  %v5516_v25 = vld [vmem:[%s5980_s2 + $0x218] ss:$24 sps:$4 sm:$0xff]  }
 0x174   : > { %1306 = vmatmul.mubr.bf16.vlgmr.msra.gmra.mxu1 %v1060_v26  ;;  %1551 = vmatmul.mubr.bf16.vlgmr.msra.gmra.mxu0 %v1060_v26  ;;  %6083 = vst [vmem:[#allocation23_spill] sm:$0xff] %v5516_v25 }
 0x175   : > { %1764 = vmatpush1.bf16.msra.mxu1 %v6058_v30  ;;  %1795 = vmatprep.mubr.bf16.mxu1 %v1061_v22  ;;  %v5509_v22 = vld [vmem:[%s5980_s2 + $0x21c] ss:$24 sps:$4 sm:$0xff]   ;;  %v5527_v30 = vld [vmem:[%s5980_s2 + $0x1ec] ss:$24 sps:$4 sm:$0xff]  }
 0x176   : > { %1765 = vmatprep.subr.bf16.mxu1 %v6059_v32  ;;  %6082 = vst [vmem:[#allocation22_spill] sm:$0xff] %v5509_v22  ;;  %6084 = vst [vmem:[#allocation24_spill] sm:$0xff] %v5527_v30  ;;  %v5533_v32 = vld [vmem:[%s5980_s2 + $0x1e0] ss:$24 sps:$4 sm:$0xff]  }
 0x179   : > { %1766 = vmatpush1.bf16.msra.mxu1 %v6060_v33  ;;  %v5540_v33 = vld [vmem:[%s5980_s2 + $0x1e8] ss:$24 sps:$4 sm:$0xff]  }
 0x17a   : > { %1767 = vmatprep.subr.bf16.mxu1 %v6061_v34  ;;  %6085 = vst [vmem:[#allocation25_spill] sm:$0xff] %v5540_v33  ;;  %v5545_v34 = vld [vmem:[%s5980_s2 + $0x1b4] ss:$24 sps:$4 sm:$0xff]  }
 0x17d   : > { %1768 = vmatpush1.bf16.msra.mxu1 %v6062_v35  ;;  %v5551_v35 = vld [vmem:[%s5980_s2 + $0x1bc] ss:$24 sps:$4 sm:$0xff]  }
 0x17e   : > { %1769 = vmatprep.subr.bf16.mxu1 %v6063_v37  ;;  %6086 = vst [vmem:[#allocation26_spill] sm:$0xff] %v5551_v35  ;;  %v5557_v37 = vld [vmem:[%s5980_s2 + $0x1b0] ss:$24 sps:$4 sm:$0xff]  }
 0x181   : > { %1770 = vmatpush1.bf16.msra.mxu1 %v4924_v29  ;;  %v5212_v29 = vld [vmem:[%s5980_s2 + $0x150] ss:$24 sps:$4 sm:$0xff]  }
 0x182   : > { %1771 = vmatprep.subr.bf16.mxu1 %v6064_v39  ;;  %v5564_v39 = vld [vmem:[%s5980_s2 + $0x1b8] ss:$24 sps:$4 sm:$0xff]  }
 0x183   : > { %6087 = vst [vmem:[#allocation27_spill] sm:$0xff] %v5564_v39 }
 0x185   : > { %1772 = vmatpush1.bf16.msra.mxu1 %v4938_v55  ;;  %v5222_v55 = vld [vmem:[%s5980_s2 + $0x158] ss:$24 sps:$4 sm:$0xff]  }
 0x186   : > { %1773 = vmatprep.subr.bf16.mxu1 %v4943_v61  ;;  %v5238_v61 = vld [vmem:[%s5980_s2 + $0x12c] ss:$24 sps:$4 sm:$0xff]  }
 0x189   : > { %1774 = vmatpush1.bf16.msra.mxu1 %v4952_v59  ;;  %v5227_v59 = vld [vmem:[%s5980_s2 + $0x15c] ss:$24 sps:$4 sm:$0xff]  }
 0x18a   : > { %1775 = vmatprep.subr.bf16.mxu1 %v4958_v51  ;;  %v5217_v51 = vld [vmem:[%s5980_s2 + $0x154] ss:$24 sps:$4 sm:$0xff]  }
 0x18b   : > { %2070 = vmatprep.subr.bf16.mxu0 %v5217_v51 }
 0x18c   : > { %2071 = vmatpush1.bf16.msra.mxu0 %v5212_v29 }
 0x18d   : > { %1776 = vmatpush1.bf16.msra.mxu1 %v4967_v2  ;;  %v5245_v2 = vld [vmem:[%s5980_s2 + $0x120] ss:$24 sps:$4 sm:$0xff]  }
 0x18e   : > { %1777 = vmatprep.subr.bf16.mxu1 %v4972_v60  ;;  %v5232_v60 = vld [vmem:[%s5980_s2 + $0x124] ss:$24 sps:$4 sm:$0xff]  }
 0x18f   : > { %2072 = vmatprep.subr.bf16.mxu0 %v5232_v60 }
 0x190   : > { %2073 = vmatpush1.bf16.msra.mxu0 %v5245_v2 }
 0x191   : > { %1778 = vmatpush1.bf16.msra.mxu1 %v4981_v3  ;;  %v5252_v3 = vld [vmem:[%s5980_s2 + $0x128] ss:$24 sps:$4 sm:$0xff]  }
 0x192   : > { %1779 = vmatprep.subr.bf16.mxu1 %v4986_v4  ;;  %v5257_v4 = vld [vmem:[%s5980_s2 + $0xf4] ss:$24 sps:$4 sm:$0xff]  }
 0x193   : > { %2074 = vmatprep.subr.bf16.mxu0 %v5257_v4 }
 0x195   : > { %1780 = vmatpush2.bf16.msra.mxu1 %v4995_v5  ;;  %v5263_v5 = vld [vmem:[%s5980_s2 + $0xfc] ss:$24 sps:$4 sm:$0xff]  }
 0x196   : > { %1781 = vmatprep.subr.bf16.mxu1 %v5000_v6  ;;  %v5269_v6 = vld [vmem:[%s5980_s2 + $0xf0] ss:$24 sps:$4 sm:$0xff]  }
 0x197   : > { %2075 = vmatpush1.bf16.msra.mxu0 %v5269_v6 }
 0x199   : > { %1782 = vmatpush2.bf16.msra.mxu1 %v5011_v7  ;;  %v5276_v7 = vld [vmem:[%s5980_s2 + $0xf8] ss:$24 sps:$4 sm:$0xff]  }
 0x19a   : > { %1783 = vmatprep.subr.bf16.mxu1 %v5018_v8  ;;  %v5281_v8 = vld [vmem:[%s5980_s2 + $0xc4] ss:$24 sps:$4 sm:$0xff]  }
 0x19b   : > { %2076 = vmatprep.subr.bf16.mxu0 %v5281_v8 }
 0x19d   : > { %1784 = vmatpush2.bf16.msra.mxu1 %v5025_v9  ;;  %v5287_v9 = vld [vmem:[%s5980_s2 + $0xcc] ss:$24 sps:$4 sm:$0xff]  }
 0x19e   : > { %1785 = vmatprep.subr.bf16.mxu1 %v5032_v10  ;;  %v5293_v10 = vld [vmem:[%s5980_s2 + $0xc0] ss:$24 sps:$4 sm:$0xff]  }
 0x19f   : > { %2077 = vmatpush1.bf16.msra.mxu0 %v5293_v10 }
 0x1a1   : > { %1786 = vmatpush2.bf16.msra.mxu1 %v5039_v11  ;;  %v5300_v11 = vld [vmem:[%s5980_s2 + $0xc8] ss:$24 sps:$4 sm:$0xff]  }
 0x1a2   : > { %1787 = vmatprep.subr.bf16.mxu1 %v5046_v14  ;;  %6065 = vst [vmem:[#allocation6_spill] sm:$0xff] %v5300_v11  ;;  %v5305_v14 = vld [vmem:[%s5980_s2 + $0x94] ss:$24 sps:$4 sm:$0xff]  }
 0x1a3   : > { %2078 = vmatprep.subr.bf16.mxu0 %v5305_v14 }
 0x1a5   : > { %1788 = vmatpush2.bf16.msra.mxu1 %v5053_v17  ;;  %v5311_v17 = vld [vmem:[%s5980_s2 + $0x9c] ss:$24 sps:$4 sm:$0xff]  }
 0x1a6   : > { %1789 = vmatprep.subr.bf16.mxu1 %v5060_v18  ;;  %6066 = vst [vmem:[#allocation7_spill] sm:$0xff] %v5311_v17  ;;  %v5317_v18 = vld [vmem:[%s5980_s2 + $0x90] ss:$24 sps:$4 sm:$0xff]  }
 0x1a7   : > { %2079 = vmatpush1.bf16.msra.mxu0 %v5317_v18 }
 0x1a9   : > { %1790 = vmatpush2.bf16.msra.mxu1 %v5067_v21  ;;  %v5324_v21 = vld [vmem:[%s5980_s2 + $0x98] ss:$24 sps:$4 sm:$0xff]  }
 0x1aa   : > { %1791 = vmatprep.subr.bf16.mxu1 %v5074_v23  ;;  %6067 = vst [vmem:[#allocation9_spill] sm:$0xff] %v5324_v21  ;;  %v5329_v23 = vld [vmem:[%s5980_s2 + $0x64] ss:$24 sps:$4 sm:$0xff]  }
 0x1ab   : > { %2080 = vmatprep.subr.bf16.mxu0 %v5329_v23 }
 0x1ad   : > { %1792 = vmatpush2.bf16.msra.mxu1 %v5081_v24  ;;  %v5335_v24 = vld [vmem:[%s5980_s2 + $0x6c] ss:$24 sps:$4 sm:$0xff]  }
 0x1ae   : > { %1793 = vmatprep.subr.bf16.mxu1 %v5088_v27  ;;  %6068 = vst [vmem:[#allocation10_spill] sm:$0xff] %v5335_v24  ;;  %v5341_v27 = vld [vmem:[%s5980_s2 + $0x60] ss:$24 sps:$4 sm:$0xff]  }
 0x1af   : > { %2081 = vmatpush1.bf16.msra.mxu0 %v5341_v27 }
 0x1b0   : > { %2082 = vmatprep.subr.bf16.mxu0 %v5353_v40 }
 0x1b1   : > { %1794 = vmatpush2.bf16.msra.mxu1 %v5095_v28  ;;  %v5348_v28 = vld [vmem:[%s5980_s2 + $0x68] ss:$24 sps:$4 sm:$0xff]  }
 0x1b2   : > { %2315 = vmatprep.subr.bf16.mxu1 %v5227_v59  ;;  %6069 = vst [vmem:[#allocation12_spill] sm:$0xff] %v5348_v28 }
 0x1b3   : > { %2083 = vmatpush1.bf16.msra.mxu0 %v5365_v42 }
 0x1b4   : > { %1796 = vmatmul.mubr.bf16.vlgmr.msra.gmra.mxu1 %v1060_v26  ;;  %2084 = vmatprep.subr.bf16.mxu0 %v5377_v44  ;;  %v5521_v26 = vld [vmem:[%s5980_s2 + $0x1e4] ss:$24 sps:$4 sm:$0xff]  }
 0x1b5   : > { %2316 = vmatpush1.bf16.msra.mxu1 %v5222_v55 }
 0x1b6   : > { %2317 = vmatprep.subr.bf16.mxu1 %v5238_v61 }
 0x1b7   : > { %2085 = vmatpush1.bf16.msra.mxu0 %v5389_v46 }
 0x1b8   : > { %2086 = vmatprep.subr.bf16.mxu0 %v5401_v48 }
 0x1b9   : > { %2318 = vmatpush1.bf16.msra.mxu1 %v5252_v3 }
 0x1ba   : > { %2319 = vmatprep.subr.bf16.mxu1 %v5263_v5 }
 0x1bb   : > { %2087 = vmatpush2.bf16.msra.mxu0 %v5413_v50 }
 0x1bc   : > { %2088 = vmatprep.subr.bf16.mxu0 %v5428_v53 }
 0x1bd   : > { %2320 = vmatpush1.bf16.msra.mxu1 %v5276_v7 }
 0x1be   : > { %2321 = vmatprep.subr.bf16.mxu1 %v5287_v9 }
 0x1bf   : > { %2089 = vmatpush2.bf16.msra.mxu0 %v5433_v54 }
 0x1c0   : > { %2090 = vmatprep.subr.bf16.mxu0 %v5452_v58 }
 0x1c1   : > { %2322 = vmatpush1.bf16.msra.mxu1 %v5300_v11 }
 0x1c2   : > { %2323 = vmatprep.subr.bf16.mxu1 %v5311_v17 }
 0x1c3   : > { %2091 = vmatpush2.bf16.msra.mxu0 %v5457_v62 }
 0x1c4   : > { %2092 = vmatprep.subr.bf16.mxu0 %v5476_v1 }
 0x1c5   : > { %2324 = vmatpush1.bf16.msra.mxu1 %v5324_v21  ;;  %v3785_v21 = vld [vmem:[%s4476_s27 + $0x20] sm:$0xff] }
 0x1c6   : > { %2325 = vmatprep.subr.bf16.mxu1 %v5335_v24 }
 0x1c7   : > { %2093 = vmatpush2.bf16.msra.mxu0 %v5481_v31 }
 0x1c8   : > { %2094 = vmatprep.subr.bf16.mxu0 %v5497_v15 }
 0x1c9   : > { %2326 = vmatpush1.bf16.msra.mxu1 %v5348_v28 }
 0x1ca   : > { %2327 = vmatprep.subr.bf16.mxu1 %v5359_v41 }
 0x1cb   : > { %2095 = vmatpush2.bf16.msra.mxu0 %v5504_v16 }
 0x1cc   : > { %2096 = vmatprep.subr.bf16.mxu0 %v5521_v26 }
 0x1cd   : > { %2328 = vmatpush1.bf16.msra.mxu1 %v5372_v43 }
 0x1ce   : > { %2329 = vmatprep.subr.bf16.mxu1 %v5383_v45 }
 0x1cf   : > { %2097 = vmatpush2.bf16.msra.mxu0 %v5533_v32 }
 0x1d0   : > { %2098 = vmatprep.subr.bf16.mxu0 %v5545_v34 }
 0x1d1   : > { %2330 = vmatpush1.bf16.msra.mxu1 %v5396_v47 }
 0x1d2   : > { %2331 = vmatprep.subr.bf16.mxu1 %v5407_v49  ;;  %v3782_v49 = vld [vmem:[%s4476_s27 + $0x18] sm:$0xff] }
 0x1d3   : > { %2099 = vmatpush2.bf16.msra.mxu0 %v5557_v37  ;;  %v1806_v45 = vunpack.c.l.bf16 %v3782_v49  ;;  %v1807_v41 = vunpack.c.h.bf16 %v3782_v49 }
 0x1d5   : > { %2332 = vmatpush2.bf16.msra.mxu1 %v5420_v52 }
 0x1d6   : > { %2333 = vmatprep.subr.bf16.mxu1 %v5438_v56 }
 0x1d9   : > { %2334 = vmatpush2.bf16.msra.mxu1 %v5444_v57 }
 0x1da   : > { %2335 = vmatprep.subr.bf16.mxu1 %v5462_v63 }
 0x1dd   : > { %2336 = vmatpush2.bf16.msra.mxu1 %v5468_v0 }
 0x1de   : > { %2337 = vmatprep.subr.bf16.mxu1 %v5486_v12 }
 0x1e1   : > { %2338 = vmatpush2.bf16.msra.mxu1 %v5492_v13 }
 0x1e2   : > { %2339 = vmatprep.subr.bf16.mxu1 %v5509_v22  ;;  %v5596_v22 = vld [vmem:[%s5980_s2 + $0x164] ss:$24 sps:$4 sm:$0xff]  }
 0x1e5   : > { %2340 = vmatpush2.bf16.msra.mxu1 %v5516_v25  ;;  %v5575_v25 = vld [vmem:[%s5980_s2 + $0x18c] ss:$24 sps:$4 sm:$0xff]  }
 0x1e6   : > { %2341 = vmatprep.subr.bf16.mxu1 %v5527_v30  ;;  %v5569_v30 = vld [vmem:[%s5980_s2 + $0x184] ss:$24 sps:$4 sm:$0xff]   ;;  %6088 = vst [vmem:[#allocation28_spill] sm:$0xff] %v5575_v25 }
 0x1e7   : > { %2100 = vmatprep.subr.bf16.mxu0 %v5569_v30 }
 0x1e9   : > { %2342 = vmatpush2.bf16.msra.mxu1 %v5540_v33  ;;  %v5581_v33 = vld [vmem:[%s5980_s2 + $0x180] ss:$24 sps:$4 sm:$0xff]  }
 0x1ea   : > { %2343 = vmatprep.subr.bf16.mxu1 %v5551_v35  ;;  %v5588_v35 = vld [vmem:[%s5980_s2 + $0x188] ss:$24 sps:$4 sm:$0xff]   ;;  %2101 = vmatpush2.bf16.msra.mxu0 %v5581_v33 }
 0x1eb   : > { %6089 = vst [vmem:[#allocation29_spill] sm:$0xff] %v5588_v35  ;;  %2560 = vmatprep.subr.bf16.mxu0 %v5596_v22 }
 0x1ed   : > { %2344 = vmatpush2.bf16.msra.mxu1 %v5564_v39 }
 0x1ee   : > { %2345 = vmatprep.subr.bf16.mxu1 %v5575_v25 }
 0x1f1   : > { %2346 = vmatpush2.bf16.msra.mxu1 %v5588_v35  ;;  %v1101_v35 = vld [vmem:[%s5981_s3] sm:$0x3] }
 0x1f2   : > { %2867 = vmatprep.subr.bf16.mxu1 %v5217_v51  ;;  %v1106_v52 = vrot.slane %v1101_v35, %v5143_v36  ;;  %v1110_v51 = vrot.slane %v1101_v35, %v5148_v38  ;;  %v1823_v35 = vunpack.c.l.bf16 %v3785_v21 }
 0x234   : > { %v1307_v39 = vpop.f32.mrf.mxu1  ;;  %v1552_v13 = vpop.f32.mrf.mxu0 }
 0x235   : > { %v1308_v47 = vadd.f32 %v1307_v39, %v1106_v52 }
 0x236   : > { %v1309_v12 = vpop.f32.mrf.mxu1  ;;  %v1554_v0 = vpop.f32.mrf.mxu0 }
 0x237   : > { %v1310_v43 = vadd.f32 %v1309_v12, %v1110_v51  ;;  %v1808_v28 = vadd.f32 %v1806_v45, %v1308_v47  ;;  %v1824_v12 = vunpack.c.h.bf16 %v3785_v21  ;;  %v3788_v21 = vld [vmem:[%s4476_s27 + $0x28] sm:$0xff] }
 0x238   : > { %v1311_v63 = vpop.f32.mrf.mxu1  ;;  %v1556_v25 = vpop.f32.mrf.mxu0 }
 0x239   : > { %v1809_v24 = vadd.f32 %v1807_v41, %v1310_v43 }
 0x23a   : > { %v1312_v57 = vpop.f32.mrf.mxu1  ;;  %v1557_v56 = vpop.f32.mrf.mxu0 }
 0x23b   : > { %v1346_v57 = vld [vmem:[%s5981_s3 + $0x2] sm:$0x3]  ;;  %v3783_v56 = vmul.f32 -1.442695, %v1808_v28  ;;  %v3784_v25 = vmul.f32 -1.442695, %v1809_v24 }
 0x23c   : > { %v1351_v63 = vrot.slane %v1346_v57, %v5143_v36  ;;  %v1355_v17 = vrot.slane %v1346_v57, %v5148_v38 }
 0x23d   : > { %4341 = vpow2.f32 %v3783_v56 }
 0x23e   : > { %v1553_v11 = vadd.f32 %v1552_v13, %v1351_v63  ;;  %4343 = vpow2.f32 %v3784_v25  ;;  %v1555_v52 = vadd.f32 %v1554_v0, %v1355_v17  ;;  %v1591_v13 = vld [vmem:[%s5981_s3 + $0x4] sm:$0x3] }
 0x23f   : > { %v1596_v17 = vrot.slane %v1591_v13, %v5143_v36  ;;  %v1600_v57 = vrot.slane %v1591_v13, %v5148_v38 }
 0x240   : > { %v1825_v49 = vadd.f32 %v1823_v35, %v1553_v11  ;;  %v1826_v41 = vadd.f32 %v1824_v12, %v1555_v52  ;;  %v1842_v35 = vunpack.c.l.bf16 %v3788_v21 }
 0x242   : > { %v3786_v43 = vmul.f32 -1.442695, %v1825_v49  ;;  %v3787_v45 = vmul.f32 -1.442695, %v1826_v41 }
 0x244   : > { %4345 = vpow2.f32 %v3786_v43  ;;  %v1843_v43 = vunpack.c.h.bf16 %v3788_v21 }
 0x245   : > { %4347 = vpow2.f32 %v3787_v45 }
 0x24a   : > { %v4342_v47 = vpop.eup %4341 }
 0x24b   : > { %v4344_v28 = vpop.eup %4343  ;;  %v1816_v39 = vadd.f32 1.0, %v4342_v47 }
 0x24c   : > { %v1817_v24 = vadd.f32 1.0, %v4344_v28 }
 0x24d   : > { %4349 = vrcp.f32 %v1816_v39 }
 0x24e   : > { %4351 = vrcp.f32 %v1817_v24 }
 0x251   : > { %v4346_v51 = vpop.eup %4345 }
 0x252   : > { %v4348_v11 = vpop.eup %4347  ;;  %v1833_v0 = vadd.f32 1.0, %v4346_v51 }
 0x253   : > { %v1834_v63 = vadd.f32 1.0, %v4348_v11 }
 0x254   : > { %4353 = vrcp.f32 %v1833_v0 }
 0x255   : > { %4355 = vrcp.f32 %v1834_v63 }
 0x25a   : > { %v4350_v52 = vpop.eup %4349 }
 0x25b   : > { %v4352_v45 = vpop.eup %4351 }
 0x261   : > { %v4354_v13 = vpop.eup %4353 }
 0x262   : > { %v4356_v38 = vpop.eup %4355  ;;  %v1848_v11 = vsub.f32 1.0, %v4354_v13 }
 0x274   : > { %v1797_v56 = vpop.f32.mrf.mxu1 }
 0x275   : > { %v1798_v25 = vadd.f32 %v1797_v56, %v1596_v17  ;;  %v1849_v56 = vsub.f32 1.0, %v4356_v38 }
 0x276   : > { %v1799_v12 = vpop.f32.mrf.mxu1 }
 0x277   : > { %v1840_v49 = vmul.f32 %v4350_v52, %v1798_v25  ;;  %v1800_v41 = vadd.f32 %v1799_v12, %v1600_v57  ;;  %v1852_v57 = vmul.f32 %v4354_v13, %v5167_v19  ;;  %v1853_v25 = vmul.f32 %v4356_v38, %v5169_v20  ;;  %v5629_v12 = vld [vmem:[%s5980_s2 + $0x160] ss:$24 sps:$4 sm:$0xff]   ;;  %v5649_v38 = vld [vmem:[%s5980_s2 + $0x130] ss:$24 sps:$4 sm:$0xff]   ;;  %v5655_v20 = vld [vmem:[%s5980_s2 + $0x104] ss:$24 sps:$4 sm:$0xff]  }
 0x278   : > { %v1801_v47 = vpop.f32.mrf.mxu1  ;;  %v6110_v13 = vld [vmem:[#allocation25_spill] sm:$0xff] }
 0x279   : > { %v1844_v28 = vadd.f32 %v1842_v35, %v1840_v49  ;;  %v1841_v39 = vmul.f32 %v4352_v45, %v1800_v41  ;;  %v5663_v41 = vld [vmem:[%s5980_s2 + $0x100] ss:$24 sps:$4 sm:$0xff]   ;;  %v6104_v45 = vld [vmem:[#allocation19_spill] sm:$0xff] }
 0x27a   : > { %v1802_v24 = vpop.f32.mrf.mxu1  ;;  %v6105_v47 = vld [vmem:[#allocation20_spill] sm:$0xff] }
 0x27b   : > { %4357 = vtanh.f32 %v1844_v28  ;;  %v1845_v51 = vadd.f32 %v1843_v43, %v1841_v39  ;;  %v5669_v43 = vld [vmem:[%s5980_s2 + $0xd4] ss:$24 sps:$4 sm:$0xff]   ;;  %v6106_v28 = vld [vmem:[#allocation21_spill] sm:$0xff] }
 0x27c   : > { %v6107_v39 = vld [vmem:[#allocation22_spill] sm:$0xff]  ;;  %v6108_v24 = vld [vmem:[#allocation23_spill] sm:$0xff] }
 0x27d   : > { %4359 = vtanh.f32 %v1845_v51  ;;  %v6109_v51 = vld [vmem:[#allocation24_spill] sm:$0xff] }
 0x288   : > { %v4358_v17 = vpop.eup %4357 }
 0x289   : > { %v1850_v36 = vmul.f32 %v4358_v17, %v1848_v11  ;;  %v6111_v11 = vld [vmem:[#allocation26_spill] sm:$0xff]  ;;  %v6112_v17 = vld [vmem:[#allocation27_spill] sm:$0xff] }
 0x28a   : > { %v4360_v0 = vpop.eup %4359 }
 0x28b   : > { %v1851_v21 = vmul.f32 %v4360_v0, %v1849_v56  ;;  %v5620_v63 = vadd.f32 %v1852_v57, %v1850_v36  ;;  %v5640_v36 = vld [vmem:[%s5980_s2 + $0x134] ss:$24 sps:$4 sm:$0xff]   ;;  %v6113_v56 = vld [vmem:[#allocation28_spill] sm:$0xff]  ;;  %v6114_v0 = vld [vmem:[#allocation29_spill] sm:$0xff] }
 0x28d   : > { %v5622_v35 = vadd.f32 %v1853_v25, %v1851_v21  ;;  %v5635_v19 = vpack.c.bf16 %v5620_v63, %v5620_v63 }
 0x28f   : > { %v1857_v52 = vpack.c.bf16 %v5622_v35, %v5622_v35  ;;  %v4005_v49 = vpack.c.bf16 %v5622_v35, %v5620_v63 }
 0x291   : > { %2102 = vmatprep.mubr.bf16.mxu0 %v1857_v52  ;;  %2347 = vmatprep.mubr.bf16.mxu1 %v1857_v52  ;;  %3790 = vst [vmem:[%s4471_s24 + $0x8] sm:$0xff] %v4005_v49 }
 0x292   : > { %2103 = vmatmul.mubr.bf16.vlgmr.msra.gmra.mxu0 %v5635_v19  ;;  %2348 = vmatmul.mubr.bf16.vlgmr.msra.gmra.mxu1 %v5635_v19 }
 0x293   : > { %2561 = vmatpush1.bf16.msra.mxu0 %v5629_v12  ;;  %2592 = vmatprep.mubr.bf16.mxu0 %v1857_v52 }
 0x294   : > { %2562 = vmatprep.subr.bf16.mxu0 %v5640_v36  ;;  %2868 = vmatpush1.bf16.msra.mxu1 %v5212_v29  ;;  %v5677_v29 = vld [vmem:[%s5980_s2 + $0xd0] ss:$24 sps:$4 sm:$0xff]  }
 0x295   : > { %2869 = vmatprep.subr.bf16.mxu1 %v5232_v60  ;;  %v5683_v60 = vld [vmem:[%s5980_s2 + $0xa4] ss:$24 sps:$4 sm:$0xff]  }
 0x297   : > { %2563 = vmatpush1.bf16.msra.mxu0 %v5649_v38 }
 0x298   : > { %2564 = vmatprep.subr.bf16.mxu0 %v5655_v20  ;;  %2870 = vmatpush1.bf16.msra.mxu1 %v5245_v2  ;;  %v5691_v2 = vld [vmem:[%s5980_s2 + $0xa0] ss:$24 sps:$4 sm:$0xff]  }
 0x299   : > { %2871 = vmatprep.subr.bf16.mxu1 %v5257_v4  ;;  %v5697_v4 = vld [vmem:[%s5980_s2 + $0x74] ss:$24 sps:$4 sm:$0xff]  }
 0x29b   : > { %2565 = vmatpush1.bf16.msra.mxu0 %v5663_v41 }
 0x29c   : > { %2566 = vmatprep.subr.bf16.mxu0 %v5669_v43  ;;  %2872 = vmatpush1.bf16.msra.mxu1 %v5269_v6  ;;  %v5705_v6 = vld [vmem:[%s5980_s2 + $0x70] ss:$24 sps:$4 sm:$0xff]  }
 0x29d   : > { %2873 = vmatprep.subr.bf16.mxu1 %v5281_v8  ;;  %v5711_v8 = vld [vmem:[%s5980_s2 + $0x44] ss:$24 sps:$4 sm:$0xff]  }
 0x29f   : > { %2567 = vmatpush1.bf16.msra.mxu0 %v5677_v29 }
 0x2a0   : > { %2568 = vmatprep.subr.bf16.mxu0 %v5683_v60  ;;  %2874 = vmatpush1.bf16.msra.mxu1 %v5293_v10  ;;  %v5719_v10 = vld [vmem:[%s5980_s2 + $0x40] ss:$24 sps:$4 sm:$0xff]  }
 0x2a1   : > { %2875 = vmatprep.subr.bf16.mxu1 %v5305_v14  ;;  %v5725_v14 = vld [vmem:[%s5980_s2 + $0x14] ss:$24 sps:$4 sm:$0xff]  }
 0x2a3   : > { %2569 = vmatpush1.bf16.msra.mxu0 %v5691_v2 }
 0x2a4   : > { %2570 = vmatprep.subr.bf16.mxu0 %v5697_v4  ;;  %2876 = vmatpush1.bf16.msra.mxu1 %v5317_v18  ;;  %v5733_v18 = vld [vmem:[%s5980_s2 + $0x10] ss:$24 sps:$4 sm:$0xff]  }
 0x2a5   : > { %2877 = vmatprep.subr.bf16.mxu1 %v5329_v23  ;;  %v5739_v23 = vld [vmem:[%s5980_s2 + $0x2e4] ss:$24 sps:$4 sm:$0xff]  }
 0x2a7   : > { %2571 = vmatpush1.bf16.msra.mxu0 %v5705_v6 }
 0x2a8   : > { %2572 = vmatprep.subr.bf16.mxu0 %v5711_v8  ;;  %2878 = vmatpush1.bf16.msra.mxu1 %v5341_v27  ;;  %v5747_v27 = vld [vmem:[%s5980_s2 + $0x2e0] ss:$24 sps:$4 sm:$0xff]  }
 0x2a9   : > { %2879 = vmatprep.subr.bf16.mxu1 %v5353_v40  ;;  %v5753_v40 = vld [vmem:[%s5980_s2 + $0x2b4] ss:$24 sps:$4 sm:$0xff]  }
 0x2ab   : > { %2573 = vmatpush1.bf16.msra.mxu0 %v5719_v10 }
 0x2ac   : > { %2574 = vmatprep.subr.bf16.mxu0 %v5725_v14  ;;  %2880 = vmatpush1.bf16.msra.mxu1 %v5365_v42  ;;  %v5761_v42 = vld [vmem:[%s5980_s2 + $0x2b0] ss:$24 sps:$4 sm:$0xff]  }
 0x2ad   : > { %2881 = vmatprep.subr.bf16.mxu1 %v5377_v44  ;;  %v5767_v44 = vld [vmem:[%s5980_s2 + $0x284] ss:$24 sps:$4 sm:$0xff]  }
 0x2af   : > { %2575 = vmatpush1.bf16.msra.mxu0 %v5733_v18 }
 0x2b0   : > { %2576 = vmatprep.subr.bf16.mxu0 %v5739_v23  ;;  %2882 = vmatpush1.bf16.msra.mxu1 %v5389_v46  ;;  %v5775_v46 = vld [vmem:[%s5980_s2 + $0x280] ss:$24 sps:$4 sm:$0xff]  }
 0x2b1   : > { %2883 = vmatprep.subr.bf16.mxu1 %v5401_v48  ;;  %v5781_v48 = vld [vmem:[%s5980_s2 + $0x254] ss:$24 sps:$4 sm:$0xff]  }
 0x2b3   : > { %2577 = vmatpush2.bf16.msra.mxu0 %v5747_v27 }
 0x2b4   : > { %2578 = vmatprep.subr.bf16.mxu0 %v5753_v40  ;;  %2884 = vmatpush2.bf16.msra.mxu1 %v5413_v50  ;;  %v5789_v50 = vld [vmem:[%s5980_s2 + $0x250] ss:$24 sps:$4 sm:$0xff]  }
 0x2b5   : > { %2885 = vmatprep.subr.bf16.mxu1 %v5428_v53  ;;  %v5795_v53 = vld [vmem:[%s5980_s2 + $0x224] ss:$24 sps:$4 sm:$0xff]  }
 0x2b7   : > { %2579 = vmatpush2.bf16.msra.mxu0 %v5761_v42 }
 0x2b8   : > { %2580 = vmatprep.subr.bf16.mxu0 %v5767_v44  ;;  %2886 = vmatpush2.bf16.msra.mxu1 %v5433_v54  ;;  %v5803_v54 = vld [vmem:[%s5980_s2 + $0x220] ss:$24 sps:$4 sm:$0xff]  }
 0x2b9   : > { %2887 = vmatprep.subr.bf16.mxu1 %v5452_v58  ;;  %v5809_v58 = vld [vmem:[%s5980_s2 + $0x1f4] ss:$24 sps:$4 sm:$0xff]  }
 0x2bb   : > { %2581 = vmatpush2.bf16.msra.mxu0 %v5775_v46 }
 0x2bc   : > { %2582 = vmatprep.subr.bf16.mxu0 %v5781_v48  ;;  %2888 = vmatpush2.bf16.msra.mxu1 %v5457_v62  ;;  %v5817_v62 = vld [vmem:[%s5980_s2 + $0x1f0] ss:$24 sps:$4 sm:$0xff]  }
 0x2bd   : > { %2889 = vmatprep.subr.bf16.mxu1 %v5476_v1  ;;  %v5823_v1 = vld [vmem:[%s5980_s2 + $0x1c4] ss:$24 sps:$4 sm:$0xff]  }
 0x2bf   : > { %2583 = vmatpush2.bf16.msra.mxu0 %v5789_v50 }
 0x2c0   : > { %2584 = vmatprep.subr.bf16.mxu0 %v5795_v53  ;;  %2890 = vmatpush2.bf16.msra.mxu1 %v5481_v31  ;;  %v5831_v31 = vld [vmem:[%s5980_s2 + $0x1c0] ss:$24 sps:$4 sm:$0xff]  }
 0x2c1   : > { %2891 = vmatprep.subr.bf16.mxu1 %v5497_v15  ;;  %v5837_v15 = vld [vmem:[%s5980_s2 + $0x194] ss:$24 sps:$4 sm:$0xff]  }
 0x2c3   : > { %2585 = vmatpush2.bf16.msra.mxu0 %v5803_v54 }
 0x2c4   : > { %2586 = vmatprep.subr.bf16.mxu0 %v5809_v58  ;;  %2892 = vmatpush2.bf16.msra.mxu1 %v5504_v16  ;;  %v5845_v16 = vld [vmem:[%s5980_s2 + $0x190] ss:$24 sps:$4 sm:$0xff]  }
 0x2c5   : > { %2893 = vmatprep.subr.bf16.mxu1 %v5521_v26  ;;  %v6090_v26 = vld [vmem:[#allocation6_spill] sm:$0xff] }
 0x2c7   : > { %2587 = vmatpush2.bf16.msra.mxu0 %v5817_v62 }
 0x2c8   : > { %2588 = vmatprep.subr.bf16.mxu0 %v5823_v1  ;;  %2894 = vmatpush2.bf16.msra.mxu1 %v5533_v32  ;;  %v6094_v32 = vld [vmem:[#allocation12_spill] sm:$0xff] }
 0x2c9   : > { %2895 = vmatprep.subr.bf16.mxu1 %v5545_v34  ;;  %v6102_v34 = vld [vmem:[#allocation17_spill] sm:$0xff] }
 0x2cb   : > { %2589 = vmatpush2.bf16.msra.mxu0 %v5831_v31 }
 0x2cc   : > { %2590 = vmatprep.subr.bf16.mxu0 %v5837_v15  ;;  %2896 = vmatpush2.bf16.msra.mxu1 %v5557_v37  ;;  %v6103_v37 = vld [vmem:[#allocation18_spill] sm:$0xff] }
 0x2cd   : > { %2897 = vmatprep.subr.bf16.mxu1 %v5569_v30  ;;  %v6092_v30 = vld [vmem:[#allocation9_spill] sm:$0xff] }
 0x2cf   : > { %2591 = vmatpush2.bf16.msra.mxu0 %v5845_v16 }
 0x2d0   : > { %3112 = vmatprep.subr.bf16.mxu0 %v5227_v59  ;;  %2898 = vmatpush2.bf16.msra.mxu1 %v5581_v33  ;;  %v6091_v59 = vld [vmem:[#allocation7_spill] sm:$0xff]  ;;  %v6101_v33 = vld [vmem:[#allocation16_spill] sm:$0xff] }
 0x2d1   : > { %3357 = vmatprep.subr.bf16.mxu1 %v5596_v22  ;;  %v6093_v22 = vld [vmem:[#allocation10_spill] sm:$0xff] }
 0x2d2   : > { %2593 = vmatmul.mubr.bf16.vlgmr.msra.gmra.mxu0 %v5635_v19 }
 0x2d3   : > { %3113 = vmatpush1.bf16.msra.mxu0 %v5222_v55  ;;  %v6095_v55 = vld [vmem:[#allocation14_spill] sm:$0xff] }
 0x2d4   : > { %3114 = vmatprep.subr.bf16.mxu0 %v5238_v61  ;;  %v6096_v61 = vld [vmem:[#allocation8_spill] sm:$0xff] }
 0x2d7   : > { %3115 = vmatpush1.bf16.msra.mxu0 %v5252_v3  ;;  %v6097_v3 = vld [vmem:[#allocation3_spill] sm:$0xff] }
 0x2d8   : > { %3116 = vmatprep.subr.bf16.mxu0 %v5263_v5  ;;  %v6098_v5 = vld [vmem:[#allocation11_spill] sm:$0xff] }
 0x2db   : > { %3117 = vmatpush1.bf16.msra.mxu0 %v5276_v7  ;;  %v6099_v7 = vld [vmem:[#allocation13_spill] sm:$0xff] }
 0x2dc   : > { %3118 = vmatprep.subr.bf16.mxu0 %v5287_v9  ;;  %v6100_v9 = vld [vmem:[#allocation15_spill] sm:$0xff] }
 0x2df   : > { %3119 = vmatpush1.bf16.msra.mxu0 %v6090_v26 }
 0x2e0   : > { %3120 = vmatprep.subr.bf16.mxu0 %v6091_v59 }
 0x2e3   : > { %3121 = vmatpush1.bf16.msra.mxu0 %v6092_v30  ;;  %v1898_v30 = vld [vmem:[%s5981_s3] sm:$0x3] }
 0x2e4   : > { %3122 = vmatprep.subr.bf16.mxu0 %v6093_v22  ;;  %v6115_v22 = vld [vmem:[#allocation4_spill] sm:$0xff] }
 0x2e7   : > { %3123 = vmatpush1.bf16.msra.mxu0 %v6094_v32  ;;  %v1903_v32 = vrot.slane %v1898_v30, %v6115_v22 }
 0x2e8   : > { %3124 = vmatprep.subr.bf16.mxu0 %v6095_v55  ;;  %v3887_v55 = vld [vmem:[%s4476_s27 + $0x30] sm:$0xff] }
 0x2eb   : > { %3125 = vmatpush1.bf16.msra.mxu0 %v6096_v61  ;;  %v6116_v61 = vld [vmem:[#allocation5_spill] sm:$0xff] }
 0x2ec   : > { %3126 = vmatprep.subr.bf16.mxu0 %v6097_v3  ;;  %v1907_v3 = vrot.slane %v1898_v30, %v6116_v61 }
 0x2ef   : > { %3127 = vmatpush1.bf16.msra.mxu0 %v6098_v5 }
 0x2f0   : > { %3128 = vmatprep.subr.bf16.mxu0 %v6099_v7  ;;  %v2603_v7 = vunpack.c.l.bf16 %v3887_v55 }
 0x2f3   : > { %3129 = vmatpush2.bf16.msra.mxu0 %v6100_v9 }
 0x2f4   : > { %3130 = vmatprep.subr.bf16.mxu0 %v6101_v33  ;;  %v2604_v33 = vunpack.c.h.bf16 %v3887_v55 }
 0x2f7   : > { %3131 = vmatpush2.bf16.msra.mxu0 %v6102_v34 }
 0x2f8   : > { %3132 = vmatprep.subr.bf16.mxu0 %v6103_v37 }
 0x2fb   : > { %3133 = vmatpush2.bf16.msra.mxu0 %v6104_v45  ;;  %v2143_v45 = vld [vmem:[%s5981_s3 + $0x2] sm:$0x3] }
 0x2fc   : > { %3134 = vmatprep.subr.bf16.mxu0 %v6105_v47 }
 0x2ff   : > { %3135 = vmatpush2.bf16.msra.mxu0 %v6106_v28  ;;  %v2148_v28 = vrot.slane %v2143_v45, %v6115_v22 }
 0x300   : > { %3136 = vmatprep.subr.bf16.mxu0 %v6107_v39 }
 0x303   : > { %3137 = vmatpush2.bf16.msra.mxu0 %v6108_v24  ;;  %v3890_v24 = vld [vmem:[%s4476_s27 + $0x38] sm:$0xff] }
 0x304   : > { %3138 = vmatprep.subr.bf16.mxu0 %v6109_v51  ;;  %v2152_v51 = vrot.slane %v2143_v45, %v6116_v61 }
 0x307   : > { %3139 = vmatpush2.bf16.msra.mxu0 %v6110_v13 }
 0x308   : > { %3140 = vmatprep.subr.bf16.mxu0 %v6111_v11  ;;  %v2620_v11 = vunpack.c.l.bf16 %v3890_v24 }
 0x30b   : > { %3141 = vmatpush2.bf16.msra.mxu0 %v6112_v17 }
 0x30c   : > { %3142 = vmatprep.subr.bf16.mxu0 %v6113_v56  ;;  %v2621_v56 = vunpack.c.h.bf16 %v3890_v24 }
 0x30f   : > { %3143 = vmatpush2.bf16.msra.mxu0 %v6114_v0 }
 0x352   : > { %v2104_v57 = vpop.f32.mrf.mxu0  ;;  %v2349_v21 = vpop.f32.mrf.mxu1 }
 0x353   : > { %v2105_v5 = vadd.f32 %v2104_v57, %v1903_v32  ;;  %v2350_v13 = vadd.f32 %v2349_v21, %v2148_v28  ;;  %v2388_v21 = vld [vmem:[%s5981_s3 + $0x4] sm:$0x3] }
 0x354   : > { %v2106_v25 = vpop.f32.mrf.mxu0  ;;  %v2351_v52 = vpop.f32.mrf.mxu1 }
 0x355   : > { %v2107_v9 = vadd.f32 %v2106_v25, %v1907_v3  ;;  %v2605_v34 = vadd.f32 %v2603_v7, %v2105_v5  ;;  %v2352_v17 = vadd.f32 %v2351_v52, %v2152_v51  ;;  %v2622_v0 = vadd.f32 %v2620_v11, %v2350_v13  ;;  %v3893_v3 = vld [vmem:[%s4476_s27 + $0x40] sm:$0xff] }
 0x356   : > { %v2108_v49 = vpop.f32.mrf.mxu0  ;;  %v2353_v19 = vpop.f32.mrf.mxu1  ;;  %v2393_v52 = vrot.slane %v2388_v21, %v6115_v22  ;;  %v2397_v7 = vrot.slane %v2388_v21, %v6116_v61  ;;  %v2640_v24 = vunpack.c.h.bf16 %v3893_v3 }
 0x357   : > { %v2606_v37 = vadd.f32 %v2604_v33, %v2107_v9  ;;  %v3888_v47 = vmul.f32 -1.442695, %v2605_v34  ;;  %v2623_v57 = vadd.f32 %v2621_v56, %v2352_v17  ;;  %v3891_v25 = vmul.f32 -1.442695, %v2622_v0 }
 0x358   : > { %v2109_v26 = vpop.f32.mrf.mxu0  ;;  %v2354_v59 = vpop.f32.mrf.mxu1 }
 0x359   : > { %v3889_v39 = vmul.f32 -1.442695, %v2606_v37  ;;  %4361 = vpow2.f32 %v3888_v47  ;;  %v3892_v49 = vmul.f32 -1.442695, %v2623_v57  ;;  %v2639_v37 = vunpack.c.l.bf16 %v3893_v3 }
 0x35b   : > { %4363 = vpow2.f32 %v3889_v39 }
 0x35c   : > { %4365 = vpow2.f32 %v3891_v25 }
 0x35d   : > { %4367 = vpow2.f32 %v3892_v49 }
 0x366   : > { %v4362_v19 = vpop.eup %4361 }
 0x367   : > { %v2613_v59 = vadd.f32 1.0, %v4362_v19 }
 0x368   : > { %v4364_v26 = vpop.eup %4363 }
 0x369   : > { %v2614_v30 = vadd.f32 1.0, %v4364_v26  ;;  %4369 = vrcp.f32 %v2613_v59  ;;  %v4366_v32 = vpop.eup %4365 }
 0x36a   : > { %v4368_v55 = vpop.eup %4367  ;;  %v2630_v5 = vadd.f32 1.0, %v4366_v32 }
 0x36b   : > { %4371 = vrcp.f32 %v2614_v30  ;;  %v2631_v33 = vadd.f32 1.0, %v4368_v55 }
 0x36c   : > { %4373 = vrcp.f32 %v2630_v5 }
 0x36d   : > { %4375 = vrcp.f32 %v2631_v33 }
 0x376   : > { %v4370_v45 = vpop.eup %4369 }
 0x378   : > { %v4372_v51 = vpop.eup %4371 }
 0x379   : > { %v4374_v57 = vpop.eup %4373 }
 0x37a   : > { %v4376_v25 = vpop.eup %4375  ;;  %v2645_v49 = vsub.f32 1.0, %v4374_v57  ;;  %v2649_v21 = vmul.f32 %v4374_v57, %v5620_v63 }
 0x37b   : > { %v2646_v26 = vsub.f32 1.0, %v4376_v25 }
 0x392   : > { %v2594_v9 = vpop.f32.mrf.mxu0 }
 0x393   : > { %v2595_v34 = vadd.f32 %v2594_v9, %v2393_v52  ;;  %v2650_v52 = vmul.f32 %v4376_v25, %v5622_v35 }
 0x394   : > { %v2596_v47 = vpop.f32.mrf.mxu0 }
 0x395   : > { %v2637_v28 = vmul.f32 %v4370_v45, %v2595_v34  ;;  %v2597_v39 = vadd.f32 %v2596_v47, %v2397_v7  ;;  %v3185_v45 = vld [vmem:[%s5981_s3 + $0x4] sm:$0x3] }
 0x396   : > { %v2598_v13 = vpop.f32.mrf.mxu0 }
 0x397   : > { %v2641_v11 = vadd.f32 %v2639_v37, %v2637_v28  ;;  %v2638_v17 = vmul.f32 %v4372_v51, %v2597_v39  ;;  %v3190_v28 = vrot.slane %v3185_v45, %v6115_v22  ;;  %v3194_v13 = vrot.slane %v3185_v45, %v6116_v61 }
 0x398   : > { %v2599_v56 = vpop.f32.mrf.mxu0 }
 0x399   : > { %4377 = vtanh.f32 %v2641_v11  ;;  %v2642_v0 = vadd.f32 %v2640_v24, %v2638_v17  ;;  %v3998_v24 = vld [vmem:[%s4476_s27 + $0x58] sm:$0xff] }
 0x39b   : > { %4379 = vtanh.f32 %v2642_v0  ;;  %v3436_v0 = vunpack.c.l.bf16 %v3998_v24 }
 0x3a6   : > { %v4378_v19 = vpop.eup %4377 }
 0x3a7   : > { %v2647_v59 = vmul.f32 %v4378_v19, %v2645_v49 }
 0x3a8   : > { %v4380_v30 = vpop.eup %4379 }
 0x3a9   : > { %v2648_v32 = vmul.f32 %v4380_v30, %v2646_v26  ;;  %v5906_v55 = vadd.f32 %v2649_v21, %v2647_v59  ;;  %v3437_v26 = vunpack.c.h.bf16 %v3998_v24 }
 0x3ab   : > { %v5908_v3 = vadd.f32 %v2650_v52, %v2648_v32  ;;  %v2653_v9 = vpack.c.bf16 %v5906_v55, %v5906_v55 }
 0x3ad   : > { %v2654_v5 = vpack.c.bf16 %v5908_v3, %v5908_v3  ;;  %v4006_v7 = vpack.c.bf16 %v5908_v3, %v5906_v55 }
 0x3af   : > { %2899 = vmatprep.mubr.bf16.mxu1 %v2654_v5  ;;  %3144 = vmatprep.mubr.bf16.mxu0 %v2654_v5  ;;  %3895 = vst [vmem:[%s4471_s24 + $0x10] sm:$0xff] %v4006_v7 }
 0x3b0   : > { %2900 = vmatmul.mubr.bf16.vlgmr.msra.gmra.mxu1 %v2653_v9  ;;  %3145 = vmatmul.mubr.bf16.vlgmr.msra.gmra.mxu0 %v2653_v9 }
 0x3b1   : > { %3358 = vmatpush1.bf16.msra.mxu1 %v5629_v12  ;;  %3389 = vmatprep.mubr.bf16.mxu1 %v2654_v5 }
 0x3b2   : > { %3359 = vmatprep.subr.bf16.mxu1 %v5640_v36 }
 0x3b5   : > { %3360 = vmatpush1.bf16.msra.mxu1 %v5649_v38 }
 0x3b6   : > { %3361 = vmatprep.subr.bf16.mxu1 %v5655_v20 }
 0x3b9   : > { %3362 = vmatpush1.bf16.msra.mxu1 %v5663_v41 }
 0x3ba   : > { %3363 = vmatprep.subr.bf16.mxu1 %v5669_v43 }
 0x3bd   : > { %3364 = vmatpush1.bf16.msra.mxu1 %v5677_v29  ;;  %v2695_v29 = vld [vmem:[%s5981_s3] sm:$0x3] }
 0x3be   : > { %3365 = vmatprep.subr.bf16.mxu1 %v5683_v60  ;;  %v2700_v60 = vrot.slane %v2695_v29, %v6115_v22 }
 0x3c1   : > { %3366 = vmatpush1.bf16.msra.mxu1 %v5691_v2  ;;  %v3992_v2 = vld [vmem:[%s4476_s27 + $0x48] sm:$0xff] }
 0x3c2   : > { %3367 = vmatprep.subr.bf16.mxu1 %v5697_v4  ;;  %v2704_v4 = vrot.slane %v2695_v29, %v6116_v61 }
 0x3c5   : > { %3368 = vmatpush1.bf16.msra.mxu1 %v5705_v6 }
 0x3c6   : > { %3369 = vmatprep.subr.bf16.mxu1 %v5711_v8  ;;  %v3400_v8 = vunpack.c.l.bf16 %v3992_v2 }
 0x3c9   : > { %3370 = vmatpush1.bf16.msra.mxu1 %v5719_v10 }
 0x3ca   : > { %3371 = vmatprep.subr.bf16.mxu1 %v5725_v14  ;;  %v3401_v14 = vunpack.c.h.bf16 %v3992_v2 }
 0x3cd   : > { %3372 = vmatpush1.bf16.msra.mxu1 %v5733_v18 }
 0x3ce   : > { %3373 = vmatprep.subr.bf16.mxu1 %v5739_v23 }
 0x3d1   : > { %3374 = vmatpush2.bf16.msra.mxu1 %v5747_v27  ;;  %v2940_v27 = vld [vmem:[%s5981_s3 + $0x2] sm:$0x3] }
 0x3d2   : > { %3375 = vmatprep.subr.bf16.mxu1 %v5753_v40 }
 0x3d5   : > { %3376 = vmatpush2.bf16.msra.mxu1 %v5761_v42  ;;  %v2945_v42 = vrot.slane %v2940_v27, %v6115_v22 }
 0x3d6   : > { %3377 = vmatprep.subr.bf16.mxu1 %v5767_v44 }
 0x3d9   : > { %3378 = vmatpush2.bf16.msra.mxu1 %v5775_v46  ;;  %v3995_v46 = vld [vmem:[%s4476_s27 + $0x50] sm:$0xff] }
 0x3da   : > { %3379 = vmatprep.subr.bf16.mxu1 %v5781_v48  ;;  %v2949_v48 = vrot.slane %v2940_v27, %v6116_v61 }
 0x3dd   : > { %3380 = vmatpush2.bf16.msra.mxu1 %v5789_v50 }
 0x3de   : > { %3381 = vmatprep.subr.bf16.mxu1 %v5795_v53  ;;  %v3417_v53 = vunpack.c.l.bf16 %v3995_v46 }
 0x3e1   : > { %3382 = vmatpush2.bf16.msra.mxu1 %v5803_v54 }
 0x3e2   : > { %3383 = vmatprep.subr.bf16.mxu1 %v5809_v58  ;;  %v3418_v58 = vunpack.c.h.bf16 %v3995_v46 }
 0x3e5   : > { %3384 = vmatpush2.bf16.msra.mxu1 %v5817_v62 }
 0x3e6   : > { %3385 = vmatprep.subr.bf16.mxu1 %v5823_v1 }
 0x3e9   : > { %3386 = vmatpush2.bf16.msra.mxu1 %v5831_v31 }
 0x3ea   : > { %3387 = vmatprep.subr.bf16.mxu1 %v5837_v15 }
 0x3ed   : > { %3388 = vmatpush2.bf16.msra.mxu1 %v5845_v16 }
 0x3f0   : > { %3390 = vmatmul.mubr.bf16.vlgmr.msra.gmra.mxu1 %v2653_v9 }
 0x470   : > { %v2901_v63 = vpop.f32.mrf.mxu1  ;;  %v3146_v35 = vpop.f32.mrf.mxu0 }
 0x471   : > { %v2902_v6 = vadd.f32 %v2901_v63, %v2700_v60  ;;  %v3147_v50 = vadd.f32 %v3146_v35, %v2945_v42 }
 0x472   : > { %v2903_v12 = vpop.f32.mrf.mxu1  ;;  %v3148_v36 = vpop.f32.mrf.mxu0 }
 0x473   : > { %v2904_v10 = vadd.f32 %v2903_v12, %v2704_v4  ;;  %v3402_v18 = vadd.f32 %v3400_v8, %v2902_v6  ;;  %v3149_v54 = vadd.f32 %v3148_v36, %v2949_v48  ;;  %v3419_v62 = vadd.f32 %v3417_v53, %v3147_v50 }
 0x474   : > { %v2905_v38 = vpop.f32.mrf.mxu1  ;;  %v3150_v20 = vpop.f32.mrf.mxu0 }
 0x475   : > { %v3403_v23 = vadd.f32 %v3401_v14, %v2904_v10  ;;  %v3993_v40 = vmul.f32 -1.442695, %v3402_v18  ;;  %v3420_v1 = vadd.f32 %v3418_v58, %v3149_v54  ;;  %v3996_v31 = vmul.f32 -1.442695, %v3419_v62 }
 0x476   : > { %v2906_v41 = vpop.f32.mrf.mxu1  ;;  %v3151_v43 = vpop.f32.mrf.mxu0 }
 0x477   : > { %v3994_v44 = vmul.f32 -1.442695, %v3403_v23  ;;  %4381 = vpow2.f32 %v3993_v40  ;;  %v3997_v15 = vmul.f32 -1.442695, %v3420_v1 }
 0x479   : > { %4383 = vpow2.f32 %v3994_v44 }
 0x47a   : > { %4385 = vpow2.f32 %v3996_v31 }
 0x47b   : > { %4387 = vpow2.f32 %v3997_v15 }
 0x484   : > { %v4382_v16 = vpop.eup %4381 }
 0x485   : > { %v3410_v34 = vadd.f32 1.0, %v4382_v16 }
 0x486   : > { %v4384_v33 = vpop.eup %4383 }
 0x487   : > { %v3411_v37 = vadd.f32 1.0, %v4384_v33  ;;  %4389 = vrcp.f32 %v3410_v34  ;;  %v4386_v47 = vpop.eup %4385 }
 0x488   : > { %v4388_v39 = vpop.eup %4387  ;;  %v3427_v51 = vadd.f32 1.0, %v4386_v47 }
 0x489   : > { %4391 = vrcp.f32 %v3411_v37  ;;  %v3428_v17 = vadd.f32 1.0, %v4388_v39 }
 0x48a   : > { %4393 = vrcp.f32 %v3427_v51 }
 0x48b   : > { %4395 = vrcp.f32 %v3428_v17 }
 0x494   : > { %v4390_v57 = vpop.eup %4389 }
 0x496   : > { %v4392_v59 = vpop.eup %4391 }
 0x497   : > { %v4394_v61 = vpop.eup %4393 }
 0x498   : > { %v4396_v5 = vpop.eup %4395  ;;  %v3442_v7 = vsub.f32 1.0, %v4394_v61  ;;  %v3446_v63 = vmul.f32 %v4394_v61, %v5906_v55 }
 0x499   : > { %v3443_v12 = vsub.f32 1.0, %v4396_v5  ;;  %v3447_v38 = vmul.f32 %v4396_v5, %v5908_v3 }
 0x4b0   : > { %v3391_v11 = vpop.f32.mrf.mxu1 }
 0x4b1   : > { %v3392_v56 = vadd.f32 %v3391_v11, %v3190_v28 }
 0x4b2   : > { %v3393_v25 = vpop.f32.mrf.mxu1 }
 0x4b3   : > { %v3434_v49 = vmul.f32 %v4390_v57, %v3392_v56  ;;  %v3394_v19 = vadd.f32 %v3393_v25, %v3194_v13 }
 0x4b4   : > { %v3395_v30 = vpop.f32.mrf.mxu1 }
 0x4b5   : > { %v3438_v21 = vadd.f32 %v3436_v0, %v3434_v49  ;;  %v3435_v22 = vmul.f32 %v4392_v59, %v3394_v19 }
 0x4b6   : > { %v3396_v32 = vpop.f32.mrf.mxu1 }
 0x4b7   : > { %4397 = vtanh.f32 %v3438_v21  ;;  %v3439_v52 = vadd.f32 %v3437_v26, %v3435_v22 }
 0x4b9   : > { %4399 = vtanh.f32 %v3439_v52 }
 0x4c4   : > { %v4398_v9 = vpop.eup %4397 }
 0x4c5   : > { %v3444_v35 = vmul.f32 %v4398_v9, %v3442_v7 }
 0x4c6   : > { %v4400_v36 = vpop.eup %4399 }
 0x4c7   : > { %v3448_v20 = vadd.f32 %v3446_v63, %v3444_v35  ;;  %v3445_v41 = vmul.f32 %v4400_v36, %v3443_v12 }
 0x4c9   : > { %3460 = vst [vmem:[#allocation2] sm:$0xff] %v3448_v20  ;;  %v3449_v43 = vadd.f32 %v3447_v38, %v3445_v41 }
 0x4cb   : > { %v4007_v29 = vpack.c.bf16 %v3449_v43, %v3448_v20  ;;  %3461 = vst [vmem:[#allocation2 + $0x8] sm:$0xff] %v3449_v43 }
 0x4cd   : > { %4000 = vst [vmem:[%s4471_s24 + $0x18] sm:$0xff] %v4007_v29 }
 0x4ce PF: > { %s14_s17 = sadd.s32 1, %s4423_s17   ;;  %s6117_s15 = smov %s4419_s16 }
 0x4cf   : > { %p11_p6 = scmp.ge.s32.totalorder %s14_s17, 4   ;;  %s6118_s16 = smov %s6120_s18 }
 0x4d1   :  { %13 = sbr.rel (!%p11_p6) target bundleno = 2 (0x2), region = 79 }

// kernel: rssm_forward.3
= control target key start
LH: loop header
LB: loop body
LE: loop exit
PB: predicated region body
PF: predicated region fallthrough
CT: control target
= control target key end

     0   :  { %s2870_s2 = inlined_call_operand.vmem [shape: bf16[256,256], index: 2, kind: input, shape index: {}]   ;;  %s2871_s0 = inlined_call_operand.vmem [shape: bf16[64,256], index: 0, kind: input, shape index: {}]   ;;  %s2872_s4 = inlined_call_operand.vmem [shape: bf16[256,256], index: 4, kind: input, shape index: {}]   ;;  %s2873_s7 = inlined_call_operand.vmem [shape: bf16[256,256], index: 7, kind: input, shape index: {}]   ;;  %s2874_s6 = inlined_call_operand.vmem [shape: bf16[256,256], index: 6, kind: input, shape index: {}]   ;;  %s2875_s1 = inlined_call_operand.vmem [shape: bf16[64,256], index: 1, kind: input, shape index: {}]   ;;  %s2876_s3 = inlined_call_operand.vmem [shape: f32[1,256], index: 3, kind: input, shape index: {}]   ;;  %s2877_s9 = inlined_call_operand.vmem [shape: bf16[256,256], index: 9, kind: input, shape index: {}]   ;;  %s2878_s5 = inlined_call_operand.vmem [shape: f32[1,256], index: 5, kind: input, shape index: {}]   ;;  %s2879_s11 = inlined_call_operand.vmem [shape: f32[64,256], index: 11, kind: output, shape index: {0}]   ;;  %s2880_s8 = inlined_call_operand.vmem [shape: f32[1,256], index: 8, kind: input, shape index: {}]   ;;  %s2881_s10 = inlined_call_operand.vmem [shape: f32[1,256], index: 10, kind: input, shape index: {}]   ;;  %s2882_s12 = inlined_call_operand.vmem [shape: f32[64,256], index: 12, kind: output, shape index: {1}]  }
   0x1   :  { %v1821_v0 = vld [vmem:[%s2870_s2 + $0x74] ss:$8 sps:$4 sm:$0xff]   ;;  %v1823_v1 = vld [vmem:[%s2870_s2 + $0x70] ss:$8 sps:$4 sm:$0xff]   ;;  %v1824_v2 = vld [vmem:[%s2870_s2 + $0x64] ss:$8 sps:$4 sm:$0xff]  }
   0x2   :  { %292 = vmatprep.subr.bf16.mxu0 %v1821_v0  ;;  %v1826_v3 = vld [vmem:[%s2870_s2 + $0x60] ss:$8 sps:$4 sm:$0xff]   ;;  %v1827_v4 = vld [vmem:[%s2870_s2 + $0x54] ss:$8 sps:$4 sm:$0xff]   ;;  %v1829_v5 = vld [vmem:[%s2870_s2 + $0x50] ss:$8 sps:$4 sm:$0xff]  }
   0x3   :  { %293 = vmatpush1.bf16.msra.mxu0 %v1823_v1  ;;  %v1830_v6 = vld [vmem:[%s2870_s2 + $0x44] ss:$8 sps:$4 sm:$0xff]   ;;  %v1832_v7 = vld [vmem:[%s2870_s2 + $0x40] ss:$8 sps:$4 sm:$0xff]   ;;  %v1833_v8 = vld [vmem:[%s2870_s2 + $0x34] ss:$8 sps:$4 sm:$0xff]  }
   0x4   :  { %294 = vmatprep.subr.bf16.mxu0 %v1824_v2  ;;  %v1835_v9 = vld [vmem:[%s2870_s2 + $0x30] ss:$8 sps:$4 sm:$0xff]   ;;  %v1836_v10 = vld [vmem:[%s2870_s2 + $0x24] ss:$8 sps:$4 sm:$0xff]   ;;  %v1838_v11 = vld [vmem:[%s2870_s2 + $0x20] ss:$8 sps:$4 sm:$0xff]  }
   0x5   :  { %v1839_v12 = vld [vmem:[%s2870_s2 + $0x14] ss:$8 sps:$4 sm:$0xff]   ;;  %v2192_v13 = vld [vmem:[%s2871_s0 + $0x4] ss:$8 sps:$4 sm:$0xff]   ;;  %v1841_v14 = vld [vmem:[%s2870_s2 + $0x10] ss:$8 sps:$4 sm:$0xff]  }
   0x6   :  { %v1842_v15 = vld [vmem:[%s2870_s2 + $0x4] ss:$8 sps:$4 sm:$0xff]   ;;  %324 = vmatprep.mubr.bf16.mxu0 %v2192_v13  ;;  %v1844_v16 = vld [vmem:[%s2870_s2] ss:$8 sps:$4 sm:$0xff]   ;;  %v1845_v17 = vld [vmem:[%s2870_s2 + $0xf4] ss:$8 sps:$4 sm:$0xff]  }
   0x7   :  { %295 = vmatpush1.bf16.msra.mxu0 %v1826_v3  ;;  %v1881_v18 = vld [vmem:[%s2872_s4 + $0x74] ss:$8 sps:$4 sm:$0xff]   ;;  %v1883_v19 = vld [vmem:[%s2872_s4 + $0x70] ss:$8 sps:$4 sm:$0xff]   ;;  %v1884_v20 = vld [vmem:[%s2872_s4 + $0x64] ss:$8 sps:$4 sm:$0xff]  }
   0x8   :  { %296 = vmatprep.subr.bf16.mxu0 %v1827_v4  ;;  %593 = vmatprep.subr.bf16.mxu1 %v1881_v18  ;;  %v1886_v21 = vld [vmem:[%s2872_s4 + $0x60] ss:$8 sps:$4 sm:$0xff]   ;;  %v1847_v22 = vld [vmem:[%s2870_s2 + $0xf0] ss:$8 sps:$4 sm:$0xff]   ;;  %v1887_v23 = vld [vmem:[%s2872_s4 + $0x54] ss:$8 sps:$4 sm:$0xff]  }
   0x9   :  { %594 = vmatpush1.bf16.msra.mxu1 %v1883_v19  ;;  %v1848_v24 = vld [vmem:[%s2870_s2 + $0xe4] ss:$8 sps:$4 sm:$0xff]   ;;  %v1889_v25 = vld [vmem:[%s2872_s4 + $0x50] ss:$8 sps:$4 sm:$0xff]   ;;  %v1850_v26 = vld [vmem:[%s2870_s2 + $0xe0] ss:$8 sps:$4 sm:$0xff]  }
   0xa   :  { %595 = vmatprep.subr.bf16.mxu1 %v1884_v20  ;;  %v1890_v27 = vld [vmem:[%s2872_s4 + $0x44] ss:$8 sps:$4 sm:$0xff]   ;;  %v1851_v28 = vld [vmem:[%s2870_s2 + $0xd4] ss:$8 sps:$4 sm:$0xff]   ;;  %v1892_v29 = vld [vmem:[%s2872_s4 + $0x40] ss:$8 sps:$4 sm:$0xff]  }
   0xb   :  { %297 = vmatpush1.bf16.msra.mxu0 %v1829_v5  ;;  %v1853_v30 = vld [vmem:[%s2870_s2 + $0xd0] ss:$8 sps:$4 sm:$0xff]   ;;  %v1893_v31 = vld [vmem:[%s2872_s4 + $0x34] ss:$8 sps:$4 sm:$0xff]   ;;  %v1854_v32 = vld [vmem:[%s2870_s2 + $0xc4] ss:$8 sps:$4 sm:$0xff]  }
   0xc   :  { %298 = vmatprep.subr.bf16.mxu0 %v1830_v6  ;;  %v1895_v33 = vld [vmem:[%s2872_s4 + $0x30] ss:$8 sps:$4 sm:$0xff]   ;;  %v1856_v34 = vld [vmem:[%s2870_s2 + $0xc0] ss:$8 sps:$4 sm:$0xff]   ;;  %v1896_v35 = vld [vmem:[%s2872_s4 + $0x24] ss:$8 sps:$4 sm:$0xff]  }
   0xd   :  { %596 = vmatpush1.bf16.msra.mxu1 %v1886_v21  ;;  %v1857_v36 = vld [vmem:[%s2870_s2 + $0xb4] ss:$8 sps:$4 sm:$0xff]   ;;  %v1898_v37 = vld [vmem:[%s2872_s4 + $0x20] ss:$8 sps:$4 sm:$0xff]   ;;  %v1859_v38 = vld [vmem:[%s2870_s2 + $0xb0] ss:$8 sps:$4 sm:$0xff]  }
   0xe   :  { %597 = vmatprep.subr.bf16.mxu1 %v1887_v23  ;;  %v1899_v39 = vld [vmem:[%s2872_s4 + $0x14] ss:$8 sps:$4 sm:$0xff]   ;;  %v1860_v40 = vld [vmem:[%s2870_s2 + $0xa4] ss:$8 sps:$4 sm:$0xff]   ;;  %v1901_v41 = vld [vmem:[%s2872_s4 + $0x10] ss:$8 sps:$4 sm:$0xff]  }
   0xf   :  { %299 = vmatpush1.bf16.msra.mxu0 %v1832_v7  ;;  %v1862_v42 = vld [vmem:[%s2870_s2 + $0xa0] ss:$8 sps:$4 sm:$0xff]   ;;  %v1902_v43 = vld [vmem:[%s2872_s4 + $0x4] ss:$8 sps:$4 sm:$0xff]   ;;  %v1863_v44 = vld [vmem:[%s2870_s2 + $0x94] ss:$8 sps:$4 sm:$0xff]  }
  0x10   :  { %300 = vmatprep.subr.bf16.mxu0 %v1833_v8  ;;  %v1904_v45 = vld [vmem:[%s2872_s4] ss:$8 sps:$4 sm:$0xff]   ;;  %v1865_v46 = vld [vmem:[%s2870_s2 + $0x90] ss:$8 sps:$4 sm:$0xff]   ;;  %v1905_v47 = vld [vmem:[%s2872_s4 + $0xf4] ss:$8 sps:$4 sm:$0xff]  }
  0x11   :  { %598 = vmatpush1.bf16.msra.mxu1 %v1889_v25  ;;  %v1866_v48 = vld [vmem:[%s2870_s2 + $0x84] ss:$8 sps:$4 sm:$0xff]   ;;  %v1907_v49 = vld [vmem:[%s2872_s4 + $0xf0] ss:$8 sps:$4 sm:$0xff]   ;;  %v1868_v50 = vld [vmem:[%s2870_s2 + $0x80] ss:$8 sps:$4 sm:$0xff]  }
  0x12   :  { %599 = vmatprep.subr.bf16.mxu1 %v1890_v27  ;;  %v1908_v51 = vld [vmem:[%s2872_s4 + $0xe4] ss:$8 sps:$4 sm:$0xff]   ;;  %v2312_v52 = vld [vmem:[%s2871_s0] ss:$8 sps:$4 sm:$0xff]   ;;  %v2320_v54 = vld [vmem:[%s2871_s0 + $0x14] ss:$8 sps:$4 sm:$0xff]  }
  0x13   :  { %301 = vmatpush1.bf16.msra.mxu0 %v1835_v9  ;;  %v1910_v53 = vld [vmem:[%s2872_s4 + $0xe0] ss:$8 sps:$4 sm:$0xff]   ;;  %v1911_v55 = vld [vmem:[%s2872_s4 + $0xd4] ss:$8 sps:$4 sm:$0xff]   ;;  %v1913_v56 = vld [vmem:[%s2872_s4 + $0xd0] ss:$8 sps:$4 sm:$0xff]  }
  0x14   :  { %302 = vmatprep.subr.bf16.mxu0 %v1836_v10  ;;  %v1914_v57 = vld [vmem:[%s2872_s4 + $0xc4] ss:$8 sps:$4 sm:$0xff]   ;;  %v2336_v58 = vld [vmem:[%s2871_s0 + $0x10] ss:$8 sps:$4 sm:$0xff]   ;;  %v1916_v59 = vld [vmem:[%s2872_s4 + $0xc0] ss:$8 sps:$4 sm:$0xff]  }
  0x15   :  { %600 = vmatpush1.bf16.msra.mxu1 %v1892_v29  ;;  %v2344_v60 = vld [vmem:[%s2871_s0 + $0x24] ss:$8 sps:$4 sm:$0xff]   ;;  %v1917_v61 = vld [vmem:[%s2872_s4 + $0xb4] ss:$8 sps:$4 sm:$0xff]   ;;  %v1919_v62 = vld [vmem:[%s2872_s4 + $0xb0] ss:$8 sps:$4 sm:$0xff]  }
  0x16   :  { %601 = vmatprep.subr.bf16.mxu1 %v1893_v31  ;;  %v2357_v63 = vld [vmem:[%s2871_s0 + $0x20] ss:$8 sps:$4 sm:$0xff]   ;;  %v2362_v0 = vld [vmem:[%s2871_s0 + $0x34] ss:$8 sps:$4 sm:$0xff]   ;;  %v2369_v1 = vld [vmem:[%s2871_s0 + $0x30] ss:$8 sps:$4 sm:$0xff]  }
  0x17   :  { %303 = vmatpush1.bf16.msra.mxu0 %v1838_v11  ;;  %v1920_v2 = vld [vmem:[%s2872_s4 + $0xa4] ss:$8 sps:$4 sm:$0xff]   ;;  %v1922_v3 = vld [vmem:[%s2872_s4 + $0xa0] ss:$8 sps:$4 sm:$0xff]   ;;  %v1923_v4 = vld [vmem:[%s2872_s4 + $0x94] ss:$8 sps:$4 sm:$0xff]  }
  0x18   :  { %304 = vmatprep.subr.bf16.mxu0 %v1839_v12  ;;  %v1925_v5 = vld [vmem:[%s2872_s4 + $0x90] ss:$8 sps:$4 sm:$0xff]   ;;  %v1928_v6 = vld [vmem:[%s2873_s7 + $0x74] ss:$8 sps:$4 sm:$0xff]   ;;  %v1929_v8 = vld [vmem:[%s2872_s4 + $0x84] ss:$8 sps:$4 sm:$0xff]  }
  0x19   :  { %602 = vmatpush1.bf16.msra.mxu1 %v1895_v33  ;;  %v1926_v7 = vld [vmem:[%s2873_s7 + $0x70] ss:$8 sps:$4 sm:$0xff]   ;;  %v1931_v9 = vld [vmem:[%s2872_s4 + $0x80] ss:$8 sps:$4 sm:$0xff]   ;;  %v1934_v11 = vld [vmem:[%s2873_s7 + $0x64] ss:$8 sps:$4 sm:$0xff]  }
  0x1a   :  { %603 = vmatprep.subr.bf16.mxu1 %v1896_v35  ;;  %v1932_v10 = vld [vmem:[%s2873_s7 + $0x60] ss:$8 sps:$4 sm:$0xff]   ;;  %v1937_v12 = vld [vmem:[%s2874_s6 + $0x74] ss:$8 sps:$4 sm:$0xff]   ;;  %v1950_v19 = vld [vmem:[%s2873_s7 + $0x30] ss:$8 sps:$4 sm:$0xff]  }
  0x1b   :  { %305 = vmatpush1.bf16.msra.mxu0 %v1841_v14  ;;  %v1940_v14 = vld [vmem:[%s2873_s7 + $0x54] ss:$8 sps:$4 sm:$0xff]   ;;  %v1958_v20 = vld [vmem:[%s2873_s7 + $0x24] ss:$8 sps:$4 sm:$0xff]   ;;  %v1956_v21 = vld [vmem:[%s2873_s7 + $0x20] ss:$8 sps:$4 sm:$0xff]  }
  0x1c   :  { %306 = vmatprep.subr.bf16.mxu0 %v1842_v15  ;;  %v1938_v15 = vld [vmem:[%s2873_s7 + $0x50] ss:$8 sps:$4 sm:$0xff]   ;;  %v1952_v18 = vld [vmem:[%s2873_s7 + $0x34] ss:$8 sps:$4 sm:$0xff]   ;;  %v1968_v25 = vld [vmem:[%s2873_s7] ss:$8 sps:$4 sm:$0xff]  }
  0x1d   :  { %604 = vmatpush1.bf16.msra.mxu1 %v1898_v37  ;;  %v1962_v23 = vld [vmem:[%s2873_s7 + $0x10] ss:$8 sps:$4 sm:$0xff]   ;;  %v1980_v29 = vld [vmem:[%s2873_s7 + $0xe0] ss:$8 sps:$4 sm:$0xff]  }
  0x1e   :  { %605 = vmatprep.subr.bf16.mxu1 %v1899_v39  ;;  %v1974_v27 = vld [vmem:[%s2873_s7 + $0xf0] ss:$8 sps:$4 sm:$0xff]   ;;  %v1992_v33 = vld [vmem:[%s2873_s7 + $0xc0] ss:$8 sps:$4 sm:$0xff]  }
  0x1f   :  { %307 = vmatpush1.bf16.msra.mxu0 %v1844_v16  ;;  %v1946_v16 = vld [vmem:[%s2873_s7 + $0x44] ss:$8 sps:$4 sm:$0xff]   ;;  %v1986_v31 = vld [vmem:[%s2873_s7 + $0xd0] ss:$8 sps:$4 sm:$0xff]   ;;  %v2004_v37 = vld [vmem:[%s2873_s7 + $0xa0] ss:$8 sps:$4 sm:$0xff]  }
  0x20   :  { %308 = vmatprep.subr.bf16.mxu0 %v1845_v17  ;;  %v1944_v17 = vld [vmem:[%s2873_s7 + $0x40] ss:$8 sps:$4 sm:$0xff]   ;;  %v1998_v35 = vld [vmem:[%s2873_s7 + $0xb0] ss:$8 sps:$4 sm:$0xff]  }
  0x21   :  { %606 = vmatpush1.bf16.msra.mxu1 %v1901_v41  ;;  %v2010_v39 = vld [vmem:[%s2873_s7 + $0x90] ss:$8 sps:$4 sm:$0xff]   ;;  %v2016_v41 = vld [vmem:[%s2873_s7 + $0x80] ss:$8 sps:$4 sm:$0xff]  }
  0x22   :  { %607 = vmatprep.subr.bf16.mxu1 %v1902_v43  ;;  %v2024_v43 = vld [vmem:[%s2875_s1 + $0x4] ss:$8 sps:$4 sm:$0xff]  }
  0x23   :  { %309 = vmatpush2.bf16.msra.mxu0 %v1847_v22  ;;  %v1964_v22 = vld [vmem:[%s2873_s7 + $0x14] ss:$8 sps:$4 sm:$0xff]  }
  0x24   :  { %310 = vmatprep.subr.bf16.mxu0 %v1848_v24  ;;  %v1970_v24 = vld [vmem:[%s2873_s7 + $0x4] ss:$8 sps:$4 sm:$0xff]  }
  0x25   :  { %608 = vmatpush1.bf16.msra.mxu1 %v1904_v45  ;;  %v2030_v45 = vld [vmem:[%s2875_s1 + $0x10] ss:$8 sps:$4 sm:$0xff]  }
  0x26   :  { %609 = vmatprep.subr.bf16.mxu1 %v1905_v47  ;;  %v2033_v47 = vld [vmem:[%s2875_s1 + $0x20] ss:$8 sps:$4 sm:$0xff]  }
  0x27   :  { %311 = vmatpush2.bf16.msra.mxu0 %v1850_v26  ;;  %v1976_v26 = vld [vmem:[%s2873_s7 + $0xf4] ss:$8 sps:$4 sm:$0xff]  }
  0x28   :  { %312 = vmatprep.subr.bf16.mxu0 %v1851_v28  ;;  %v1982_v28 = vld [vmem:[%s2873_s7 + $0xe4] ss:$8 sps:$4 sm:$0xff]  }
  0x29   :  { %610 = vmatpush2.bf16.msra.mxu1 %v1907_v49  ;;  %v2036_v49 = vld [vmem:[%s2875_s1 + $0x30] ss:$8 sps:$4 sm:$0xff]  }
  0x2a   :  { %611 = vmatprep.subr.bf16.mxu1 %v1908_v51 }
  0x2b   :  { %313 = vmatpush2.bf16.msra.mxu0 %v1853_v30  ;;  %v1988_v30 = vld [vmem:[%s2873_s7 + $0xd4] ss:$8 sps:$4 sm:$0xff]  }
  0x2c   :  { %314 = vmatprep.subr.bf16.mxu0 %v1854_v32  ;;  %v1994_v32 = vld [vmem:[%s2873_s7 + $0xc4] ss:$8 sps:$4 sm:$0xff]  }
  0x2d   :  { %612 = vmatpush2.bf16.msra.mxu1 %v1910_v53 }
  0x2e   :  { %613 = vmatprep.subr.bf16.mxu1 %v1911_v55 }
  0x2f   :  { %315 = vmatpush2.bf16.msra.mxu0 %v1856_v34  ;;  %v2000_v34 = vld [vmem:[%s2873_s7 + $0xb4] ss:$8 sps:$4 sm:$0xff]  }
  0x30   :  { %316 = vmatprep.subr.bf16.mxu0 %v1857_v36  ;;  %v2006_v36 = vld [vmem:[%s2873_s7 + $0xa4] ss:$8 sps:$4 sm:$0xff]  }
  0x31   :  { %614 = vmatpush2.bf16.msra.mxu1 %v1913_v56  ;;  %v80_v56 = vld [vmem:[%s2876_s3] sm:$0x3] }
  0x32   :  { %615 = vmatprep.subr.bf16.mxu1 %v1914_v57 }
  0x33   :  { %317 = vmatpush2.bf16.msra.mxu0 %v1859_v38  ;;  %v2012_v38 = vld [vmem:[%s2873_s7 + $0x94] ss:$8 sps:$4 sm:$0xff]  }
  0x34   :  { %318 = vmatprep.subr.bf16.mxu0 %v1860_v40  ;;  %v2018_v40 = vld [vmem:[%s2873_s7 + $0x84] ss:$8 sps:$4 sm:$0xff]  }
  0x35   :  { %616 = vmatpush2.bf16.msra.mxu1 %v1916_v59 }
  0x36   :  { %617 = vmatprep.subr.bf16.mxu1 %v1917_v61 }
  0x37   :  { %319 = vmatpush2.bf16.msra.mxu0 %v1862_v42  ;;  %v2022_v42 = vld [vmem:[%s2875_s1] ss:$8 sps:$4 sm:$0xff]  }
  0x38   :  { %320 = vmatprep.subr.bf16.mxu0 %v1863_v44  ;;  %v2028_v44 = vld [vmem:[%s2875_s1 + $0x14] ss:$8 sps:$4 sm:$0xff]  }
  0x39   :  { %618 = vmatpush2.bf16.msra.mxu1 %v1919_v62 }
  0x3a   :  { %619 = vmatprep.subr.bf16.mxu1 %v1920_v2 }
  0x3b   :  { %321 = vmatpush2.bf16.msra.mxu0 %v1865_v46  ;;  %v2031_v46 = vld [vmem:[%s2875_s1 + $0x24] ss:$8 sps:$4 sm:$0xff]  }
  0x3c   :  { %322 = vmatprep.subr.bf16.mxu0 %v1866_v48  ;;  %v2034_v48 = vld [vmem:[%s2875_s1 + $0x34] ss:$8 sps:$4 sm:$0xff]  }
  0x3d   :  { %620 = vmatpush2.bf16.msra.mxu1 %v1922_v3 }
  0x3e   :  { %621 = vmatprep.subr.bf16.mxu1 %v1923_v4 }
  0x3f   :  { %323 = vmatpush2.bf16.msra.mxu0 %v1868_v50  ;;  %v82_v50 = vlaneseq }
  0x40   :  { %954 = vmatprep.subr.bf16.mxu0 %v1928_v6 }
  0x41   :  { %622 = vmatpush2.bf16.msra.mxu1 %v1925_v5  ;;  %v83_v51 = vshrl.u32 %v82_v50, 7 }
  0x42   :  { %325 = vmatmul.mubr.bf16.vlgmr.msra.gmra.mxu0 %v2312_v52  ;;  %623 = vmatprep.subr.bf16.mxu1 %v1929_v8 }
  0x43   :  { %334 = vmatprep.mubr.bf16.mxu0 %v2320_v54  ;;  %955 = vmatpush1.bf16.msra.mxu0 %v1926_v7  ;;  %v2513_v53 = vsub.s32 1, %v83_v51  ;;  %v2515_v55 = vsub.s32 0, %v83_v51 }
  0x44   :  { %956 = vmatprep.subr.bf16.mxu0 %v1934_v11 }
  0x45   :  { %624 = vmatpush2.bf16.msra.mxu1 %v1931_v9  ;;  %v2521_v59 = vrot.slane %v80_v56, %v2513_v53  ;;  %v2524_v61 = vrot.slane %v80_v56, %v2515_v55 }
  0x46   :  { %1187 = vmatprep.subr.bf16.mxu1 %v1937_v12 }
  0x47   :  { %957 = vmatpush1.bf16.msra.mxu0 %v1932_v10 }
  0x48   :  { %958 = vmatprep.subr.bf16.mxu0 %v1940_v14 }
  0x4a   :  { %335 = vmatmul.mubr.bf16.gmra.mxu0 %v2336_v58 }
  0x4b   :  { %344 = vmatprep.mubr.bf16.mxu0 %v2344_v60  ;;  %959 = vmatpush1.bf16.msra.mxu0 %v1938_v15 }
  0x4c   :  { %960 = vmatprep.subr.bf16.mxu0 %v1946_v16 }
  0x4f   :  { %961 = vmatpush1.bf16.msra.mxu0 %v1944_v17  ;;  %v1935_v17 = vld [vmem:[%s2874_s6 + $0x70] ss:$8 sps:$4 sm:$0xff]  }
  0x50   :  { %962 = vmatprep.subr.bf16.mxu0 %v1952_v18 }
  0x52   :  { %345 = vmatmul.mubr.bf16.gmra.mxu0 %v2357_v63 }
  0x53   :  { %354 = vmatprep.mubr.bf16.mxu0 %v2362_v0  ;;  %963 = vmatpush1.bf16.msra.mxu0 %v1950_v19 }
  0x54   :  { %964 = vmatprep.subr.bf16.mxu0 %v1958_v20  ;;  %v1943_v20 = vld [vmem:[%s2874_s6 + $0x64] ss:$8 sps:$4 sm:$0xff]  }
  0x57   :  { %965 = vmatpush1.bf16.msra.mxu0 %v1956_v21 }
  0x58   :  { %966 = vmatprep.subr.bf16.mxu0 %v1964_v22 }
  0x5a   :  { %355 = vmatmul.mubr.bf16.gmra.mxu0 %v2369_v1 }
  0x5b   :  { %967 = vmatpush1.bf16.msra.mxu0 %v1962_v23  ;;  %986 = vmatprep.mubr.bf16.mxu0 %v2024_v43  ;;  %v1953_v43 = vld [vmem:[%s2874_s6 + $0x40] ss:$8 sps:$4 sm:$0xff]  }
  0x5c   :  { %968 = vmatprep.subr.bf16.mxu0 %v1970_v24 }
  0x5f   :  { %969 = vmatpush1.bf16.msra.mxu0 %v1968_v25  ;;  %v1941_v25 = vld [vmem:[%s2874_s6 + $0x60] ss:$8 sps:$4 sm:$0xff]  }
  0x60   :  { %970 = vmatprep.subr.bf16.mxu0 %v1976_v26 }
  0x63   :  { %971 = vmatpush2.bf16.msra.mxu0 %v1974_v27 }
  0x64   :  { %972 = vmatprep.subr.bf16.mxu0 %v1982_v28 }
  0x67   :  { %973 = vmatpush2.bf16.msra.mxu0 %v1980_v29  ;;  %v1949_v29 = vld [vmem:[%s2874_s6 + $0x54] ss:$8 sps:$4 sm:$0xff]  }
  0x68   :  { %974 = vmatprep.subr.bf16.mxu0 %v1988_v30 }
  0x6b   :  { %975 = vmatpush2.bf16.msra.mxu0 %v1986_v31 }
  0x6c   :  { %976 = vmatprep.subr.bf16.mxu0 %v1994_v32 }
  0x6f   :  { %977 = vmatpush2.bf16.msra.mxu0 %v1992_v33 }
  0x70   :  { %978 = vmatprep.subr.bf16.mxu0 %v2000_v34 }
  0x73   :  { %979 = vmatpush2.bf16.msra.mxu0 %v1998_v35  ;;  %v1947_v35 = vld [vmem:[%s2874_s6 + $0x50] ss:$8 sps:$4 sm:$0xff]  }
  0x74   :  { %980 = vmatprep.subr.bf16.mxu0 %v2006_v36 }
  0x77   :  { %981 = vmatpush2.bf16.msra.mxu0 %v2004_v37 }
  0x78   :  { %982 = vmatprep.subr.bf16.mxu0 %v2012_v38  ;;  %v1955_v38 = vld [vmem:[%s2874_s6 + $0x44] ss:$8 sps:$4 sm:$0xff]  }
  0x7b   :  { %983 = vmatpush2.bf16.msra.mxu0 %v2010_v39 }
  0x7c   :  { %984 = vmatprep.subr.bf16.mxu0 %v2018_v40 }
  0x7f   :  { %985 = vmatpush2.bf16.msra.mxu0 %v2016_v41 }
  0x82   :  { %987 = vmatmul.mubr.bf16.vlgmr.msra.gmra.mxu0 %v2022_v42 }
  0x83   :  { %996 = vmatprep.mubr.bf16.mxu0 %v2028_v44 }
  0x8a   :  { %997 = vmatmul.mubr.bf16.gmra.mxu0 %v2030_v45 }
  0x8b   :  { %1006 = vmatprep.mubr.bf16.mxu0 %v2031_v46 }
  0x92   :  { %1007 = vmatmul.mubr.bf16.gmra.mxu0 %v2033_v47  ;;  %v1961_v47 = vld [vmem:[%s2874_s6 + $0x34] ss:$8 sps:$4 sm:$0xff]  }
  0x93   :  { %1016 = vmatprep.mubr.bf16.mxu0 %v2034_v48 }
  0x9a   :  { %1017 = vmatmul.mubr.bf16.gmra.mxu0 %v2036_v49 }
 0x102   :  { %v326_v57 = vpop.f32.mrf.mxu0 }
 0x103   :  { %v327_v5 = vadd.f32 %v326_v57, %v2524_v61  ;;  %v1959_v57 = vld [vmem:[%s2874_s6 + $0x30] ss:$8 sps:$4 sm:$0xff]  }
 0x104   :  { %v328_v62 = vpop.f32.mrf.mxu0 }
 0x105   :  { %v329_v3 = vadd.f32 %v328_v62, %v2521_v59  ;;  %v365_v12 = vmax.f32 %v327_v5, 0.0 }
 0x106   :  { %v330_v2 = vpop.f32.mrf.mxu0 }
 0x107   :  { %v331_v4 = vadd.f32 %v330_v2, %v2524_v61  ;;  %v366_v10 = vmax.f32 %v329_v3, 0.0  ;;  %v1967_v3 = vld [vmem:[%s2874_s6 + $0x24] ss:$8 sps:$4 sm:$0xff]  }
 0x108   :  { %v332_v6 = vpop.f32.mrf.mxu0 }
 0x109   :  { %v333_v7 = vadd.f32 %v332_v6, %v2521_v59  ;;  %v367_v8 = vmax.f32 %v331_v4, 0.0 }
 0x10a   :  { %v336_v9 = vpop.f32.mrf.mxu0 }
 0x10b   :  { %v368_v11 = vmax.f32 %v333_v7, 0.0  ;;  %v337_v14 = vadd.f32 %v336_v9, %v2524_v61  ;;  %v381_v19 = vpack.c.bf16 %v367_v8, %v365_v12  ;;  %v1965_v8 = vld [vmem:[%s2874_s6 + $0x20] ss:$8 sps:$4 sm:$0xff]   ;;  %v1973_v12 = vld [vmem:[%s2874_s6 + $0x14] ss:$8 sps:$4 sm:$0xff]  }
 0x10c   :  { %v338_v15 = vpop.f32.mrf.mxu0 }
 0x10d   :  { %v382_v16 = vpack.c.bf16 %v368_v11, %v366_v10  ;;  %v339_v18 = vadd.f32 %v338_v15, %v2521_v59  ;;  %v369_v23 = vmax.f32 %v337_v14, 0.0  ;;  %v1971_v15 = vld [vmem:[%s2874_s6 + $0x10] ss:$8 sps:$4 sm:$0xff]  }
 0x10e   :  { %v340_v21 = vpop.f32.mrf.mxu0 }
 0x10f   :  { %625 = vmatprep.mubr.bf16.mxu1 %v382_v16  ;;  %v341_v22 = vadd.f32 %v340_v21, %v2524_v61  ;;  %v370_v26 = vmax.f32 %v339_v18, 0.0  ;;  %v1985_v18 = vld [vmem:[%s2874_s6 + $0xf4] ss:$8 sps:$4 sm:$0xff]  }
 0x110   :  { %626 = vmatmul.mubr.bf16.vlgmr.msra.gmra.mxu1 %v381_v19  ;;  %v342_v24 = vpop.f32.mrf.mxu0  ;;  %v1983_v19 = vld [vmem:[%s2874_s6 + $0xf0] ss:$8 sps:$4 sm:$0xff]   ;;  %v1997_v21 = vld [vmem:[%s2874_s6 + $0xd4] ss:$8 sps:$4 sm:$0xff]  }
 0x111   :  { %1188 = vmatpush1.bf16.msra.mxu1 %v1935_v17  ;;  %v371_v27 = vmax.f32 %v341_v22, 0.0  ;;  %v343_v28 = vadd.f32 %v342_v24, %v2521_v59  ;;  %v1979_v17 = vld [vmem:[%s2874_s6 + $0x4] ss:$8 sps:$4 sm:$0xff]   ;;  %v1995_v22 = vld [vmem:[%s2874_s6 + $0xd0] ss:$8 sps:$4 sm:$0xff]  }
 0x112   :  { %1189 = vmatprep.subr.bf16.mxu1 %v1943_v20  ;;  %v346_v30 = vpop.f32.mrf.mxu0  ;;  %v1991_v20 = vld [vmem:[%s2874_s6 + $0xe4] ss:$8 sps:$4 sm:$0xff]   ;;  %v2001_v24 = vld [vmem:[%s2874_s6 + $0xc0] ss:$8 sps:$4 sm:$0xff]  }
 0x113   :  { %v372_v31 = vmax.f32 %v343_v28, 0.0  ;;  %v383_v32 = vpack.c.bf16 %v371_v27, %v369_v23  ;;  %v347_v33 = vadd.f32 %v346_v30, %v2524_v61  ;;  %v2003_v23 = vld [vmem:[%s2874_s6 + $0xc4] ss:$8 sps:$4 sm:$0xff]   ;;  %v2013_v28 = vld [vmem:[%s2874_s6 + $0xa0] ss:$8 sps:$4 sm:$0xff]  }
 0x114   :  { %v348_v34 = vpop.f32.mrf.mxu0  ;;  %v2015_v27 = vld [vmem:[%s2874_s6 + $0xa4] ss:$8 sps:$4 sm:$0xff]   ;;  %v2019_v30 = vld [vmem:[%s2874_s6 + $0x90] ss:$8 sps:$4 sm:$0xff]  }
 0x115   :  { %1190 = vmatpush1.bf16.msra.mxu1 %v1941_v25  ;;  %v384_v36 = vpack.c.bf16 %v372_v31, %v370_v26  ;;  %v349_v37 = vadd.f32 %v348_v34, %v2521_v59  ;;  %v373_v41 = vmax.f32 %v347_v33, 0.0  ;;  %v2009_v25 = vld [vmem:[%s2874_s6 + $0xb4] ss:$8 sps:$4 sm:$0xff]   ;;  %v2007_v26 = vld [vmem:[%s2874_s6 + $0xb0] ss:$8 sps:$4 sm:$0xff]  }
 0x116   :  { %1191 = vmatprep.subr.bf16.mxu1 %v1949_v29  ;;  %v350_v39 = vpop.f32.mrf.mxu0  ;;  %v2021_v29 = vld [vmem:[%s2874_s6 + $0x94] ss:$8 sps:$4 sm:$0xff]   ;;  %v2027_v31 = vld [vmem:[%s2874_s6 + $0x84] ss:$8 sps:$4 sm:$0xff]   ;;  %v2037_v33 = vld [vmem:[%s2877_s9 + $0x70] ss:$8 sps:$4 sm:$0xff]  }
 0x117   :  { %v351_v40 = vadd.f32 %v350_v39, %v2524_v61  ;;  %635 = vmatprep.mubr.bf16.mxu1 %v384_v36  ;;  %v374_v44 = vmax.f32 %v349_v37, 0.0  ;;  %v2039_v34 = vld [vmem:[%s2877_s9 + $0x74] ss:$8 sps:$4 sm:$0xff]   ;;  %v2046_v36 = vld [vmem:[%s2877_s9 + $0x40] ss:$8 sps:$4 sm:$0xff]  }
 0x118   :  { %v352_v42 = vpop.f32.mrf.mxu0  ;;  %636 = vmatmul.mubr.bf16.gmra.mxu1 %v383_v32  ;;  %v2025_v32 = vld [vmem:[%s2874_s6 + $0x80] ss:$8 sps:$4 sm:$0xff]   ;;  %1516 = vmatprep.subr.bf16.mxu0 %v2039_v34  ;;  %v2054_v37 = vld [vmem:[%s2877_s9 + $0x24] ss:$8 sps:$4 sm:$0xff]   ;;  %v2055_v39 = vld [vmem:[%s2877_s9 + $0x10] ss:$8 sps:$4 sm:$0xff]  }
 0x119   :  { %1192 = vmatpush1.bf16.msra.mxu1 %v1947_v35  ;;  %v375_v45 = vmax.f32 %v351_v40, 0.0  ;;  %v353_v46 = vadd.f32 %v352_v42, %v2521_v59  ;;  %v2042_v35 = vld [vmem:[%s2877_s9 + $0x64] ss:$8 sps:$4 sm:$0xff]   ;;  %1517 = vmatpush1.bf16.msra.mxu0 %v2037_v33  ;;  %v2063_v42 = vld [vmem:[%s2877_s9 + $0xf4] ss:$8 sps:$4 sm:$0xff]  }
 0x11a   :  { %1193 = vmatprep.subr.bf16.mxu1 %v1955_v38  ;;  %v356_v48 = vpop.f32.mrf.mxu0  ;;  %1518 = vmatprep.subr.bf16.mxu0 %v2042_v35  ;;  %v2052_v38 = vld [vmem:[%s2877_s9 + $0x20] ss:$8 sps:$4 sm:$0xff]   ;;  %v2060_v40 = vld [vmem:[%s2877_s9 + $0x4] ss:$8 sps:$4 sm:$0xff]  }
 0x11b   :  { %v376_v49 = vmax.f32 %v353_v46, 0.0  ;;  %v385_v50 = vpack.c.bf16 %v375_v45, %v373_v41  ;;  %v357_v51 = vadd.f32 %v356_v48, %v2524_v61  ;;  %v2058_v41 = vld [vmem:[%s2877_s9] ss:$8 sps:$4 sm:$0xff]   ;;  %v2069_v46 = vld [vmem:[%s2877_s9 + $0xd4] ss:$8 sps:$4 sm:$0xff]  }
 0x11c   :  { %v358_v56 = vpop.f32.mrf.mxu0  ;;  %v2064_v45 = vld [vmem:[%s2877_s9 + $0xe0] ss:$8 sps:$4 sm:$0xff]   ;;  %v2072_v48 = vld [vmem:[%s2877_s9 + $0xc4] ss:$8 sps:$4 sm:$0xff]  }
 0x11d   :  { %1194 = vmatpush1.bf16.msra.mxu1 %v1953_v43  ;;  %v386_v62 = vpack.c.bf16 %v376_v49, %v374_v44  ;;  %v359_v2 = vadd.f32 %v358_v56, %v2521_v59  ;;  %v377_v6 = vmax.f32 %v357_v51, 0.0  ;;  %v2061_v43 = vld [vmem:[%s2877_s9 + $0xf0] ss:$8 sps:$4 sm:$0xff]   ;;  %v2066_v44 = vld [vmem:[%s2877_s9 + $0xe4] ss:$8 sps:$4 sm:$0xff]  }
 0x11e   :  { %1195 = vmatprep.subr.bf16.mxu1 %v1961_v47  ;;  %v360_v4 = vpop.f32.mrf.mxu0  ;;  %v2067_v47 = vld [vmem:[%s2877_s9 + $0xd0] ss:$8 sps:$4 sm:$0xff]   ;;  %v2070_v49 = vld [vmem:[%s2877_s9 + $0xc0] ss:$8 sps:$4 sm:$0xff]   ;;  %v2078_v56 = vld [vmem:[%s2877_s9 + $0xa4] ss:$8 sps:$4 sm:$0xff]  }
 0x11f   :  { %v361_v5 = vadd.f32 %v360_v4, %v2524_v61  ;;  %645 = vmatprep.mubr.bf16.mxu1 %v386_v62  ;;  %v378_v9 = vmax.f32 %v359_v2, 0.0  ;;  %v2073_v51 = vld [vmem:[%s2877_s9 + $0xb0] ss:$8 sps:$4 sm:$0xff]   ;;  %v2081_v62 = vld [vmem:[%s2877_s9 + $0x94] ss:$8 sps:$4 sm:$0xff]  }
 0x120   :  { %v362_v7 = vpop.f32.mrf.mxu0  ;;  %646 = vmatmul.mubr.bf16.gmra.mxu1 %v385_v50  ;;  %v2075_v50 = vld [vmem:[%s2877_s9 + $0xb4] ss:$8 sps:$4 sm:$0xff]   ;;  %v2079_v2 = vld [vmem:[%s2877_s9 + $0x90] ss:$8 sps:$4 sm:$0xff]   ;;  %v2082_v4 = vld [vmem:[%s2877_s9 + $0x80] ss:$8 sps:$4 sm:$0xff]  }
 0x121   :  { %1196 = vmatpush1.bf16.msra.mxu1 %v1959_v57  ;;  %v379_v10 = vmax.f32 %v361_v5, 0.0  ;;  %v363_v11 = vadd.f32 %v362_v7, %v2521_v59  ;;  %v1977_v59 = vld [vmem:[%s2874_s6] ss:$8 sps:$4 sm:$0xff]  }
 0x122   :  { %1197 = vmatprep.subr.bf16.mxu1 %v1967_v3  ;;  %v2076_v57 = vld [vmem:[%s2877_s9 + $0xa0] ss:$8 sps:$4 sm:$0xff]   ;;  %v2084_v3 = vld [vmem:[%s2877_s9 + $0x84] ss:$8 sps:$4 sm:$0xff]  }
 0x123   :  { %v380_v14 = vmax.f32 %v363_v11, 0.0  ;;  %v387_v61 = vpack.c.bf16 %v379_v10, %v377_v6  ;;  %v421_v5 = vld [vmem:[%s2878_s5] sm:$0x3] }
 0x124   :  { %v426_v6 = vrot.slane %v421_v5, %v2515_v55  ;;  %v430_v7 = vrot.slane %v421_v5, %v2513_v53 }
 0x125   :  { %1198 = vmatpush1.bf16.msra.mxu1 %v1965_v8  ;;  %v388_v16 = vpack.c.bf16 %v380_v14, %v378_v9 }
 0x126   :  { %1199 = vmatprep.subr.bf16.mxu1 %v1973_v12 }
 0x127   :  { %655 = vmatprep.mubr.bf16.mxu1 %v388_v16 }
 0x128   :  { %656 = vmatmul.mubr.bf16.gmra.mxu1 %v387_v61 }
 0x129   :  { %1200 = vmatpush1.bf16.msra.mxu1 %v1971_v15  ;;  %1219 = vmatprep.mubr.bf16.mxu1 %v2192_v13  ;;  %v1989_v13 = vld [vmem:[%s2874_s6 + $0xe0] ss:$8 sps:$4 sm:$0xff]  }
 0x12a   :  { %1201 = vmatprep.subr.bf16.mxu1 %v1979_v17 }
 0x12d   :  { %1202 = vmatpush1.bf16.msra.mxu1 %v1977_v59 }
 0x12e   :  { %1203 = vmatprep.subr.bf16.mxu1 %v1985_v18 }
 0x131   :  { %1204 = vmatpush2.bf16.msra.mxu1 %v1983_v19 }
 0x132   :  { %1205 = vmatprep.subr.bf16.mxu1 %v1991_v20 }
 0x135   :  { %1206 = vmatpush2.bf16.msra.mxu1 %v1989_v13 }
 0x136   :  { %1207 = vmatprep.subr.bf16.mxu1 %v1997_v21 }
 0x139   :  { %1208 = vmatpush2.bf16.msra.mxu1 %v1995_v22 }
 0x13a   :  { %1209 = vmatprep.subr.bf16.mxu1 %v2003_v23 }
 0x13d   :  { %1210 = vmatpush2.bf16.msra.mxu1 %v2001_v24 }
 0x13e   :  { %1211 = vmatprep.subr.bf16.mxu1 %v2009_v25 }
 0x141   :  { %1212 = vmatpush2.bf16.msra.mxu1 %v2007_v26 }
 0x142   :  { %1213 = vmatprep.subr.bf16.mxu1 %v2015_v27 }
 0x145   :  { %1214 = vmatpush2.bf16.msra.mxu1 %v2013_v28 }
 0x146   :  { %1215 = vmatprep.subr.bf16.mxu1 %v2021_v29 }
 0x149   :  { %1216 = vmatpush2.bf16.msra.mxu1 %v2019_v30 }
 0x14a   :  { %1217 = vmatprep.subr.bf16.mxu1 %v2027_v31 }
 0x14d   :  { %1218 = vmatpush2.bf16.msra.mxu1 %v2025_v32 }
 0x14e   :  { %1789 = vmatprep.subr.bf16.mxu1 %v2039_v34 }
 0x150   :  { %1220 = vmatmul.mubr.bf16.vlgmr.msra.gmra.mxu1 %v2312_v52  ;;  %v2040_v52 = vld [vmem:[%s2877_s9 + $0x60] ss:$8 sps:$4 sm:$0xff]  }
 0x151   :  { %1229 = vmatprep.mubr.bf16.mxu1 %v2320_v54  ;;  %1805 = vmatpush1.bf16.msra.mxu1 %v2037_v33  ;;  %v2045_v54 = vld [vmem:[%s2877_s9 + $0x54] ss:$8 sps:$4 sm:$0xff]  }
 0x152   :  { %1790 = vmatprep.subr.bf16.mxu1 %v2042_v35  ;;  %1519 = vmatpush1.bf16.msra.mxu0 %v2040_v52 }
 0x153   :  { %1520 = vmatprep.subr.bf16.mxu0 %v2045_v54 }
 0x155   :  { %1806 = vmatpush1.bf16.msra.mxu1 %v2040_v52 }
 0x156   :  { %1791 = vmatprep.subr.bf16.mxu1 %v2045_v54 }
 0x158   :  { %1230 = vmatmul.mubr.bf16.gmra.mxu1 %v2336_v58  ;;  %v2043_v58 = vld [vmem:[%s2877_s9 + $0x50] ss:$8 sps:$4 sm:$0xff]  }
 0x159   :  { %1239 = vmatprep.mubr.bf16.mxu1 %v2344_v60  ;;  %v2048_v60 = vld [vmem:[%s2877_s9 + $0x44] ss:$8 sps:$4 sm:$0xff]   ;;  %1521 = vmatpush1.bf16.msra.mxu0 %v2043_v58 }
 0x15a   :  { %1807 = vmatpush1.bf16.msra.mxu1 %v2043_v58  ;;  %1522 = vmatprep.subr.bf16.mxu0 %v2048_v60  ;;  %v988_v58 = vpop.f32.mrf.mxu0 }
 0x15b   :  { %1792 = vmatprep.subr.bf16.mxu1 %v2048_v60 }
 0x15c   :  { %v990_v60 = vpop.f32.mrf.mxu0 }
 0x15d   :  { %1523 = vmatpush1.bf16.msra.mxu0 %v2046_v36 }
 0x15e   :  { %1808 = vmatpush1.bf16.msra.mxu1 %v2046_v36  ;;  %v992_v36 = vpop.f32.mrf.mxu0 }
 0x160   :  { %1240 = vmatmul.mubr.bf16.gmra.mxu1 %v2357_v63  ;;  %v2051_v63 = vld [vmem:[%s2877_s9 + $0x34] ss:$8 sps:$4 sm:$0xff]  }
 0x161   :  { %1249 = vmatprep.mubr.bf16.mxu1 %v2362_v0  ;;  %v2049_v0 = vld [vmem:[%s2877_s9 + $0x30] ss:$8 sps:$4 sm:$0xff]   ;;  %1524 = vmatprep.subr.bf16.mxu0 %v2051_v63 }
 0x162   :  { %1793 = vmatprep.subr.bf16.mxu1 %v2051_v63  ;;  %1525 = vmatpush1.bf16.msra.mxu0 %v2049_v0  ;;  %v994_v63 = vpop.f32.mrf.mxu0 }
 0x163   :  { %1809 = vmatpush1.bf16.msra.mxu1 %v2049_v0  ;;  %1526 = vmatprep.subr.bf16.mxu0 %v2054_v37 }
 0x164   :  { %1794 = vmatprep.subr.bf16.mxu1 %v2054_v37  ;;  %v998_v0 = vpop.f32.mrf.mxu0 }
 0x166   :  { %1527 = vmatpush1.bf16.msra.mxu0 %v2052_v38  ;;  %v1000_v37 = vpop.f32.mrf.mxu0 }
 0x167   :  { %1810 = vmatpush1.bf16.msra.mxu1 %v2052_v38 }
 0x168   :  { %1250 = vmatmul.mubr.bf16.gmra.mxu1 %v2369_v1  ;;  %v2057_v1 = vld [vmem:[%s2877_s9 + $0x14] ss:$8 sps:$4 sm:$0xff]   ;;  %v1002_v38 = vpop.f32.mrf.mxu0 }
 0x169   :  { %1528 = vmatprep.subr.bf16.mxu0 %v2057_v1  ;;  %1795 = vmatprep.subr.bf16.mxu1 %v2057_v1 }
 0x16a   :  { %1529 = vmatpush1.bf16.msra.mxu0 %v2055_v39  ;;  %v1004_v1 = vpop.f32.mrf.mxu0 }
 0x16b   :  { %1811 = vmatpush1.bf16.msra.mxu1 %v2055_v39  ;;  %1530 = vmatprep.subr.bf16.mxu0 %v2060_v40 }
 0x16c   :  { %1796 = vmatprep.subr.bf16.mxu1 %v2060_v40  ;;  %v1260_v40 = vld [vmem:[%s2880_s8] sm:$0x3] }
 0x16e   :  { %1531 = vmatpush1.bf16.msra.mxu0 %v2058_v41 }
 0x16f   :  { %1812 = vmatpush1.bf16.msra.mxu1 %v2058_v41  ;;  %1532 = vmatprep.subr.bf16.mxu0 %v2063_v42 }
 0x170   :  { %1797 = vmatprep.subr.bf16.mxu1 %v2063_v42  ;;  %v1008_v42 = vpop.f32.mrf.mxu0 }
 0x172   :  { %1533 = vmatpush2.bf16.msra.mxu0 %v2061_v43 }
 0x173   :  { %1813 = vmatpush2.bf16.msra.mxu1 %v2061_v43  ;;  %1534 = vmatprep.subr.bf16.mxu0 %v2066_v44 }
 0x174   :  { %1798 = vmatprep.subr.bf16.mxu1 %v2066_v44  ;;  %v2796_v44 = vrot.slane %v1260_v40, %v2513_v53 }
 0x176   :  { %1535 = vmatpush2.bf16.msra.mxu0 %v2064_v45 }
 0x177   :  { %1814 = vmatpush2.bf16.msra.mxu1 %v2064_v45  ;;  %1536 = vmatprep.subr.bf16.mxu0 %v2069_v46 }
 0x178   :  { %1799 = vmatprep.subr.bf16.mxu1 %v2069_v46  ;;  %v2799_v46 = vrot.slane %v1260_v40, %v2515_v55 }
 0x17a   :  { %1537 = vmatpush2.bf16.msra.mxu0 %v2067_v47 }
 0x17b   :  { %1815 = vmatpush2.bf16.msra.mxu1 %v2067_v47  ;;  %1538 = vmatprep.subr.bf16.mxu0 %v2072_v48 }
 0x17c   :  { %1800 = vmatprep.subr.bf16.mxu1 %v2072_v48 }
 0x17e   :  { %1539 = vmatpush2.bf16.msra.mxu0 %v2070_v49 }
 0x17f   :  { %1816 = vmatpush2.bf16.msra.mxu1 %v2070_v49  ;;  %1540 = vmatprep.subr.bf16.mxu0 %v2075_v50 }
 0x180   :  { %1801 = vmatprep.subr.bf16.mxu1 %v2075_v50  ;;  %v1010_v50 = vpop.f32.mrf.mxu0 }
 0x182   :  { %1541 = vmatpush2.bf16.msra.mxu0 %v2073_v51 }
 0x183   :  { %1817 = vmatpush2.bf16.msra.mxu1 %v2073_v51  ;;  %1542 = vmatprep.subr.bf16.mxu0 %v2078_v56 }
 0x184   :  { %1802 = vmatprep.subr.bf16.mxu1 %v2078_v56 }
 0x186   :  { %1543 = vmatpush2.bf16.msra.mxu0 %v2076_v57 }
 0x187   :  { %1818 = vmatpush2.bf16.msra.mxu1 %v2076_v57  ;;  %1544 = vmatprep.subr.bf16.mxu0 %v2081_v62 }
 0x188   :  { %1803 = vmatprep.subr.bf16.mxu1 %v2081_v62 }
 0x18a   :  { %1545 = vmatpush2.bf16.msra.mxu0 %v2079_v2 }
 0x18b   :  { %1819 = vmatpush2.bf16.msra.mxu1 %v2079_v2  ;;  %1546 = vmatprep.subr.bf16.mxu0 %v2084_v3 }
 0x18c   :  { %1804 = vmatprep.subr.bf16.mxu1 %v2084_v3 }
 0x18e   :  { %1547 = vmatpush2.bf16.msra.mxu0 %v2082_v4 }
 0x18f   :  { %1820 = vmatpush2.bf16.msra.mxu1 %v2082_v4 }
 0x1d0   :  { %v627_v8 = vpop.f32.mrf.mxu1 }
 0x1d1   :  { %v628_v9 = vadd.f32 %v627_v8, %v426_v6 }
 0x1d2   :  { %v629_v10 = vpop.f32.mrf.mxu1 }
 0x1d3   :  { %666 = vst [vmem:[%s2879_s11] sm:$0xff] %v628_v9  ;;  %v630_v11 = vadd.f32 %v629_v10, %v430_v7 }
 0x1d4   :  { %v631_v12 = vpop.f32.mrf.mxu1 }
 0x1d5   :  { %667 = vst [vmem:[%s2879_s11 + $0x8] sm:$0xff] %v630_v11  ;;  %v632_v14 = vadd.f32 %v631_v12, %v426_v6 }
 0x1d6   :  { %v633_v61 = vpop.f32.mrf.mxu1 }
 0x1d7   :  { %668 = vst [vmem:[%s2879_s11 + $0x10] sm:$0xff] %v632_v14  ;;  %v634_v15 = vadd.f32 %v633_v61, %v430_v7 }
 0x1d8   :  { %v637_v16 = vpop.f32.mrf.mxu1 }
 0x1d9   :  { %669 = vst [vmem:[%s2879_s11 + $0x18] sm:$0xff] %v634_v15  ;;  %v638_v17 = vadd.f32 %v637_v16, %v426_v6 }
 0x1da   :  { %v639_v59 = vpop.f32.mrf.mxu1 }
 0x1db   :  { %670 = vst [vmem:[%s2879_s11 + $0x20] sm:$0xff] %v638_v17  ;;  %v640_v18 = vadd.f32 %v639_v59, %v430_v7 }
 0x1dc   :  { %v641_v19 = vpop.f32.mrf.mxu1 }
 0x1dd   :  { %671 = vst [vmem:[%s2879_s11 + $0x28] sm:$0xff] %v640_v18  ;;  %v642_v20 = vadd.f32 %v641_v19, %v426_v6 }
 0x1de   :  { %v643_v13 = vpop.f32.mrf.mxu1 }
 0x1df   :  { %672 = vst [vmem:[%s2879_s11 + $0x30] sm:$0xff] %v642_v20  ;;  %v644_v21 = vadd.f32 %v643_v13, %v430_v7 }
 0x1e0   :  { %v647_v22 = vpop.f32.mrf.mxu1 }
 0x1e1   :  { %673 = vst [vmem:[%s2879_s11 + $0x38] sm:$0xff] %v644_v21  ;;  %v648_v23 = vadd.f32 %v647_v22, %v426_v6 }
 0x1e2   :  { %v649_v24 = vpop.f32.mrf.mxu1 }
 0x1e3   :  { %674 = vst [vmem:[%s2879_s11 + $0x40] sm:$0xff] %v648_v23  ;;  %v650_v25 = vadd.f32 %v649_v24, %v430_v7 }
 0x1e4   :  { %v651_v26 = vpop.f32.mrf.mxu1 }
 0x1e5   :  { %675 = vst [vmem:[%s2879_s11 + $0x48] sm:$0xff] %v650_v25  ;;  %v652_v27 = vadd.f32 %v651_v26, %v426_v6 }
 0x1e6   :  { %v653_v28 = vpop.f32.mrf.mxu1 }
 0x1e7   :  { %676 = vst [vmem:[%s2879_s11 + $0x50] sm:$0xff] %v652_v27  ;;  %v654_v29 = vadd.f32 %v653_v28, %v430_v7 }
 0x1e8   :  { %v657_v30 = vpop.f32.mrf.mxu1 }
 0x1e9   :  { %677 = vst [vmem:[%s2879_s11 + $0x58] sm:$0xff] %v654_v29  ;;  %v658_v31 = vadd.f32 %v657_v30, %v426_v6 }
 0x1ea   :  { %v659_v32 = vpop.f32.mrf.mxu1 }
 0x1eb   :  { %678 = vst [vmem:[%s2879_s11 + $0x60] sm:$0xff] %v658_v31  ;;  %v660_v33 = vadd.f32 %v659_v32, %v430_v7 }
 0x1ec   :  { %v661_v34 = vpop.f32.mrf.mxu1 }
 0x1ed   :  { %679 = vst [vmem:[%s2879_s11 + $0x68] sm:$0xff] %v660_v33  ;;  %v662_v35 = vadd.f32 %v661_v34, %v426_v6  ;;  %v1012_v6 = vpop.f32.mrf.mxu0 }
 0x1ee   :  { %v663_v52 = vpop.f32.mrf.mxu1 }
 0x1ef   :  { %680 = vst [vmem:[%s2879_s11 + $0x70] sm:$0xff] %v662_v35  ;;  %v664_v54 = vadd.f32 %v663_v52, %v430_v7  ;;  %v1014_v17 = vpop.f32.mrf.mxu0 }
 0x1f1   :  { %681 = vst [vmem:[%s2879_s11 + $0x78] sm:$0xff] %v664_v54  ;;  %v1018_v23 = vpop.f32.mrf.mxu0 }
 0x1f3   :  { %v1020_v33 = vpop.f32.mrf.mxu0 }
 0x210   :  { %v1221_v39 = vpop.f32.mrf.mxu1 }
 0x211   :  { %v1222_v45 = vadd.f32 %v1221_v39, %v988_v58 }
 0x212   :  { %v1223_v41 = vpop.f32.mrf.mxu1 }
 0x213   :  { %v1224_v43 = vadd.f32 %v1223_v41, %v990_v60  ;;  %v1272_v62 = vadd.f32 %v2799_v46, %v1222_v45 }
 0x214   :  { %v1225_v47 = vpop.f32.mrf.mxu1 }
 0x215   :  { %v1226_v48 = vadd.f32 %v1225_v47, %v992_v36  ;;  %v1273_v51 = vadd.f32 %v2796_v44, %v1224_v43  ;;  %v1288_v10 = vmax.f32 %v1272_v62, 0.0 }
 0x216   :  { %v1227_v49 = vpop.f32.mrf.mxu1 }
 0x217   :  { %v1274_v56 = vadd.f32 %v2799_v46, %v1226_v48  ;;  %v1228_v57 = vadd.f32 %v1227_v49, %v994_v63  ;;  %v1289_v7 = vmax.f32 %v1273_v51, 0.0 }
 0x218   :  { %v1231_v2 = vpop.f32.mrf.mxu1 }
 0x219   :  { %v1275_v3 = vadd.f32 %v2796_v44, %v1228_v57  ;;  %v1290_v4 = vmax.f32 %v1274_v56, 0.0  ;;  %v1232_v11 = vadd.f32 %v1231_v2, %v998_v0 }
 0x21a   :  { %v1233_v5 = vpop.f32.mrf.mxu1 }
 0x21b   :  { %v1291_v8 = vmax.f32 %v1275_v3, 0.0  ;;  %v1234_v9 = vadd.f32 %v1233_v5, %v1000_v37  ;;  %v1304_v15 = vpack.c.bf16 %v1290_v4, %v1288_v10  ;;  %v1276_v20 = vadd.f32 %v2799_v46, %v1232_v11  ;;  %v1022_v37 = vpop.f32.mrf.mxu0 }
 0x21c   :  { %v1235_v12 = vpop.f32.mrf.mxu1 }
 0x21d   :  { %v1236_v14 = vadd.f32 %v1235_v12, %v1002_v38  ;;  %v1305_v61 = vpack.c.bf16 %v1291_v8, %v1289_v7  ;;  %v1277_v59 = vadd.f32 %v2796_v44, %v1234_v9  ;;  %v1292_v28 = vmax.f32 %v1276_v20, 0.0  ;;  %v1024_v49 = vpop.f32.mrf.mxu0  ;;  %v1344_v9 = vld [vmem:[%s2881_s10] sm:$0x3] }
 0x21e   :  { %v1237_v16 = vpop.f32.mrf.mxu1  ;;  %v1349_v10 = vrot.slane %v1344_v9, %v2515_v55  ;;  %v1353_v11 = vrot.slane %v1344_v9, %v2513_v53 }
 0x21f   :  { %v1278_v18 = vadd.f32 %v2799_v46, %v1236_v14  ;;  %v1238_v19 = vadd.f32 %v1237_v16, %v1004_v1  ;;  %1548 = vmatprep.mubr.bf16.mxu0 %v1305_v61  ;;  %v1293_v25 = vmax.f32 %v1277_v59, 0.0 }
 0x220   :  { %v1241_v13 = vpop.f32.mrf.mxu1  ;;  %1549 = vmatmul.mubr.bf16.vlgmr.msra.gmra.mxu0 %v1304_v15 }
 0x221   :  { %v1279_v21 = vadd.f32 %v2796_v44, %v1238_v19  ;;  %v1294_v22 = vmax.f32 %v1278_v18, 0.0  ;;  %v1242_v29 = vadd.f32 %v1241_v13, %v1008_v42 }
 0x222   :  { %v1243_v24 = vpop.f32.mrf.mxu1 }
 0x223   :  { %v1295_v26 = vmax.f32 %v1279_v21, 0.0  ;;  %v1244_v27 = vadd.f32 %v1243_v24, %v1010_v50  ;;  %v1306_v35 = vpack.c.bf16 %v1294_v22, %v1292_v28  ;;  %v1280_v60 = vadd.f32 %v2799_v46, %v1242_v29 }
 0x224   :  { %v1245_v30 = vpop.f32.mrf.mxu1 }
 0x225   :  { %v1246_v31 = vadd.f32 %v1245_v30, %v1012_v6  ;;  %v1307_v32 = vpack.c.bf16 %v1295_v26, %v1293_v25  ;;  %v1281_v52 = vadd.f32 %v2796_v44, %v1244_v27  ;;  %v1296_v41 = vmax.f32 %v1280_v60, 0.0 }
 0x226   :  { %v1247_v34 = vpop.f32.mrf.mxu1 }
 0x227   :  { %v1282_v54 = vadd.f32 %v2799_v46, %v1246_v31  ;;  %v1248_v58 = vadd.f32 %v1247_v34, %v1014_v17  ;;  %1558 = vmatprep.mubr.bf16.mxu0 %v1307_v32  ;;  %v1297_v1 = vmax.f32 %v1281_v52, 0.0 }
 0x228   :  { %v1251_v36 = vpop.f32.mrf.mxu1  ;;  %1559 = vmatmul.mubr.bf16.gmra.mxu0 %v1306_v35 }
 0x229   :  { %v1283_v63 = vadd.f32 %v2796_v44, %v1248_v58  ;;  %v1298_v0 = vmax.f32 %v1282_v54, 0.0  ;;  %v1252_v42 = vadd.f32 %v1251_v36, %v1018_v23 }
 0x22a   :  { %v1253_v38 = vpop.f32.mrf.mxu1 }
 0x22b   :  { %v1299_v39 = vmax.f32 %v1283_v63, 0.0  ;;  %v1254_v40 = vadd.f32 %v1253_v38, %v1020_v33  ;;  %v1308_v48 = vpack.c.bf16 %v1298_v0, %v1296_v41  ;;  %v1284_v62 = vadd.f32 %v2799_v46, %v1252_v42 }
 0x22c   :  { %v1255_v43 = vpop.f32.mrf.mxu1 }
 0x22d   :  { %v1256_v45 = vadd.f32 %v1255_v43, %v1022_v37  ;;  %v1309_v47 = vpack.c.bf16 %v1299_v39, %v1297_v1  ;;  %v1285_v51 = vadd.f32 %v2796_v44, %v1254_v40  ;;  %v1300_v6 = vmax.f32 %v1284_v62, 0.0 }
 0x22e   :  { %v1257_v50 = vpop.f32.mrf.mxu1 }
 0x22f   :  { %v1286_v56 = vadd.f32 %v2799_v46, %v1256_v45  ;;  %v1258_v57 = vadd.f32 %v1257_v50, %v1024_v49  ;;  %1568 = vmatprep.mubr.bf16.mxu1 %v1309_v47  ;;  %v1301_v4 = vmax.f32 %v1285_v51, 0.0 }
 0x230   :  { %1569 = vmatmul.mubr.bf16.vlgmr.msra.gmra.mxu1 %v1308_v48 }
 0x231   :  { %v1287_v2 = vadd.f32 %v2796_v44, %v1258_v57  ;;  %v1302_v3 = vmax.f32 %v1286_v56, 0.0 }
 0x233   :  { %v1303_v5 = vmax.f32 %v1287_v2, 0.0  ;;  %v1310_v8 = vpack.c.bf16 %v1302_v3, %v1300_v6 }
 0x235   :  { %v1311_v7 = vpack.c.bf16 %v1303_v5, %v1301_v4 }
 0x237   :  { %1578 = vmatprep.mubr.bf16.mxu1 %v1311_v7 }
 0x238   :  { %1579 = vmatmul.mubr.bf16.gmra.mxu1 %v1310_v8 }
 0x2e0   :  { %v1550_v46 = vpop.f32.mrf.mxu0 }
 0x2e1   :  { %v1551_v12 = vadd.f32 %v1550_v46, %v1349_v10 }
 0x2e2   :  { %v1552_v14 = vpop.f32.mrf.mxu0 }
 0x2e3   :  { %1589 = vst [vmem:[%s2882_s12] sm:$0xff] %v1551_v12  ;;  %v1553_v44 = vadd.f32 %v1552_v14, %v1353_v11 }
 0x2e4   :  { %v1554_v61 = vpop.f32.mrf.mxu0 }
 0x2e5   :  { %1590 = vst [vmem:[%s2882_s12 + $0x8] sm:$0xff] %v1553_v44  ;;  %v1555_v15 = vadd.f32 %v1554_v61, %v1349_v10 }
 0x2e6   :  { %v1556_v16 = vpop.f32.mrf.mxu0 }
 0x2e7   :  { %1591 = vst [vmem:[%s2882_s12 + $0x10] sm:$0xff] %v1555_v15  ;;  %v1557_v53 = vadd.f32 %v1556_v16, %v1353_v11 }
 0x2e8   :  { %v1560_v55 = vpop.f32.mrf.mxu0 }
 0x2e9   :  { %1592 = vst [vmem:[%s2882_s12 + $0x18] sm:$0xff] %v1557_v53  ;;  %v1561_v17 = vadd.f32 %v1560_v55, %v1349_v10 }
 0x2ea   :  { %v1562_v59 = vpop.f32.mrf.mxu0 }
 0x2eb   :  { %1593 = vst [vmem:[%s2882_s12 + $0x20] sm:$0xff] %v1561_v17  ;;  %v1563_v18 = vadd.f32 %v1562_v59, %v1353_v11 }
 0x2ec   :  { %v1564_v19 = vpop.f32.mrf.mxu0 }
 0x2ed   :  { %1594 = vst [vmem:[%s2882_s12 + $0x28] sm:$0xff] %v1563_v18  ;;  %v1565_v20 = vadd.f32 %v1564_v19, %v1349_v10 }
 0x2ee   :  { %v1566_v13 = vpop.f32.mrf.mxu0 }
 0x2ef   :  { %1595 = vst [vmem:[%s2882_s12 + $0x30] sm:$0xff] %v1565_v20  ;;  %v1567_v21 = vadd.f32 %v1566_v13, %v1353_v11 }
 0x2f0   :  { %v1570_v22 = vpop.f32.mrf.mxu1 }
 0x2f1   :  { %1596 = vst [vmem:[%s2882_s12 + $0x38] sm:$0xff] %v1567_v21  ;;  %v1571_v23 = vadd.f32 %v1570_v22, %v1349_v10 }
 0x2f2   :  { %v1572_v24 = vpop.f32.mrf.mxu1 }
 0x2f3   :  { %1597 = vst [vmem:[%s2882_s12 + $0x40] sm:$0xff] %v1571_v23  ;;  %v1573_v25 = vadd.f32 %v1572_v24, %v1353_v11 }
 0x2f4   :  { %v1574_v26 = vpop.f32.mrf.mxu1 }
 0x2f5   :  { %1598 = vst [vmem:[%s2882_s12 + $0x48] sm:$0xff] %v1573_v25  ;;  %v1575_v27 = vadd.f32 %v1574_v26, %v1349_v10 }
 0x2f6   :  { %v1576_v28 = vpop.f32.mrf.mxu1 }
 0x2f7   :  { %1599 = vst [vmem:[%s2882_s12 + $0x50] sm:$0xff] %v1575_v27  ;;  %v1577_v29 = vadd.f32 %v1576_v28, %v1353_v11 }
 0x2f8   :  { %v1580_v30 = vpop.f32.mrf.mxu1 }
 0x2f9   :  { %1600 = vst [vmem:[%s2882_s12 + $0x58] sm:$0xff] %v1577_v29  ;;  %v1581_v31 = vadd.f32 %v1580_v30, %v1349_v10 }
 0x2fa   :  { %v1582_v32 = vpop.f32.mrf.mxu1 }
 0x2fb   :  { %1601 = vst [vmem:[%s2882_s12 + $0x60] sm:$0xff] %v1581_v31  ;;  %v1583_v33 = vadd.f32 %v1582_v32, %v1353_v11 }
 0x2fc   :  { %v1584_v34 = vpop.f32.mrf.mxu1 }
 0x2fd   :  { %1602 = vst [vmem:[%s2882_s12 + $0x68] sm:$0xff] %v1583_v33  ;;  %v1585_v35 = vadd.f32 %v1584_v34, %v1349_v10 }
 0x2fe   :  { %v1586_v52 = vpop.f32.mrf.mxu1 }
 0x2ff   :  { %1603 = vst [vmem:[%s2882_s12 + $0x70] sm:$0xff] %v1585_v35  ;;  %v1587_v54 = vadd.f32 %v1586_v52, %v1353_v11 }
 0x301   :  { %1604 = vst [vmem:[%s2882_s12 + $0x78] sm:$0xff] %v1587_v54 }

</bundles_post_ra>
